<compile_context>
chip_gen: v6e
topology: v6e:2x2x1
jax: 0.10.0
libtpu: 0.0.40
codegen_flags: <defaults>
</compile_context>

<pallas_src>
import numpy as np
import jax
import jax.numpy as jnp
from jax import lax
from jax.experimental import pallas as pl
from jax.experimental.pallas import tpu as pltpu

# ----------------- hyperparameters (mirroring MGCN.__init__) -----------------
NUM_LAYERS     = 2          # num_layers
EMB_DIM        = 32         # emb_dim == feats
OUT_DIM        = 8          # out_dim
OUT_PAD        = 128        # lane-dense padded output width (wrapper slices [:, :OUT_DIM])
CAT_PAD        = max(128, ((EMB_DIM * (NUM_LAYERS + 1) + 127) // 128) * 128)
NUM_NODE_TYPES = 2
NUM_EDGE_TYPES = 3
CUTOFF         = 51.0
GAP            = 0.1

N_CENTERS = int(np.ceil((CUTOFF - 0.0) / GAP))                   # 510
D_PAD     = 512                                                  # pad to 4x128 lanes / MXU K
_centers_np = np.linspace(0.0, CUTOFF, N_CENTERS).astype(np.float32)
RBF_COEF  = float(-1.0 / (_centers_np[1] - _centers_np[0]))      # -1 / effective gap
# padded centers placed far away so exp(coef * radial^2) == 0 exactly (and Wd1 pad rows are 0)
_centers_padded_np = np.concatenate(
    [_centers_np, np.full(D_PAD - N_CENTERS, 1.0e4, np.float32)])
LN2 = float(np.log(2.0))


def _ssp(x):
    # ShiftedSoftplus: softplus(x) - log(2)
    return jnp.where(x > 20.0, x, jnp.log1p(jnp.exp(jnp.minimum(x, 20.0)))) - LN2


def _prelu(x, a):
    return jnp.where(x >= 0.0, x, a * x)


# ------------------------- kernel 1: per-edge precompute ----------------------
def mgcn_edge_kernel(etype_ref, eraw_ref, centers_ref,
                     edge_emb_ref, Wd1_ref, Wsq_ref, Wb_ref,
                     emsg_ref):
    f32, bf16 = jnp.float32, jnp.bfloat16
    F = EMB_DIM
    dot = lambda a, b: jnp.dot(a, b, preferred_element_type=f32)
    E_BLK = eraw_ref.shape[0]

    # edge-type embedding (padded edges hold -1 -> all-zero one-hot row -> ef = 0)
    etype = etype_ref[...]                                                   # (E_BLK, 1)
    etype_oh = (lax.broadcasted_iota(jnp.int32, (E_BLK, NUM_EDGE_TYPES), 1)
                == etype).astype(f32)
    ef = dot(etype_oh, edge_emb_ref[...])                                    # (E_BLK, F)

    # efeats = torch.norm(efeats, p=2, dim=1, keepdim=True)
    eraw = eraw_ref[...]
    dist = jnp.sqrt(jnp.sum(eraw * eraw, axis=1, keepdims=True))             # (E_BLK, 1)

    # RBF expansion (f32 EUP), cast bf16 for the hoisted K=512 MXU projection
    radial   = dist - centers_ref[...]                                       # (E_BLK, 512)
    expanded = jnp.exp(RBF_COEF * radial * radial).astype(bf16)
    d_proj_all = dot(expanded, Wd1_ref[...])                                 # (E_BLK, L*F) f32

    for l in range(NUM_LAYERS):
        Wsq = Wsq_ref[l]                           # (3F, F): [Wd2, We, Wpe]
        bL  = Wb_ref[l]                            # (4,  F): [bd1, bd2, be, bpe]
        Wd2, We, Wpe = Wsq[0:F, :], Wsq[F:2 * F, :], Wsq[2 * F:3 * F, :]
        bd1, bd2, be, bpe = bL[0:1, :], bL[1:2, :], bL[2:3, :], bL[3:4, :]

        d_proj = dot(_ssp(d_proj_all[:, l * F:(l + 1) * F] + bd1), Wd2) + bd2
        ef_upd = dot(ef, We) + be
        ef     = _ssp(dot(ef_upd, Wpe) + bpe)      # project_edge (feeds next layer)

        emsg_ref[l, :, 0:F]     = d_proj
        emsg_ref[l, :, F:2 * F] = ef_upd


# ---------------- kernel 2: message passing + node decoder --------------------
def mgcn_node_kernel(src_ref,                      # (E_pad,) int32, SMEM scalar prefetch
                     nt_ref, dst_ref, emsg_ref,
                     node_emb_ref, Wsq_ref, Wb_ref,
                     dW0_ref, dWsq_ref, dB_ref, dW4_ref, db4_ref, prelu_a_ref,
                     out_ref,
                     h_sc, newin_sc, agg_sc, cat_sc, gath_sc):
    f32, bf16 = jnp.float32, jnp.bfloat16
    F = EMB_DIM
    dot = lambda a, b: jnp.dot(a, b, preferred_element_type=f32)

    l = pl.program_id(0)
    e = pl.program_id(1)
    n_eblk = pl.num_programs(1)
    N_pad = h_sc.shape[0]
    E_BLK = gath_sc.shape[0]

    # ---- one-time init: node-type embeddings, decoder cat buffer ----
    @pl.when((l == 0) & (e == 0))
    def _init():
        nt = nt_ref[...]                                                     # (N_pad, 1)
        node_oh = (lax.broadcasted_iota(jnp.int32, (N_pad, NUM_NODE_TYPES), 1)
                   == nt).astype(f32)
        h0 = dot(node_oh, node_emb_ref[...])
        h_sc[...] = h0
        cat_sc[...] = jnp.zeros_like(cat_sc)
        cat_sc[:, 0:F] = h0

    # ---- per-layer prologue: project node inputs, reset aggregation ----
    @pl.when(e == 0)
    def _layer_start():
        Wsq = Wsq_ref[l]                            # (4F, F): [W_in, Wo1, Wp1, Wp2]
        b_in = Wb_ref[l][0:1, :]
        newin_sc[...] = dot(h_sc[...], Wsq[0:F, :]) + b_in
        agg_sc[...] = jnp.zeros_like(agg_sc)

    # ---- per-E-block message passing ----
    # index gather of source-node rows (O(E_BLK*F); padded edges use src=0, scatter-masked)
    e_start = e * E_BLK

    def _gather(i, carry):
        s = jnp.maximum(src_ref[e_start + i], 0)
        gath_sc[pl.ds(i, 1), :] = newin_sc[pl.ds(s, 1), :]
        return carry

    lax.fori_loop(0, E_BLK, _gather, 0)

    em = emsg_ref[0]                               # (E_BLK, 2F): [d_proj | ef_upd]
    msg = gath_sc[...] * em[:, 0:F] + em[:, F:2 * F]

    # dst scatter-add as one (N_pad, E_BLK)@(E_BLK, F) bf16 MXU matmul, f32 accumulation;
    # padded edges hold dst = -1 -> all-zero one-hot column -> contribute nothing.
    dst = dst_ref[...]                             # (1, E_BLK)
    dst_oh = (lax.broadcasted_iota(jnp.int32, (N_pad, E_BLK), 0)
              == dst).astype(f32).astype(bf16)
    agg_sc[...] += dot(dst_oh, msg.astype(bf16))

    # ---- per-layer epilogue + decoder (static dispatch over layer id) ----
    for ll in range(NUM_LAYERS):
        @pl.when((l == ll) & (e == n_eblk - 1))
        def _layer_end(ll=ll):
            Wsq = Wsq_ref[ll]
            bL  = Wb_ref[ll]
            Wo1, Wp1, Wp2 = Wsq[F:2 * F, :], Wsq[2 * F:3 * F, :], Wsq[3 * F:4 * F, :]
            bo1, bp1, bp2 = bL[1:2, :], bL[2:3, :], bL[3:4, :]
            new = dot(agg_sc[...], Wo1) + bo1                     # project_out1
            new = dot(_ssp(dot(new, Wp1) + bp1), Wp2) + bp2       # project_out2
            h = h_sc[...] + new                                   # residual
            h_sc[...] = h
            cat_sc[:, (ll + 1) * F:(ll + 2) * F] = h

            if ll == NUM_LAYERS - 1:
                # node_decoder: Linear(128->F) PReLU [Linear(F->F) PReLU]*3 Linear(F->out)
                a = prelu_a_ref[...]
                z = _prelu(dot(cat_sc[...], dW0_ref[...]) + dB_ref[0:1, :], a[0:1, 0:1])
                z = _prelu(dot(z, dWsq_ref[0]) + dB_ref[1:2, :], a[0:1, 1:2])
                z = _prelu(dot(z, dWsq_ref[1]) + dB_ref[2:3, :], a[0:1, 2:3])
                z = _prelu(dot(z, dWsq_ref[2]) + dB_ref[3:4, :], a[0:1, 3:4])
                out_ref[...] = dot(z, dW4_ref[...]) + db4_ref[...]


# ------------------------------ parameter init --------------------------------
def init_params(key):
    F, L, D = EMB_DIM, NUM_LAYERS, N_CENTERS
    keys = iter(jax.random.split(key, 64))

    def lin(shape):
        fan_in = shape[-2]
        return jax.random.normal(next(keys), shape, jnp.float32) / np.sqrt(fan_in)

    def bias(shape):
        return 0.01 * jax.random.normal(next(keys), shape, jnp.float32)

    node_emb = jax.random.normal(next(keys), (NUM_NODE_TYPES, F), jnp.float32)
    edge_emb = jax.random.normal(next(keys), (NUM_EDGE_TYPES, F), jnp.float32)

    # edge-side per-layer packs: [Wd2, We, Wpe] -> (L, 3F, F); [bd1, bd2, be, bpe] -> (L, 4, F)
    Wsq_e = jnp.concatenate([lin((L, F, F)) for _ in range(3)], axis=1)
    Wb_e  = bias((L, 4, F))
    # node-side per-layer packs: [W_in, Wo1, Wp1, Wp2] -> (L, 4F, F); [b_in, bo1, bp1, bp2]
    Wsq_n = jnp.concatenate([lin((L, F, F)) for _ in range(4)], axis=1)
    Wb_n  = bias((L, 4, F))

    # RBF projection weights hoisted/flattened to (D_PAD, L*F), bf16; pad rows are exact zeros.
    Wd1 = lin((L, D, F))
    Wd1_flat = jnp.transpose(Wd1, (1, 0, 2)).reshape(D, L * F)
    Wd1_flat = jnp.pad(Wd1_flat, ((0, D_PAD - D), (0, 0))).astype(jnp.bfloat16)

    # decoder; dW0 rows padded 96 -> 128 (zero rows align with zero lane-pad of cat buffer)
    dW0  = jnp.pad(lin((F * (L + 1), F)), ((0, CAT_PAD - F * (L + 1)), (0, 0)))
    dWsq = lin((3, F, F))                      # dW1, dW2, dW3
    dB   = bias((4, F))                        # db0..db3
    dW4  = jnp.pad(lin((F, OUT_DIM)), ((0, 0), (0, OUT_PAD - OUT_DIM)))
    db4  = jnp.pad(bias((1, OUT_DIM)), ((0, 0), (0, OUT_PAD - OUT_DIM)))
    prelu_a = jnp.full((1, 4), 0.25, jnp.float32)

    return (node_emb, edge_emb, Wd1_flat, Wsq_e, Wb_e, Wsq_n, Wb_n,
            dW0, dWsq, dB, dW4, db4, prelu_a)


# --------------------------------- wrapper ------------------------------------
def _round_up(x, m):
    return max(m, ((x + m - 1) // m) * m)


def _vmem_limit_bytes():
    # generation-aware scoped-VMEM budget: v5e/v6e (128 MiB phys) -> 100 MiB,
    # v7x-class (64 MiB phys) -> 48 MiB, unknown/older -> conservative 32 MiB.
    try:
        kind = jax.devices()[0].device_kind.lower()
    except Exception:
        kind = ""
    if ("v5" in kind) or ("v6" in kind):
        return 100 * 1024 * 1024
    if "7" in kind:
        return 48 * 1024 * 1024
    return 32 * 1024 * 1024


def mgcn_forward(params, nfeats, efeats, src, dst):
    """nfeats: (N,1) int node types; efeats: (E,De) raw edge feats; src/dst: (E,) int."""
    (node_emb, edge_emb, Wd1_flat, Wsq_e, Wb_e, Wsq_n, Wb_n,
     dW0, dWsq, dB, dW4, db4, prelu_a) = params
    F, L = EMB_DIM, NUM_LAYERS
    N, E = nfeats.shape[0], efeats.shape[0]
    DE = efeats.shape[1]

    N_pad = _round_up(N, 128)
    E_BLK = 512 if E > 512 else _round_up(E, 128)
    E_pad = _round_up(E, E_BLK)
    nE = E_pad // E_BLK
    vmem_limit = _vmem_limit_bytes()

    nt = nfeats.reshape(N).astype(jnp.int32)                 # nfeats.squeeze(1)
    etype = nt[src] + nt[dst]                                 # pair type in [0, 3)

    def pad1(x, n, fill):
        return jnp.pad(x, (0, n - x.shape[0]), constant_values=fill)

    # padding convention: type/dst fill = -1 (one-hot never matches), src fill = 0 (safe
    # gather; padded edges are masked out by the all-zero dst one-hot column), eraw fill = 0.
    nt_p    = pad1(nt, N_pad, -1).reshape(N_pad, 1)
    etype_p = pad1(etype.astype(jnp.int32), E_pad, -1).reshape(E_pad, 1)
    src_p   = pad1(src.astype(jnp.int32), E_pad, 0)
    dst_p   = pad1(dst.astype(jnp.int32), E_pad, -1).reshape(1, E_pad)
    eraw_p  = jnp.pad(efeats.astype(jnp.float32), ((0, E_pad - E), (0, 0)))
    centers = jnp.asarray(_centers_padded_np).reshape(1, D_PAD)

    # ---------------- kernel 1: per-edge RBF / edge-chain precompute -----------------
    ce_edge = pl.CostEstimate(
        flops=2 * E_pad * D_PAD * L * F + 2 * E_pad * L * 4 * F * F,
        transcendentals=E_pad * D_PAD + 3 * L * E_pad * F,
        bytes_accessed=E_pad * (4 * DE + 8) + D_PAD * L * F * 2 + L * E_pad * 2 * F * 4)
    edge_msg = pl.pallas_call(
        mgcn_edge_kernel,
        out_shape=jax.ShapeDtypeStruct((L, E_pad, 2 * F), jnp.float32),
        grid=(nE,),
        in_specs=[
            pl.BlockSpec((E_BLK, 1), lambda e: (e, 0)),
            pl.BlockSpec((E_BLK, DE), lambda e: (e, 0)),
            pl.BlockSpec((1, D_PAD), lambda e: (0, 0)),
            pl.BlockSpec((NUM_EDGE_TYPES, F), lambda e: (0, 0)),
            pl.BlockSpec((D_PAD, L * F), lambda e: (0, 0)),
            pl.BlockSpec((L, 3 * F, F), lambda e: (0, 0, 0)),
            pl.BlockSpec((L, 4, F), lambda e: (0, 0, 0)),
        ],
        out_specs=pl.BlockSpec((L, E_BLK, 2 * F), lambda e: (0, e, 0)),
        compiler_params=pltpu.CompilerParams(
            dimension_semantics=("parallel",),
            vmem_limit_bytes=vmem_limit),
        cost_estimate=ce_edge,
    )(etype_p, eraw_p, centers, edge_emb, Wd1_flat, Wsq_e, Wb_e)

    # ---------------- kernel 2: message passing + node decoder -----------------------
    ce_node = pl.CostEstimate(
        flops=2 * L * N_pad * E_pad * F + 2 * L * N_pad * 4 * F * F
              + 2 * N_pad * (CAT_PAD * F + 3 * F * F + F * OUT_PAD),
        transcendentals=2 * L * N_pad * F,
        bytes_accessed=L * (E_pad * 2 * F * 4 + E_pad * 8)
                       + N_pad * (4 + OUT_PAD * 4) + E_pad * 4)
    grid_spec = pltpu.PrefetchScalarGridSpec(
        num_scalar_prefetch=1,
        grid=(L, nE),                       # layer outer, E-block (reduction) last
        in_specs=[
            pl.BlockSpec((N_pad, 1), lambda l, e, s: (0, 0)),
            pl.BlockSpec((1, E_BLK), lambda l, e, s: (0, e)),
            pl.BlockSpec((1, E_BLK, 2 * F), lambda l, e, s: (l, e, 0)),
            pl.BlockSpec((NUM_NODE_TYPES, F), lambda l, e, s: (0, 0)),
            pl.BlockSpec((L, 4 * F, F), lambda l, e, s: (0, 0, 0)),
            pl.BlockSpec((L, 4, F), lambda l, e, s: (0, 0, 0)),
            pl.BlockSpec((CAT_PAD, F), lambda l, e, s: (0, 0)),
            pl.BlockSpec((3, F, F), lambda l, e, s: (0, 0, 0)),
            pl.BlockSpec((4, F), lambda l, e, s: (0, 0)),
            pl.BlockSpec((F, OUT_PAD), lambda l, e, s: (0, 0)),
            pl.BlockSpec((1, OUT_PAD), lambda l, e, s: (0, 0)),
            pl.BlockSpec((1, 4), lambda l, e, s: (0, 0)),
        ],
        out_specs=pl.BlockSpec((N_pad, OUT_PAD), lambda l, e, s: (0, 0)),
        scratch_shapes=[
            pltpu.VMEM((N_pad, F), jnp.float32),        # h (residual stream)
            pltpu.VMEM((N_pad, F), jnp.float32),        # projected node inputs (per layer)
            pltpu.VMEM((N_pad, F), jnp.float32),        # message aggregation
            pltpu.VMEM((N_pad, CAT_PAD), jnp.float32),  # decoder input (layer cat, lane-padded)
            pltpu.VMEM((E_BLK, F), jnp.float32),        # gathered src rows
        ],
    )
    h_pad = pl.pallas_call(
        mgcn_node_kernel,
        out_shape=jax.ShapeDtypeStruct((N_pad, OUT_PAD), jnp.float32),
        grid_spec=grid_spec,
        compiler_params=pltpu.CompilerParams(
            dimension_semantics=("arbitrary", "arbitrary"),
            vmem_limit_bytes=vmem_limit),
        cost_estimate=ce_node,
    )(src_p, nt_p, dst_p, edge_msg, node_emb, Wsq_n, Wb_n,
      dW0, dWsq, dB, dW4, db4, prelu_a)

    return [], h_pad[:N, :OUT_DIM]            # matches `return ([], h)`


# ----------------------------------- main --------------------------------------
if __name__ == "__main__":
    key = jax.random.PRNGKey(0)
    k_nt, k_ef, k_src, k_dst, k_par = jax.random.split(key, 5)

    N, E, DE_RAW = 8, 16, 3
    nfeats = jax.random.randint(k_nt, (N, 1), 0, NUM_NODE_TYPES, dtype=jnp.int32)
    efeats = jax.random.normal(k_ef, (E, DE_RAW), jnp.float32)
    src    = jax.random.randint(k_src, (E,), 0, N, dtype=jnp.int32)
    dst    = jax.random.randint(k_dst, (E,), 0, N, dtype=jnp.int32)

    params = init_params(k_par)

    _, h = mgcn_forward(params, nfeats, efeats, src, dst)
    h = jax.block_until_ready(h)
    assert h.shape == (N, OUT_DIM) and h.dtype == jnp.float32
    assert bool(jnp.all(jnp.isfinite(h)))
    print("KERNEL_OK")
</pallas_src>

<mosaic_0001>
module attributes {stable_mosaic.version = 11 : i64} {
  func.func @mgcn_edge_kernel(%arg0: i32, %arg1: memref<128x1xi32, #tpu.memory_space<vmem>>, %arg2: memref<128x3xf32, #tpu.memory_space<vmem>>, %arg3: memref<1x512xf32, #tpu.memory_space<vmem>>, %arg4: memref<3x32xf32, #tpu.memory_space<vmem>>, %arg5: memref<512x64xbf16, #tpu.memory_space<vmem>>, %arg6: memref<2x96x32xf32, #tpu.memory_space<vmem>>, %arg7: memref<2x4x32xf32, #tpu.memory_space<vmem>>, %arg8: memref<2x128x64xf32, #tpu.memory_space<vmem>>) attributes {dimension_semantics = [#tpu.dimension_semantics<parallel>], iteration_bounds = array<i64: 1>, scalar_prefetch = 0 : i64, scratch_operands = 0 : i64, tpu.core_type = #tpu.core_type<tc>, window_params = [{transform_indices = @transform_0, window_bounds = array<i64: 128, 1>}, {transform_indices = @transform_1, window_bounds = array<i64: 128, 3>}, {pipeline_mode = #tpu.pipeline_mode<synchronous>, transform_indices = @transform_2, window_bounds = array<i64: 1, 512>}, {pipeline_mode = #tpu.pipeline_mode<synchronous>, transform_indices = @transform_3, window_bounds = array<i64: 3, 32>}, {pipeline_mode = #tpu.pipeline_mode<synchronous>, transform_indices = @transform_4, window_bounds = array<i64: 512, 64>}, {pipeline_mode = #tpu.pipeline_mode<synchronous>, transform_indices = @transform_5, window_bounds = array<i64: 2, 96, 32>}, {pipeline_mode = #tpu.pipeline_mode<synchronous>, transform_indices = @transform_6, window_bounds = array<i64: 2, 4, 32>}, {transform_indices = @transform_7, window_bounds = array<i64: 2, 128, 64>}]} {
    %c0 = arith.constant 0 : index
    %c0_0 = arith.constant 0 : index
    %0 = vector.load %arg1[%c0, %c0_0] : memref<128x1xi32, #tpu.memory_space<vmem>>, vector<128x1xi32>
    %1 = tpu.iota {dimensions = array<i32: 1>} : vector<128x3xi32>
    %2 = vector.broadcast %0 : vector<128x1xi32> to vector<128x3xi32>
    %3 = arith.cmpi eq, %1, %2 : vector<128x3xi32>
    %4 = arith.extui %3 : vector<128x3xi1> to vector<128x3xi32>
    %5 = arith.sitofp %4 : vector<128x3xi32> to vector<128x3xf32>
    %c0_1 = arith.constant 0 : index
    %c0_2 = arith.constant 0 : index
    %6 = vector.load %arg4[%c0_1, %c0_2] : memref<3x32xf32, #tpu.memory_space<vmem>>, vector<3x32xf32>
    %cst = arith.constant dense<0.000000e+00> : vector<128x32xf32>
    %7 = tpu.matmul %5, %6, %cst {dimension_numbers = #tpu.dot_dimension_numbers<[1], [0], [0], [1], [0, 0, 1, 1], [], []>} : vector<128x3xf32>, vector<3x32xf32>, vector<128x32xf32> -> vector<128x32xf32>
    %c0_3 = arith.constant 0 : index
    %c0_4 = arith.constant 0 : index
    %8 = vector.load %arg2[%c0_3, %c0_4] : memref<128x3xf32, #tpu.memory_space<vmem>>, vector<128x3xf32>
    %9 = arith.mulf %8, %8 : vector<128x3xf32>
    %cst_5 = arith.constant dense<0.000000e+00> : vector<128xf32>
    %10 = vector.multi_reduction <add>, %9, %cst_5 [1] : vector<128x3xf32> to vector<128xf32>
    %11 = vector.shape_cast %10 : vector<128xf32> to vector<128x1xf32>
    %12 = math.sqrt %11 : vector<128x1xf32>
    %c0_6 = arith.constant 0 : index
    %c0_7 = arith.constant 0 : index
    %13 = vector.load %arg3[%c0_6, %c0_7] : memref<1x512xf32, #tpu.memory_space<vmem>>, vector<1x512xf32>
    %14 = vector.broadcast %12 : vector<128x1xf32> to vector<128x512xf32>
    %15 = vector.broadcast %13 : vector<1x512xf32> to vector<128x512xf32>
    %16 = arith.subf %14, %15 : vector<128x512xf32>
    %cst_8 = arith.constant -9.9803915 : f32
    %17 = vector.broadcast %cst_8 : f32 to vector<128x512xf32>
    %18 = arith.mulf %17, %16 : vector<128x512xf32>
    %19 = arith.mulf %18, %16 : vector<128x512xf32>
    %20 = math.exp %19 : vector<128x512xf32>
    %21 = arith.truncf %20 : vector<128x512xf32> to vector<128x512xbf16>
    %c0_9 = arith.constant 0 : index
    %c0_10 = arith.constant 0 : index
    %22 = vector.load %arg5[%c0_9, %c0_10] : memref<512x64xbf16, #tpu.memory_space<vmem>>, vector<512x64xbf16>
    %cst_11 = arith.constant dense<0.000000e+00> : vector<128x64xf32>
    %23 = tpu.matmul %21, %22, %cst_11 {dimension_numbers = #tpu.dot_dimension_numbers<[1], [0], [0], [1], [0, 0, 1, 1], [], []>} : vector<128x512xbf16>, vector<512x64xbf16>, vector<128x64xf32> -> vector<128x64xf32>
    %c0_12 = arith.constant 0 : index
    %c0_13 = arith.constant 0 : index
    %c0_14 = arith.constant 0 : index
    %24 = vector.load %arg6[%c0_12, %c0_13, %c0_14] : memref<2x96x32xf32, #tpu.memory_space<vmem>>, vector<1x96x32xf32>
    %25 = vector.shape_cast %24 : vector<1x96x32xf32> to vector<96x32xf32>
    %c0_15 = arith.constant 0 : index
    %c0_16 = arith.constant 0 : index
    %c0_17 = arith.constant 0 : index
    %26 = vector.load %arg7[%c0_15, %c0_16, %c0_17] : memref<2x4x32xf32, #tpu.memory_space<vmem>>, vector<1x4x32xf32>
    %27 = vector.shape_cast %26 : vector<1x4x32xf32> to vector<4x32xf32>
    %28 = vector.extract_strided_slice %25 {offsets = [0, 0], sizes = [32, 32], strides = [1, 1]} : vector<96x32xf32> to vector<32x32xf32>
    %29 = vector.extract_strided_slice %25 {offsets = [32, 0], sizes = [32, 32], strides = [1, 1]} : vector<96x32xf32> to vector<32x32xf32>
    %30 = vector.extract_strided_slice %25 {offsets = [64, 0], sizes = [32, 32], strides = [1, 1]} : vector<96x32xf32> to vector<32x32xf32>
    %31 = vector.extract_strided_slice %27 {offsets = [0, 0], sizes = [1, 32], strides = [1, 1]} : vector<4x32xf32> to vector<1x32xf32>
    %32 = vector.extract_strided_slice %27 {offsets = [1, 0], sizes = [1, 32], strides = [1, 1]} : vector<4x32xf32> to vector<1x32xf32>
    %33 = vector.extract_strided_slice %27 {offsets = [2, 0], sizes = [1, 32], strides = [1, 1]} : vector<4x32xf32> to vector<1x32xf32>
    %34 = vector.extract_strided_slice %27 {offsets = [3, 0], sizes = [1, 32], strides = [1, 1]} : vector<4x32xf32> to vector<1x32xf32>
    %35 = vector.extract_strided_slice %23 {offsets = [0, 0], sizes = [128, 32], strides = [1, 1]} : vector<128x64xf32> to vector<128x32xf32>
    %36 = vector.broadcast %31 : vector<1x32xf32> to vector<128x32xf32>
    %37 = arith.addf %35, %36 : vector<128x32xf32>
    %cst_18 = arith.constant 2.000000e+01 : f32
    %38 = vector.broadcast %cst_18 : f32 to vector<128x32xf32>
    %39 = arith.cmpf ogt, %37, %38 : vector<128x32xf32>
    %cst_19 = arith.constant 2.000000e+01 : f32
    %40 = vector.broadcast %cst_19 : f32 to vector<128x32xf32>
    %41 = arith.minimumf %37, %40 : vector<128x32xf32>
    %42 = math.exp %41 : vector<128x32xf32>
    %43 = math.log1p %42 : vector<128x32xf32>
    %44 = arith.select %39, %37, %43 : vector<128x32xi1>, vector<128x32xf32>
    %cst_20 = arith.constant 0.693147182 : f32
    %45 = vector.broadcast %cst_20 : f32 to vector<128x32xf32>
    %46 = arith.subf %44, %45 : vector<128x32xf32>
    %cst_21 = arith.constant dense<0.000000e+00> : vector<128x32xf32>
    %47 = tpu.matmul %46, %28, %cst_21 {dimension_numbers = #tpu.dot_dimension_numbers<[1], [0], [0], [1], [0, 0, 1, 1], [], []>} : vector<128x32xf32>, vector<32x32xf32>, vector<128x32xf32> -> vector<128x32xf32>
    %48 = vector.broadcast %32 : vector<1x32xf32> to vector<128x32xf32>
    %49 = arith.addf %47, %48 : vector<128x32xf32>
    %cst_22 = arith.constant dense<0.000000e+00> : vector<128x32xf32>
    %50 = tpu.matmul %7, %29, %cst_22 {dimension_numbers = #tpu.dot_dimension_numbers<[1], [0], [0], [1], [0, 0, 1, 1], [], []>} : vector<128x32xf32>, vector<32x32xf32>, vector<128x32xf32> -> vector<128x32xf32>
    %51 = vector.broadcast %33 : vector<1x32xf32> to vector<128x32xf32>
    %52 = arith.addf %50, %51 : vector<128x32xf32>
    %cst_23 = arith.constant dense<0.000000e+00> : vector<128x32xf32>
    %53 = tpu.matmul %52, %30, %cst_23 {dimension_numbers = #tpu.dot_dimension_numbers<[1], [0], [0], [1], [0, 0, 1, 1], [], []>} : vector<128x32xf32>, vector<32x32xf32>, vector<128x32xf32> -> vector<128x32xf32>
    %54 = vector.broadcast %34 : vector<1x32xf32> to vector<128x32xf32>
    %55 = arith.addf %53, %54 : vector<128x32xf32>
    %cst_24 = arith.constant 2.000000e+01 : f32
    %56 = vector.broadcast %cst_24 : f32 to vector<128x32xf32>
    %57 = arith.cmpf ogt, %55, %56 : vector<128x32xf32>
    %cst_25 = arith.constant 2.000000e+01 : f32
    %58 = vector.broadcast %cst_25 : f32 to vector<128x32xf32>
    %59 = arith.minimumf %55, %58 : vector<128x32xf32>
    %60 = math.exp %59 : vector<128x32xf32>
    %61 = math.log1p %60 : vector<128x32xf32>
    %62 = arith.select %57, %55, %61 : vector<128x32xi1>, vector<128x32xf32>
    %cst_26 = arith.constant 0.693147182 : f32
    %63 = vector.broadcast %cst_26 : f32 to vector<128x32xf32>
    %64 = arith.subf %62, %63 : vector<128x32xf32>
    %c0_27 = arith.constant 0 : index
    %c0_28 = arith.constant 0 : index
    %c0_29 = arith.constant 0 : index
    %65 = vector.load %arg8[%c0_27, %c0_28, %c0_29] : memref<2x128x64xf32, #tpu.memory_space<vmem>>, vector<1x128x32xf32>
    %66 = vector.shape_cast %65 : vector<1x128x32xf32> to vector<128x32xf32>
    %67 = vector.shape_cast %49 : vector<128x32xf32> to vector<1x128x32xf32>
    tpu.vector_store %arg8[%c0_27, %c0_28, %c0_29], %67 {strides = array<i32>} : memref<2x128x64xf32, #tpu.memory_space<vmem>>, vector<1x128x32xf32>,
    %c0_30 = arith.constant 0 : index
    %c0_31 = arith.constant 0 : index
    %c32 = arith.constant 32 : index
    %68 = vector.load %arg8[%c0_30, %c0_31, %c32] : memref<2x128x64xf32, #tpu.memory_space<vmem>>, vector<1x128x32xf32>
    %69 = vector.shape_cast %68 : vector<1x128x32xf32> to vector<128x32xf32>
    %70 = vector.shape_cast %52 : vector<128x32xf32> to vector<1x128x32xf32>
    tpu.vector_store %arg8[%c0_30, %c0_31, %c32], %70 {strides = array<i32>} : memref<2x128x64xf32, #tpu.memory_space<vmem>>, vector<1x128x32xf32>,
    %c1 = arith.constant 1 : index
    %c0_32 = arith.constant 0 : index
    %c0_33 = arith.constant 0 : index
    %71 = vector.load %arg6[%c1, %c0_32, %c0_33] : memref<2x96x32xf32, #tpu.memory_space<vmem>>, vector<1x96x32xf32>
    %72 = vector.shape_cast %71 : vector<1x96x32xf32> to vector<96x32xf32>
    %c1_34 = arith.constant 1 : index
    %c0_35 = arith.constant 0 : index
    %c0_36 = arith.constant 0 : index
    %73 = vector.load %arg7[%c1_34, %c0_35, %c0_36] : memref<2x4x32xf32, #tpu.memory_space<vmem>>, vector<1x4x32xf32>
    %74 = vector.shape_cast %73 : vector<1x4x32xf32> to vector<4x32xf32>
    %75 = vector.extract_strided_slice %72 {offsets = [0, 0], sizes = [32, 32], strides = [1, 1]} : vector<96x32xf32> to vector<32x32xf32>
    %76 = vector.extract_strided_slice %72 {offsets = [32, 0], sizes = [32, 32], strides = [1, 1]} : vector<96x32xf32> to vector<32x32xf32>
    %77 = vector.extract_strided_slice %74 {offsets = [0, 0], sizes = [1, 32], strides = [1, 1]} : vector<4x32xf32> to vector<1x32xf32>
    %78 = vector.extract_strided_slice %74 {offsets = [1, 0], sizes = [1, 32], strides = [1, 1]} : vector<4x32xf32> to vector<1x32xf32>
    %79 = vector.extract_strided_slice %74 {offsets = [2, 0], sizes = [1, 32], strides = [1, 1]} : vector<4x32xf32> to vector<1x32xf32>
    %80 = vector.extract_strided_slice %23 {offsets = [0, 32], sizes = [128, 32], strides = [1, 1]} : vector<128x64xf32> to vector<128x32xf32>
    %81 = vector.broadcast %77 : vector<1x32xf32> to vector<128x32xf32>
    %82 = arith.addf %80, %81 : vector<128x32xf32>
    %cst_37 = arith.constant 2.000000e+01 : f32
    %83 = vector.broadcast %cst_37 : f32 to vector<128x32xf32>
    %84 = arith.cmpf ogt, %82, %83 : vector<128x32xf32>
    %cst_38 = arith.constant 2.000000e+01 : f32
    %85 = vector.broadcast %cst_38 : f32 to vector<128x32xf32>
    %86 = arith.minimumf %82, %85 : vector<128x32xf32>
    %87 = math.exp %86 : vector<128x32xf32>
    %88 = math.log1p %87 : vector<128x32xf32>
    %89 = arith.select %84, %82, %88 : vector<128x32xi1>, vector<128x32xf32>
    %cst_39 = arith.constant 0.693147182 : f32
    %90 = vector.broadcast %cst_39 : f32 to vector<128x32xf32>
    %91 = arith.subf %89, %90 : vector<128x32xf32>
    %cst_40 = arith.constant dense<0.000000e+00> : vector<128x32xf32>
    %92 = tpu.matmul %91, %75, %cst_40 {dimension_numbers = #tpu.dot_dimension_numbers<[1], [0], [0], [1], [0, 0, 1, 1], [], []>} : vector<128x32xf32>, vector<32x32xf32>, vector<128x32xf32> -> vector<128x32xf32>
    %93 = vector.broadcast %78 : vector<1x32xf32> to vector<128x32xf32>
    %94 = arith.addf %92, %93 : vector<128x32xf32>
    %cst_41 = arith.constant dense<0.000000e+00> : vector<128x32xf32>
    %95 = tpu.matmul %64, %76, %cst_41 {dimension_numbers = #tpu.dot_dimension_numbers<[1], [0], [0], [1], [0, 0, 1, 1], [], []>} : vector<128x32xf32>, vector<32x32xf32>, vector<128x32xf32> -> vector<128x32xf32>
    %96 = vector.broadcast %79 : vector<1x32xf32> to vector<128x32xf32>
    %97 = arith.addf %95, %96 : vector<128x32xf32>
    %c1_42 = arith.constant 1 : index
    %c0_43 = arith.constant 0 : index
    %c0_44 = arith.constant 0 : index
    %98 = vector.load %arg8[%c1_42, %c0_43, %c0_44] : memref<2x128x64xf32, #tpu.memory_space<vmem>>, vector<1x128x32xf32>
    %99 = vector.shape_cast %98 : vector<1x128x32xf32> to vector<128x32xf32>
    %100 = vector.shape_cast %94 : vector<128x32xf32> to vector<1x128x32xf32>
    tpu.vector_store %arg8[%c1_42, %c0_43, %c0_44], %100 {strides = array<i32>} : memref<2x128x64xf32, #tpu.memory_space<vmem>>, vector<1x128x32xf32>,
    %c1_45 = arith.constant 1 : index
    %c0_46 = arith.constant 0 : index
    %c32_47 = arith.constant 32 : index
    %101 = vector.load %arg8[%c1_45, %c0_46, %c32_47] : memref<2x128x64xf32, #tpu.memory_space<vmem>>, vector<1x128x32xf32>
    %102 = vector.shape_cast %101 : vector<1x128x32xf32> to vector<128x32xf32>
    %103 = vector.shape_cast %97 : vector<128x32xf32> to vector<1x128x32xf32>
    tpu.vector_store %arg8[%c1_45, %c0_46, %c32_47], %103 {strides = array<i32>} : memref<2x128x64xf32, #tpu.memory_space<vmem>>, vector<1x128x32xf32>,
    return
  }
  func.func @transform_0(%arg0: i32) -> (i32, i32) {
    %c0_i32 = arith.constant 0 : i32
    %c0_i32_0 = arith.constant 0 : i32
    return %arg0, %c0_i32 : i32, i32
  }
  func.func @transform_1(%arg0: i32) -> (i32, i32) {
    %c0_i32 = arith.constant 0 : i32
    %c0_i32_0 = arith.constant 0 : i32
    return %arg0, %c0_i32 : i32, i32
  }
  func.func @transform_2(%arg0: i32) -> (i32, i32) {
    %c0_i32 = arith.constant 0 : i32
    %c0_i32_0 = arith.constant 0 : i32
    %c0_i32_1 = arith.constant 0 : i32
    return %c0_i32, %c0_i32_0 : i32, i32
  }
  func.func @transform_3(%arg0: i32) -> (i32, i32) {
    %c0_i32 = arith.constant 0 : i32
    %c0_i32_0 = arith.constant 0 : i32
    %c0_i32_1 = arith.constant 0 : i32
    return %c0_i32, %c0_i32_0 : i32, i32
  }
  func.func @transform_4(%arg0: i32) -> (i32, i32) {
    %c0_i32 = arith.constant 0 : i32
    %c0_i32_0 = arith.constant 0 : i32
    %c0_i32_1 = arith.constant 0 : i32
    return %c0_i32, %c0_i32_0 : i32, i32
  }
  func.func @transform_5(%arg0: i32) -> (i32, i32, i32) {
    %c0_i32 = arith.constant 0 : i32
    %c0_i32_0 = arith.constant 0 : i32
    %c0_i32_1 = arith.constant 0 : i32
    %c0_i32_2 = arith.constant 0 : i32
    return %c0_i32, %c0_i32_0, %c0_i32_1 : i32, i32, i32
  }
  func.func @transform_6(%arg0: i32) -> (i32, i32, i32) {
    %c0_i32 = arith.constant 0 : i32
    %c0_i32_0 = arith.constant 0 : i32
    %c0_i32_1 = arith.constant 0 : i32
    %c0_i32_2 = arith.constant 0 : i32
    return %c0_i32, %c0_i32_0, %c0_i32_1 : i32, i32, i32
  }
  func.func @transform_7(%arg0: i32) -> (i32, i32, i32) {
    %c0_i32 = arith.constant 0 : i32
    %c0_i32_0 = arith.constant 0 : i32
    %c0_i32_1 = arith.constant 0 : i32
    return %c0_i32, %arg0, %c0_i32_0 : i32, i32, i32
  }
}

</mosaic_0001>

<bundles_post_ra>
// kernel: tpu_custom_call.1
= control target key start
LH: loop header
LB: loop body
LE: loop exit
PB: predicated region body
PF: predicated region fallthrough
CT: control target
= control target key end

     0   :  { %vm142_vm0 = vcmask 23552   ;;  %v4409_v3 = vmov 0   ;;  %vm191_vm1 = vcmask 1042432   ;;  %s4412_s27 = smov 96   ;;  %s6523_s1 = inlined_call_operand.vmem [shape: f32[128,3], index: 1, kind: input, shape index: {}]   ;;  %s6524_s0 = inlined_call_operand.vmem [shape: s32[128,1], index: 0, kind: input, shape index: {}]   ;;  %s6525_s4 = inlined_call_operand.vmem [shape: bf16[512,64], index: 4, kind: input, shape index: {}]   ;;  %s6526_s3 = inlined_call_operand.vmem [shape: f32[3,32], index: 3, kind: input, shape index: {}]   ;;  %s6527_s2 = inlined_call_operand.vmem [shape: f32[1,512], index: 2, kind: input, shape index: {}]   ;;  %s6528_s6 = inlined_call_operand.vmem [shape: f32[2,4,32], index: 6, kind: input, shape index: {}]   ;;  %s6529_s5 = inlined_call_operand.vmem [shape: f32[2,96,32], index: 5, kind: input, shape index: {}]   ;;  %s6530_s7 = inlined_call_operand.vmem [shape: f32[2,128,64], index: 7, kind: output, shape index: {}]  }
   0x1   :  { %v342_v0 = vld [vmem:[%s6523_s1 + $0x10] sm:$0xff]  ;;  %v340_v1 = vld [vmem:[%s6523_s1] sm:$0xff]  ;;  %v343_v2 = vld [vmem:[%s6523_s1 + $0x18] sm:$0xff]  ;;  %4022 = vset.pattern.permute.xlu1 %v4409_v3  ;;  %4021 = vset.pattern.permute.xlu0 %v4409_v3 }
   0x2   :  { %v358_v4 = vmul.f32 %v342_v0, %v342_v0  ;;  %v356_v5 = vmul.f32 %v340_v1, %v340_v1  ;;  %v359_v6 = vmul.f32 %v343_v2, %v343_v2  ;;  %v341_v7 = vld [vmem:[%s6523_s1 + $0x8] sm:$0xff]  ;;  %v344_v9 = vld [vmem:[%s6523_s1 + $0x20] sm:$0xff]  ;;  %v29_v18 = vld [vmem:[%s6524_s0 + $0x10] sm:$0xff] }
   0x3   :  { %v357_v8 = vmul.f32 %v341_v7, %v341_v7  ;;  %v360_v14 = vmul.f32 %v344_v9, %v344_v9  ;;  %v28_v16 = vld [vmem:[%s6524_s0 + $0x8] sm:$0xff]  ;;  %v27_v17 = vld [vmem:[%s6524_s0] sm:$0xff]  ;;  %v4023_v19 = vld [vmem:[%s6525_s4 + $0x78] sm:$0xff]  }
   0x4   :  { %v378_v10 = vsel %vm142_vm0, %v358_v4, 0.0  ;;  %v372_v11 = vsel %vm142_vm0, %v356_v5, 0.0  ;;  %v381_v12 = vsel %vm142_vm0, %v359_v6, 0.0  ;;  %v30_v20 = vld [vmem:[%s6524_s0 + $0x18] sm:$0xff]  ;;  %3595 = vmatprep.subr.bf16.mxu1 %v4023_v19  ;;  %v4025_v22 = vld [vmem:[%s6525_s4 + $0x70] sm:$0xff]   ;;  %v31_v23 = vld [vmem:[%s6524_s0 + $0x20] sm:$0xff] }
   0x5   :  { %379 = vadd.xlane.f32.xlu1 %v378_v10  ;;  %373 = vadd.xlane.f32.xlu0 %v372_v11  ;;  %v375_v13 = vsel %vm142_vm0, %v357_v8, 0.0  ;;  %v384_v15 = vsel %vm142_vm0, %v360_v14, 0.0  ;;  %v4024_v21 = vld [vmem:[%s6525_s4 + $0x38] sm:$0xff]   ;;  %v4026_v24 = vld [vmem:[%s6525_s4 + $0x30] sm:$0xff]   ;;  %v4027_v25 = vld [vmem:[%s6525_s4 + $0x68] sm:$0xff]  }
   0x6   :  { %3596 = vmatpush3.bf16.msra.mxu1 %v4024_v21  ;;  %v4028_v26 = vld [vmem:[%s6525_s4 + $0x28] sm:$0xff]   ;;  %v33_v27 = vld [vmem:[%s6524_s0 + $0x30] sm:$0xff]  ;;  %v4029_v28 = vld [vmem:[%s6525_s4 + $0x60] sm:$0xff]  }
   0x7   :  { %3597 = vmatprep.subr.bf16.mxu1 %v4025_v22  ;;  %v4030_v29 = vld [vmem:[%s6525_s4 + $0x20] sm:$0xff]   ;;  %v34_v30 = vld [vmem:[%s6524_s0 + $0x38] sm:$0xff]  ;;  %v4033_v33 = vld [vmem:[%s6525_s4 + $0x50] sm:$0xff]  }
   0x8   :  { %v4031_v31 = vld [vmem:[%s6525_s4 + $0x58] sm:$0xff]   ;;  %v35_v34 = vld [vmem:[%s6524_s0 + $0x40] sm:$0xff]  ;;  %v345_v35 = vld [vmem:[%s6523_s1 + $0x28] sm:$0xff] }
   0x9   :  { %382 = vadd.xlane.f32.xlu1 %v381_v12  ;;  %376 = vadd.xlane.f32.xlu0 %v375_v13  ;;  %v4032_v32 = vld [vmem:[%s6525_s4 + $0x18] sm:$0xff]   ;;  %v4034_v36 = vld [vmem:[%s6525_s4 + $0x10] sm:$0xff]   ;;  %v4035_v37 = vld [vmem:[%s6525_s4 + $0x48] sm:$0xff]   ;;  %v361_v40 = vmul.f32 %v345_v35, %v345_v35 }
   0xa   :  { %3598 = vmatpush3.bf16.msra.mxu1 %v4026_v24  ;;  %v141_v38 = vld [vmem:[%s6526_s3] sm:$0x7]  ;;  %v36_v39 = vld [vmem:[%s6524_s0 + $0x48] sm:$0xff]  ;;  %v37_v43 = vld [vmem:[%s6524_s0 + $0x50] sm:$0xff] }
   0xb   :  { %3599 = vmatprep.subr.bf16.mxu1 %v4027_v25  ;;  %3823 = vmatprep.subr.msk.mxu0 %vm191_vm1, %v141_v38  ;;  %v4036_v41 = vld [vmem:[%s6525_s4 + $0x8] sm:$0xff]   ;;  %v4037_v42 = vld [vmem:[%s6525_s4 + $0x40] sm:$0xff]   ;;  %v387_v44 = vsel %vm142_vm0, %v361_v40, 0.0  ;;  %v41_v47 = vld [vmem:[%s6524_s0 + $0x70] sm:$0xff] }
   0xc   :  { %3824 = vmatpush3.msk.msra.mxu0 %vm191_vm1, %v141_v38  ;;  %v4038_v45 = vld [vmem:[%s6525_s4] sm:$0xff]   ;;  %v32_v48 = vld [vmem:[%s6524_s0 + $0x28] sm:$0xff]  ;;  %v38_v49 = vld [vmem:[%s6524_s0 + $0x58] sm:$0xff] }
   0xd   :  { %385 = vadd.xlane.f32.xlu1 %v384_v15  ;;  %v39_v46 = vld [vmem:[%s6524_s0 + $0x60] sm:$0xff]  ;;  %v4039_v50 = vld [vmem:[%s6525_s4 + $0xf8] sm:$0xff]   ;;  %v40_v51 = vld [vmem:[%s6524_s0 + $0x68] sm:$0xff] }
   0xe   :  { %3600 = vmatpush3.bf16.msra.mxu1 %v4028_v26  ;;  %3659 = vmatprep.subr.bf16.mxu0 %v4039_v50  ;;  %v42_v52 = vld [vmem:[%s6524_s0 + $0x78] sm:$0xff]  ;;  %v346_v53 = vld [vmem:[%s6523_s1 + $0x30] sm:$0xff]  ;;  %v349_v55 = vld [vmem:[%s6523_s1 + $0x48] sm:$0xff] }
   0xf   :  { %3601 = vmatprep.subr.bf16.mxu1 %v4029_v28  ;;  %v362_v54 = vmul.f32 %v346_v53, %v346_v53  ;;  %v365_v57 = vmul.f32 %v349_v55, %v349_v55  ;;  %v351_v58 = vld [vmem:[%s6523_s1 + $0x58] sm:$0xff]  ;;  %v353_v61 = vld [vmem:[%s6523_s1 + $0x68] sm:$0xff]  ;;  %v348_v6 = vld [vmem:[%s6523_s1 + $0x40] sm:$0xff] }
  0x10   :  { %v367_v60 = vmul.f32 %v351_v58, %v351_v58  ;;  %v369_v63 = vmul.f32 %v353_v61, %v353_v61  ;;  %v355_v0 = vld [vmem:[%s6523_s1 + $0x78] sm:$0xff]  ;;  %v364_v8 = vmul.f32 %v348_v6, %v348_v6  ;;  %v350_v9 = vld [vmem:[%s6523_s1 + $0x50] sm:$0xff]  ;;  %v352_v12 = vld [vmem:[%s6523_s1 + $0x60] sm:$0xff] }
  0x11   :  { %v390_v56 = vsel %vm142_vm0, %v362_v54, 0.0  ;;  %v399_v59 = vsel %vm142_vm0, %v365_v57, 0.0  ;;  %v371_v2 = vmul.f32 %v355_v0, %v355_v0  ;;  %v347_v3 = vld [vmem:[%s6523_s1 + $0x38] sm:$0xff]  ;;  %v366_v11 = vmul.f32 %v350_v9, %v350_v9  ;;  %v354_v15 = vld [vmem:[%s6523_s1 + $0x70] sm:$0xff]  ;;  %v4044_v54 = vld [vmem:[%s6525_s4 + $0xa8] sm:$0xff]  }
  0x12   :  { %3602 = vmatpush3.bf16.msra.mxu1 %v4030_v29  ;;  %v405_v62 = vsel %vm142_vm0, %v367_v60, 0.0  ;;  %v411_v1 = vsel %vm142_vm0, %v369_v63, 0.0  ;;  %v363_v5 = vmul.f32 %v347_v3, %v347_v3  ;;  %v396_v10 = vsel %vm142_vm0, %v364_v8, 0.0  ;;  %v4040_v28 = vld [vmem:[%s6525_s4 + $0xb8] sm:$0xff]   ;;  %v4045_v57 = vld [vmem:[%s6525_s4 + $0xe0] sm:$0xff]  }
  0x13   :  { %3603 = vmatprep.subr.bf16.mxu1 %v4031_v31  ;;  %v417_v4 = vsel %vm142_vm0, %v371_v2, 0.0  ;;  %v402_v13 = vsel %vm142_vm0, %v366_v11, 0.0  ;;  %v368_v14 = vmul.f32 %v352_v12, %v352_v12  ;;  %v4410_v31 = vmov 0.0   ;;  %v4046_v2 = vld [vmem:[%s6525_s4 + $0xa0] sm:$0xff]   ;;  %v4048_v8 = vld [vmem:[%s6525_s4 + $0x98] sm:$0xff]  }
  0x14   :  { %v393_v7 = vsel %vm142_vm0, %v363_v5, 0.0  ;;  %v4047_v5 = vld [vmem:[%s6525_s4 + $0xd8] sm:$0xff]  }
  0x16   :  { %3604 = vmatpush3.bf16.msra.mxu1 %v4032_v32 }
  0x17   :  { %3605 = vmatprep.subr.bf16.mxu1 %v4033_v33 }
  0x1a   :  { %3606 = vmatpush3.bf16.msra.mxu1 %v4034_v36 }
  0x1b   :  { %3607 = vmatprep.subr.bf16.mxu1 %v4035_v37 }
  0x1e   :  { %49 = vperm.xlu1 %4022, %v28_v16   ;;  %3608 = vmatpush3.bf16.msra.mxu1 %v4036_v41  ;;  %v408_v16 = vsel %vm142_vm0, %v368_v14, 0.0  ;;  %v4049_v14 = vld [vmem:[%s6525_s4 + $0xd0] sm:$0xff]  }
  0x1f   :  { %46 = vperm.xlu0 %4021, %v27_v17   ;;  %3609 = vmatprep.subr.bf16.mxu1 %v4037_v42  ;;  %v370_v17 = vmul.f32 %v354_v15, %v354_v15 }
  0x22   :  { %52 = vperm.xlu1 %4022, %v29_v18   ;;  %3610 = vmatpush3.bf16.msra.mxu1 %v4038_v45  ;;  %v414_v18 = vsel %vm142_vm0, %v370_v17, 0.0  ;;  %v4666_v45 = vld [vmem:[%s6527_s2] sm:$0xf] }
  0x26   :  { %55 = vperm.xlu1 %4022, %v30_v20  }
  0x2a   :  { %58 = vperm.xlu1 %4022, %v31_v23   ;;  %v43_v23 = vlaneseq }
  0x2c   :  { %v4633_v25 = vand.u32 127, %v43_v23 }
  0x2e   :  { %64 = vperm.xlu1 %4022, %v33_v27  }
  0x32   :  { %67 = vperm.xlu1 %4022, %v34_v30   ;;  %v4640_v30 = vshrl.u32 %v43_v23, 7 }
  0x34   :  { %6540 = vst [vmem:[#allocation2_spill] sm:$0xff] %v4640_v30  ;;  %v4656_v41 = vsub.s32 0, %v4640_v30 }
  0x36   :  { %70 = vperm.xlu1 %4022, %v35_v34   ;;  %v4041_v34 = vld [vmem:[%s6525_s4 + $0xf0] sm:$0xff]   ;;  %6541 = vst [vmem:[#allocation3_spill] sm:$0xff] %v4656_v41  ;;  %v4688_v55 = vrot.slane %v4666_v45, %v4656_v41 }
  0x3a   :  { %73 = vperm.xlu1 %4022, %v36_v39   ;;  %v4042_v39 = vld [vmem:[%s6525_s4 + $0xb0] sm:$0xff]  }
  0x3e   :  { %76 = vperm.xlu1 %4022, %v37_v43   ;;  %388 = vadd.xlane.f32.xlu0 %v387_v44  ;;  %v4043_v43 = vld [vmem:[%s6525_s4 + $0xe8] sm:$0xff]  }
  0x42   :  { %82 = vperm.xlu1 %4022, %v39_v46   ;;  %v4669_v46 = vsub.s32 1, %v4640_v30 }
  0x44   :  { %6542 = vst [vmem:[#allocation4_spill] sm:$0xff] %v4669_v46  ;;  %v4707_v0 = vrot.slane %v4666_v45, %v4669_v46 }
  0x46   :  { %88 = vperm.xlu1 %4022, %v41_v47  }
  0x54   :  { %61 = vperm.xlu0 %4021, %v32_v48  }
  0x58   :  { %79 = vperm.xlu0 %4021, %v38_v49  }
  0x5c   :  { %85 = vperm.xlu0 %4021, %v40_v51  }
  0x60   :  { %91 = vperm.xlu0 %4021, %v42_v52  }
  0x6a   :  { %391 = vadd.xlane.f32.xlu1 %v390_v56 }
  0x6e   :  { %400 = vadd.xlane.f32.xlu1 %v399_v59 }
  0x72   :  { %406 = vadd.xlane.f32.xlu1 %v405_v62 }
  0x76   :  { %412 = vadd.xlane.f32.xlu1 %v411_v1 }
  0x7a   :  { %418 = vadd.xlane.f32.xlu1 %v417_v4 }
  0x7f   :  { %394 = vadd.xlane.f32.xlu0 %v393_v7 }
  0x83   :  { %397 = vadd.xlane.f32.xlu0 %v396_v10 }
  0x87   :  { %403 = vadd.xlane.f32.xlu0 %v402_v13 }
  0x8b   :  { %409 = vadd.xlane.f32.xlu0 %v408_v16 }
  0x8e   :  { %v4619_v19 = vpop.xlane.xlu1 %379  ;;  %v4621_v20 = vpop.xlane.xlu0 %373 }
  0x8f   :  { %4055 = vrsqrt.f32 %v4619_v19  ;;  %415 = vadd.xlane.f32.xlu0 %v414_v18  ;;  %vm436_vm5 = vcmp.eq.f32.partialorder %v4619_v19, inf  ;;  %v439_v47 = vand.u32 2147483648, %v4619_v19  ;;  %vm422_vm6 = vcmp.eq.f32.partialorder %v4621_v20, inf }
  0x90   :  { %4057 = vrsqrt.f32 %v4621_v20  ;;  %vm438_vm8 = vcmp.eq.f32.partialorder %v4619_v19, 0.0  ;;  %v425_v53 = vand.u32 2147483648, %v4621_v20  ;;  %vm424_vm10 = vcmp.eq.f32.partialorder %v4621_v20, 0.0 }
  0x92   :  { %v4625_v21 = vpop.xlane.xlu1 %382  ;;  %v4627_v22 = vpop.xlane.xlu0 %376 }
  0x93   :  { %4059 = vrsqrt.f32 %v4625_v21  ;;  %vm443_vm7 = vcmp.eq.f32.partialorder %v4625_v21, inf  ;;  %v446_v50 = vand.u32 2147483648, %v4625_v21  ;;  %vm445_vm9 = vcmp.eq.f32.partialorder %v4625_v21, 0.0 }
  0x94   :  { %4061 = vrsqrt.f32 %v4627_v22  ;;  %vm429_vm11 = vcmp.eq.f32.partialorder %v4627_v22, inf  ;;  %v432_v60 = vand.u32 2147483648, %v4627_v22  ;;  %vm431_vm12 = vcmp.eq.f32.partialorder %v4627_v22, 0.0 }
  0x96   :  { %v4631_v24 = vpop.xlane.xlu1 %385 }
  0x97   :  { %4063 = vrsqrt.f32 %v4631_v24  ;;  %vm450_vm15 = vcmp.eq.f32.partialorder %v4631_v24, inf  ;;  %vm452_vm1 = vcmp.eq.f32.partialorder %v4631_v24, 0.0 }
  0x9a   :  { %v50_v26 = vpop.permute.xlu1 %49  ;;  %v47_v27 = vpop.permute.xlu0 %46 }
  0x9b   :  { %vm94_vm2 = vcmp.eq.s32.totalorder %v4633_v25, %v50_v26  ;;  %vm93_vm3 = vcmp.eq.s32.totalorder %v4633_v25, %v47_v27  ;;  %v4051_v27 = vld [vmem:[%s6525_s4 + $0xc8] sm:$0xff]  }
  0x9c   :  { %v4056_v29 = vpop.eup %4055  ;;  %v3345_v32 = vsel %vm94_vm2, 1.0, %v4410_v31  ;;  %v3344_v33 = vsel %vm93_vm3, 1.0, %v4410_v31 }
  0x9d   :  { %v4058_v35 = vpop.eup %4057  ;;  %3825 = vmatprep.mubr.msk.f32.mxu0 %vm142_vm0, %v3344_v33  ;;  %v435_v38 = vmul.f32 %v4056_v29, %v4619_v19 }
  0x9e   :  { %v421_v36 = vmul.f32 %v4058_v35, %v4621_v20  ;;  %v53_v37 = vpop.permute.xlu1 %52  ;;  %3826 = vmatmul.mubr.msk.f32.vlgmr.msra.gmra.mxu0 %vm142_vm0, %v3345_v32 }
  0x9f   :  { %vm95_vm4 = vcmp.eq.s32.totalorder %v4633_v25, %v53_v37  ;;  %3660 = vmatpush3.bf16.msra.mxu0 %v4040_v28  ;;  %v437_v52 = vsel %vm436_vm5, %v4619_v19, %v435_v38 }
  0xa0   :  { %v4060_v40 = vpop.eup %4059  ;;  %v3346_v42 = vsel %vm95_vm4, 1.0, %v4410_v31  ;;  %3661 = vmatprep.subr.bf16.mxu0 %v4041_v34  ;;  %v423_v48 = vsel %vm422_vm6, %v4621_v20, %v421_v36  ;;  %v4700_v61 = vsel %vm438_vm8, %v439_v47, %v437_v52  ;;  %v4050_v20 = vld [vmem:[%s6525_s4 + $0x90] sm:$0xff]  }
  0xa1   :  { %v4062_v44 = vpop.eup %4061  ;;  %3828 = vmatprep.mubr.msk.f32.mxu0 %vm142_vm0, %v3346_v42  ;;  %v442_v49 = vmul.f32 %v4060_v40, %v4625_v21  ;;  %v4696_v58 = vsel %vm424_vm10, %v425_v53, %v423_v48  ;;  %v563_v6 = vsub.f32 %v4700_v61, %v4707_v0  ;;  %v562_v9 = vsub.f32 %v4700_v61, %v4688_v55 }
  0xa2   :  { %v428_v51 = vmul.f32 %v4062_v44, %v4627_v22  ;;  %v56_v63 = vpop.permute.xlu1 %55  ;;  %v554_v3 = vsub.f32 %v4696_v58, %v4688_v55  ;;  %v555_v19 = vsub.f32 %v4696_v58, %v4707_v0 }
  0xa3   :  { %3662 = vmatpush3.bf16.msra.mxu0 %v4042_v39  ;;  %v444_v56 = vsel %vm443_vm7, %v4625_v21, %v442_v49  ;;  %vm96_vm13 = vcmp.eq.s32.totalorder %v4633_v25, %v56_v63  ;;  %v627_v15 = vmul.f32 -9.9803915, %v563_v6  ;;  %v626_v21 = vmul.f32 -9.9803915, %v562_v9  ;;  %v4052_v39 = vld [vmem:[%s6525_s4 + $0x88] sm:$0xff]  }
  0xa4   :  { %3663 = vmatprep.subr.bf16.mxu0 %v4043_v43  ;;  %v430_v59 = vsel %vm429_vm11, %v4627_v22, %v428_v51  ;;  %v4702_v62 = vsel %vm445_vm9, %v446_v50, %v444_v56  ;;  %v618_v10 = vmul.f32 -9.9803915, %v554_v3  ;;  %v3347_v12 = vsel %vm96_vm13, 1.0, %v4410_v31  ;;  %v4053_v43 = vld [vmem:[%s6525_s4 + $0xc0] sm:$0xff]   ;;  %v4064_v56 = vpop.eup %4063 }
  0xa5   :  { %v4709_v1 = vsel %vm431_vm12, %v432_v60, %v430_v59  ;;  %v567_v7 = vsub.f32 %v4702_v62, %v4707_v0  ;;  %v566_v16 = vsub.f32 %v4702_v62, %v4688_v55  ;;  %3829 = vmatmul.mubr.msk.f32.gmra.mxu0 %vm142_vm0, %v3347_v12  ;;  %v619_v29 = vmul.f32 -9.9803915, %v555_v19  ;;  %v4054_v50 = vld [vmem:[%s6525_s4 + $0x80] sm:$0xff]   ;;  %s4411_s4 = smov 32  }
  0xa6   :  { %v558_v4 = vsub.f32 %v4709_v1, %v4688_v55  ;;  %v59_v13 = vpop.permute.xlu1 %58  ;;  %v559_v22 = vsub.f32 %v4709_v1, %v4707_v0  ;;  %v682_v23 = vmul.f32 %v618_v10, %v554_v3  ;;  %v691_v32 = vmul.f32 %v627_v15, %v563_v6 }
  0xa7   :  { %3664 = vmatpush3.bf16.msra.mxu0 %v4044_v54  ;;  %v631_v17 = vmul.f32 -9.9803915, %v567_v7  ;;  %vm97_vm14 = vcmp.eq.s32.totalorder %v4633_v25, %v59_v13  ;;  %v630_v28 = vmul.f32 -9.9803915, %v566_v16  ;;  %v683_v37 = vmul.f32 %v619_v29, %v555_v19 }
  0xa8   :  { %3665 = vmatprep.subr.bf16.mxu0 %v4045_v57  ;;  %v622_v11 = vmul.f32 -9.9803915, %v558_v4  ;;  %v3348_v18 = vsel %vm97_vm14, 1.0, %v4410_v31  ;;  %v623_v34 = vmul.f32 -9.9803915, %v559_v22  ;;  %v690_v42 = vmul.f32 %v626_v21, %v562_v9 }
  0xa9   :  { %3831 = vmatprep.mubr.msk.f32.mxu0 %vm142_vm0, %v3348_v18  ;;  %v695_v33 = vmul.f32 %v631_v17, %v567_v7  ;;  %v746_v35 = vmul.f32 1.442695, %v682_v23  ;;  %v764_v38 = vmul.f32 1.442695, %v691_v32  ;;  %v748_v44 = vmul.f32 1.442695, %v683_v37 }
  0xaa   :  { %v686_v26 = vmul.f32 %v622_v11, %v558_v4  ;;  %v687_v40 = vmul.f32 %v623_v34, %v559_v22  ;;  %v694_v48 = vmul.f32 %v630_v28, %v566_v16  ;;  %v4761_v51 = vpop.permute.xlu1 %64  ;;  %v762_v52 = vmul.f32 1.442695, %v690_v42  ;;  %v3497_v57 = vld [vmem:[%s6528_s6 + $0x4] sm:$0xf] }
  0xab   :  { %3666 = vmatpush3.bf16.msra.mxu0 %v4046_v2  ;;  %4065 = vpow2.f32 %v746_v35  ;;  %v772_v47 = vmul.f32 1.442695, %v695_v33  ;;  %v4764_v54 = vsub.s32 2, %v4640_v30  ;;  %v6531_v63 = vsub.s32 3, %v4640_v30 }
  0xac   :  { %3667 = vmatprep.subr.bf16.mxu0 %v4047_v5  ;;  %v754_v36 = vmul.f32 1.442695, %v686_v26  ;;  %v756_v49 = vmul.f32 1.442695, %v687_v40  ;;  %v770_v53 = vmul.f32 1.442695, %v694_v48  ;;  %v449_v2 = vmul.f32 %v4064_v56, %v4631_v24 }
  0xad   :  { %6543 = vst [vmem:[#allocation5_spill] sm:$0xff] %v4764_v54  ;;  %v4771_v59 = vrot.slane %v4666_v45, %v4764_v54  ;;  %v2556_v3 = vrot.slane %v3497_v57, %v4656_v41  ;;  %v453_v10 = vand.u32 2147483648, %v4631_v24  ;;  %vm99_vm2 = vcmp.eq.s32.totalorder %v4633_v25, %v4761_v51 }
  0xae   :  { %4067 = vpow2.f32 %v754_v36  ;;  %v4773_v60 = vpop.permute.xlu1 %67  ;;  %v451_v12 = vsel %vm450_vm15, %v4631_v24, %v449_v2 }
  0xaf   :  { %3668 = vmatpush3.bf16.msra.mxu0 %v4048_v8  ;;  %4069 = vpow2.f32 %v764_v38  ;;  %v556_v6 = vsub.f32 %v4696_v58, %v4771_v59  ;;  %2558 = vrot.lane.b32.xlu0 %v2556_v3, %s4411_s4  ;;  %v4785_v8 = vrot.slane %v4666_v45, %v6531_v63  ;;  %v560_v9 = vsub.f32 %v4709_v1, %v4771_v59 }
  0xb0   :  { %3669 = vmatprep.subr.bf16.mxu0 %v4049_v14  ;;  %4071 = vpow2.f32 %v748_v44  ;;  %v454_v21 = vsel %vm452_vm1, %v453_v10, %v451_v12  ;;  %v564_v24 = vsub.f32 %v4700_v61, %v4771_v59  ;;  %vm100_vm3 = vcmp.eq.s32.totalorder %v4633_v25, %v4773_v60 }
  0xb1   :  { %4073 = vpow2.f32 %v756_v49  ;;  %v561_v15 = vsub.f32 %v4709_v1, %v4785_v8  ;;  %v620_v45 = vmul.f32 -9.9803915, %v556_v6  ;;  %v557_v19 = vsub.f32 %v4696_v58, %v4785_v8 }
  0xb2   :  { %4075 = vpow2.f32 %v772_v47  ;;  %v4792_v13 = vpop.permute.xlu1 %70  ;;  %v565_v26 = vsub.f32 %v4700_v61, %v4785_v8  ;;  %v569_v58 = vsub.f32 %v4702_v62, %v4785_v8  ;;  %v571_v33 = vsub.f32 %v454_v21, %v4707_v0 }
  0xb3   :  { %3670 = vmatpush3.bf16.msra.mxu0 %v4050_v20  ;;  %4077 = vpow2.f32 %v762_v52  ;;  %v624_v20 = vmul.f32 -9.9803915, %v560_v9  ;;  %v625_v28 = vmul.f32 -9.9803915, %v561_v15  ;;  %v684_v32 = vmul.f32 %v620_v45, %v556_v6 }
  0xb4   :  { %3671 = vmatprep.subr.bf16.mxu0 %v4051_v27  ;;  %4079 = vpow2.f32 %v770_v53  ;;  %v568_v27 = vsub.f32 %v4702_v62, %v4771_v59  ;;  %v621_v35 = vmul.f32 -9.9803915, %v557_v19  ;;  %v570_v36 = vsub.f32 %v454_v21, %v4688_v55 }
  0xb5   :  { %v688_v61 = vmul.f32 %v624_v20, %v560_v9  ;;  %v628_v37 = vmul.f32 -9.9803915, %v564_v24  ;;  %v629_v38 = vmul.f32 -9.9803915, %v565_v26  ;;  %v633_v40 = vmul.f32 -9.9803915, %v569_v58 }
  0xb6   :  { %v74_v34 = vpop.permute.xlu1 %73  ;;  %v750_v44 = vmul.f32 1.442695, %v684_v32  ;;  %v4812_v62 = vsub.f32 %v454_v21, %v4771_v59  ;;  %v573_v47 = vsub.f32 %v454_v21, %v4785_v8  ;;  %v635_v48 = vmul.f32 -9.9803915, %v571_v33 }
  0xb7   :  { %3672 = vmatpush3.bf16.msra.mxu0 %v4052_v39  ;;  %v632_v39 = vmul.f32 -9.9803915, %v568_v27  ;;  %v758_v49 = vmul.f32 1.442695, %v688_v61  ;;  %v685_v53 = vmul.f32 %v621_v35, %v557_v19  ;;  %vm101_vm4 = vcmp.eq.s32.totalorder %v4633_v25, %v4792_v13 }
  0xb8   :  { %3673 = vmatprep.subr.bf16.mxu0 %v4053_v43  ;;  %v4066_v4 = vpop.eup %4065  ;;  %v689_v43 = vmul.f32 %v625_v28, %v561_v15  ;;  %v693_v57 = vmul.f32 %v629_v38, %v565_v26  ;;  %vm102_vm6 = vcmp.eq.s32.totalorder %v4633_v25, %v74_v34  ;;  %v4825_v51 = vmul.f32 -9.9803915, %v4812_v62 }
  0xb9   :  { %v699_v6 = vmul.f32 %v635_v48, %v571_v33  ;;  %v637_v9 = vmul.f32 -9.9803915, %v573_v47  ;;  %v3351_v10 = vsel %vm100_vm3, 1.0, %v4410_v31  ;;  %v752_v12 = vmul.f32 1.442695, %v685_v53 }
  0xba   :  { %v77_v56 = vpop.permute.xlu1 %76  ;;  %v760_v3 = vmul.f32 1.442695, %v689_v43  ;;  %v3353_v15 = vsel %vm102_vm6, 1.0, %v4410_v31  ;;  %v696_v45 = vmul.f32 %v632_v39, %v568_v27 }
  0xbb   :  { %3674 = vmatpush3.bf16.msra.mxu0 %v4054_v50  ;;  %v4068_v5 = vpop.eup %4067  ;;  %v634_v50 = vmul.f32 -9.9803915, %v570_v36  ;;  %vm103_vm7 = vcmp.eq.s32.totalorder %v4633_v25, %v77_v56  ;;  %v780_v20 = vmul.f32 1.442695, %v699_v6 }
  0xbc   :  { %v4070_v7 = vpop.eup %4069  ;;  %v874_v16 = vpack.c.bf16 %v4068_v5, %v4066_v4  ;;  %v697_v4 = vmul.f32 %v633_v40, %v569_v58  ;;  %v3350_v5 = vsel %vm99_vm2, 1.0, %v4410_v31  ;;  %v3354_v26 = vsel %vm103_vm7, 1.0, %v4410_v31 }
  0xbd   :  { %v4072_v11 = vpop.eup %4071  ;;  %v698_v13 = vmul.f32 %v634_v50, %v570_v36 }
  0xbe   :  { %v4074_v14 = vpop.eup %4073  ;;  %v776_v60 = vmul.f32 1.442695, %v697_v4 }
  0xbf   :  { %v4076_v17 = vpop.eup %4075  ;;  %v875_v18 = vpack.c.bf16 %v4074_v14, %v4072_v11  ;;  %v3352_v14 = vsel %vm101_vm4, 1.0, %v4410_v31  ;;  %v778_v34 = vmul.f32 1.442695, %v698_v13 }
  0xc0   :  { %v879_v22 = vpack.c.bf16 %v4076_v17, %v4070_v7  ;;  %v4078_v1 = vpop.eup %4077  ;;  %v692_v7 = vmul.f32 %v628_v37, %v564_v24  ;;  %v701_v24 = vmul.f32 %v637_v9, %v573_v47 }
  0xc1   :  { %1194 = vmatprep.mubr.bf16.mxu1 %v875_v18  ;;  %v4080_v29 = vpop.eup %4079  ;;  %v83_v18 = vpop.permute.xlu1 %82 }
  0xc2   :  { %1195 = vmatmul.mubr.bf16.vlgmr.msra.gmra.mxu1 %v874_v16  ;;  %v878_v42 = vpack.c.bf16 %v4080_v29, %v4078_v1  ;;  %v768_v16 = vmul.f32 1.442695, %v693_v57  ;;  %v766_v21 = vmul.f32 1.442695, %v692_v7  ;;  %vm105_vm10 = vcmp.eq.s32.totalorder %v4633_v25, %v83_v18 }
  0xc3   :  { %1202 = vmatprep.mubr.bf16.mxu1 %v879_v22  ;;  %v784_v35 = vmul.f32 1.442695, %v701_v24  ;;  %v3356_v39 = vsel %vm105_vm10, 1.0, %v4410_v31 }
  0xc5   :  { %v89_v61 = vpop.permute.xlu1 %88 }
  0xc6   :  { %vm107_vm13 = vcmp.eq.s32.totalorder %v4633_v25, %v89_v61 }
  0xc7   :  { %v4798_v23 = vpop.xlane.xlu0 %388  ;;  %v3358_v4 = vsel %vm107_vm13, 1.0, %v4410_v31 }
  0xc8   :  { %4081 = vrsqrt.f32 %v4798_v23  ;;  %vm457_vm8 = vcmp.eq.f32.partialorder %v4798_v23, inf  ;;  %v460_v22 = vand.u32 2147483648, %v4798_v23  ;;  %vm459_vm9 = vcmp.eq.f32.partialorder %v4798_v23, 0.0 }
  0xc9   :  { %4083 = vpow2.f32 %v750_v44 }
  0xca   :  { %1203 = vmatmul.mubr.bf16.gmra.mxu1 %v878_v42  ;;  %4085 = vpow2.f32 %v758_v49 }
  0xcb   :  { %4087 = vpow2.f32 %v760_v3 }
  0xcc   :  { %4089 = vpow2.f32 %v752_v12 }
  0xcd   :  { %4091 = vpow2.f32 %v768_v16 }
  0xce   :  { %4093 = vpow2.f32 %v776_v60 }
  0xcf   :  { %v62_v52 = vpop.permute.xlu0 %61  ;;  %4095 = vpow2.f32 %v780_v20 }
  0xd0   :  { %vm98_vm5 = vcmp.eq.s32.totalorder %v4633_v25, %v62_v52  ;;  %4097 = vpow2.f32 %v766_v21 }
  0xd1   :  { %v3349_v2 = vsel %vm98_vm5, 1.0, %v4410_v31 }
  0xd2   :  { %3832 = vmatmul.mubr.msk.f32.gmra.mxu0 %vm142_vm0, %v3349_v2 }
  0xd3   :  { %3834 = vmatprep.mubr.msk.f32.mxu0 %vm142_vm0, %v3350_v5  ;;  %v80_v11 = vpop.permute.xlu0 %79  ;;  %v700_v5 = vmul.f32 %v4825_v51, %v4812_v62 }
  0xd4   :  { %vm104_vm11 = vcmp.eq.s32.totalorder %v4633_v25, %v80_v11 }
  0xd5   :  { %v4082_v17 = vpop.eup %4081  ;;  %v3355_v42 = vsel %vm104_vm11, 1.0, %v4410_v31 }
  0xd6   :  { %v456_v19 = vmul.f32 %v4082_v17, %v4798_v23  ;;  %3835 = vmatmul.mubr.msk.f32.gmra.mxu0 %vm142_vm0, %v3351_v10  ;;  %v4084_v49 = vpop.eup %4083 }
  0xd7   :  { %3837 = vmatprep.mubr.msk.f32.mxu0 %vm142_vm0, %v3352_v14  ;;  %v86_v58 = vpop.permute.xlu0 %85  ;;  %v4086_v56 = vpop.eup %4085 }
  0xd8   :  { %v458_v1 = vsel %vm457_vm8, %v4798_v23, %v456_v19  ;;  %v774_v23 = vmul.f32 1.442695, %v696_v45  ;;  %vm106_vm12 = vcmp.eq.s32.totalorder %v4633_v25, %v86_v58  ;;  %v4088_v3 = vpop.eup %4087  ;;  %v876_v14 = vpack.c.bf16 %v4086_v56, %v4084_v49 }
  0xd9   :  { %v461_v27 = vsel %vm459_vm9, %v460_v22, %v458_v1  ;;  %v3357_v57 = vsel %vm106_vm12, 1.0, %v4410_v31  ;;  %v4090_v6 = vpop.eup %4089 }
  0xda   :  { %v574_v28 = vsub.f32 %v461_v27, %v4688_v55  ;;  %v575_v29 = vsub.f32 %v461_v27, %v4707_v0  ;;  %v576_v32 = vsub.f32 %v461_v27, %v4771_v59  ;;  %v577_v33 = vsub.f32 %v461_v27, %v4785_v8  ;;  %3838 = vmatmul.mubr.msk.f32.gmra.mxu0 %vm142_vm0, %v3353_v15  ;;  %v4092_v9 = vpop.eup %4091 }
  0xdb   :  { %3840 = vmatprep.mubr.msk.f32.mxu0 %vm142_vm0, %v3354_v26  ;;  %v92_v47 = vpop.permute.xlu0 %91  ;;  %4099 = vpow2.f32 %v774_v23  ;;  %v877_v11 = vpack.c.bf16 %v4088_v3, %v4090_v6  ;;  %v4094_v12 = vpop.eup %4093 }
  0xdc   :  { %v638_v36 = vmul.f32 -9.9803915, %v574_v28  ;;  %v639_v37 = vmul.f32 -9.9803915, %v575_v29  ;;  %v640_v38 = vmul.f32 -9.9803915, %v576_v32  ;;  %4101 = vpow2.f32 %v778_v34  ;;  %v4096_v16 = vpop.eup %4095 }
  0xdd   :  { %v641_v40 = vmul.f32 -9.9803915, %v577_v33  ;;  %4103 = vpow2.f32 %v784_v35  ;;  %vm108_vm14 = vcmp.eq.s32.totalorder %v4633_v25, %v92_v47  ;;  %v782_v25 = vmul.f32 1.442695, %v700_v5  ;;  %v4098_v62 = vpop.eup %4097 }
  0xde   :  { %3841 = vmatmul.mubr.msk.f32.gmra.mxu0 %vm142_vm0, %v3355_v42  ;;  %v703_v43 = vmul.f32 %v639_v37, %v575_v29  ;;  %v702_v44 = vmul.f32 %v638_v36, %v574_v28  ;;  %v704_v53 = vmul.f32 %v640_v38, %v576_v32  ;;  %v3359_v10 = vsel %vm108_vm14, 1.0, %v4410_v31 }
  0xdf   :  { %3843 = vmatprep.mubr.msk.f32.mxu0 %vm142_vm0, %v3356_v39  ;;  %v705_v48 = vmul.f32 %v641_v40, %v577_v33  ;;  %v881_v15 = vpack.c.bf16 %v4094_v12, %v4092_v9 }
  0xe0   :  { %v788_v50 = vmul.f32 1.442695, %v703_v43  ;;  %v786_v52 = vmul.f32 1.442695, %v702_v44  ;;  %v790_v7 = vmul.f32 1.442695, %v704_v53 }
  0xe1   :  { %v792_v2 = vmul.f32 1.442695, %v705_v48 }
  0xe2   :  { %3844 = vmatmul.mubr.msk.f32.gmra.mxu0 %vm142_vm0, %v3357_v57  ;;  %4105 = vpow2.f32 %v788_v50 }
  0xe3   :  { %3846 = vmatprep.mubr.msk.f32.mxu0 %vm142_vm0, %v3358_v4  ;;  %4107 = vpow2.f32 %v786_v52 }
  0xe4   :  { %4109 = vpow2.f32 %v792_v2 }
  0xe5   :  { %4111 = vpow2.f32 %v790_v7 }
  0xe6   :  { %3847 = vmatmul.mubr.msk.f32.gmra.mxu0 %vm142_vm0, %v3359_v10  ;;  %4113 = vpow2.f32 %v782_v25 }
  0xe7   :  { %1291 = vmatprep.mubr.bf16.mxu0 %v877_v11 }
  0xe8   :  { %v4100_v51 = vpop.eup %4099 }
  0xe9   :  { %v4102_v17 = vpop.eup %4101  ;;  %v880_v19 = vpack.c.bf16 %v4100_v51, %v4098_v62 }
  0xea   :  { %1292 = vmatmul.mubr.bf16.vlgmr.msra.gmra.mxu0 %v876_v14  ;;  %v4104_v60 = vpop.eup %4103 }
  0xeb   :  { %1299 = vmatprep.mubr.bf16.mxu0 %v881_v15 }
  0xef   :  { %v4106_v45 = vpop.eup %4105 }
  0xf0   :  { %v4108_v18 = vpop.eup %4107  ;;  %v883_v31 = vpack.c.bf16 %v4106_v45, %v4096_v16 }
  0xf1   :  { %v4110_v20 = vpop.eup %4109  ;;  %v882_v21 = vpack.c.bf16 %v4108_v18, %v4102_v17 }
  0xf2   :  { %1210 = vmatprep.mubr.bf16.mxu1 %v883_v31  ;;  %1300 = vmatmul.mubr.bf16.gmra.mxu0 %v880_v19  ;;  %v885_v13 = vpack.c.bf16 %v4110_v20, %v4104_v60  ;;  %v4112_v24 = vpop.eup %4111 }
  0xf3   :  { %1211 = vmatmul.mubr.bf16.gmra.mxu1 %v882_v21  ;;  %v392_v22 = vpop.xlane.xlu1 %391  ;;  %v4114_v26 = vpop.eup %4113 }
  0xf4   :  { %1307 = vmatprep.mubr.bf16.mxu0 %v885_v13  ;;  %4115 = vrsqrt.f32 %v392_v22  ;;  %v884_v27 = vpack.c.bf16 %v4112_v24, %v4114_v26  ;;  %vm464_vm0 = vcmp.eq.f32.partialorder %v392_v22, inf  ;;  %v467_v32 = vand.u32 2147483648, %v392_v22 }
  0xf5   :  { %vm466_vm15 = vcmp.eq.f32.partialorder %v392_v22, 0.0 }
  0xf7   :  { %v401_v1 = vpop.xlane.xlu1 %400 }
  0xf8   :  { %4117 = vrsqrt.f32 %v401_v1  ;;  %vm485_vm1 = vcmp.eq.f32.partialorder %v401_v1, inf  ;;  %v488_v39 = vand.u32 2147483648, %v401_v1  ;;  %vm487_vm2 = vcmp.eq.f32.partialorder %v401_v1, 0.0 }
  0xfa   :  { %1308 = vmatmul.mubr.bf16.gmra.mxu0 %v884_v27 }
  0xfb   :  { %v407_v58 = vpop.xlane.xlu1 %406 }
  0xfc   :  { %4119 = vrsqrt.f32 %v407_v58  ;;  %vm499_vm3 = vcmp.eq.f32.partialorder %v407_v58, inf  ;;  %vm501_vm4 = vcmp.eq.f32.partialorder %v407_v58, 0.0  ;;  %v502_v49 = vand.u32 2147483648, %v407_v58 }
  0xff   :  { %v4879_v28 = vpop.xlane.xlu1 %412 }
 0x100   :  { %4121 = vrsqrt.f32 %v4879_v28  ;;  %vm513_vm5 = vcmp.eq.f32.partialorder %v4879_v28, inf  ;;  %vm515_vm6 = vcmp.eq.f32.partialorder %v4879_v28, 0.0  ;;  %v516_v56 = vand.u32 2147483648, %v4879_v28 }
 0x101   :  { %v4116_v29 = vpop.eup %4115 }
 0x102   :  { %v463_v33 = vmul.f32 %v4116_v29, %v392_v22 }
 0x103   :  { %v4882_v23 = vpop.xlane.xlu1 %418 }
 0x104   :  { %v465_v34 = vsel %vm464_vm0, %v392_v22, %v463_v33  ;;  %4123 = vrsqrt.f32 %v4882_v23  ;;  %vm527_vm7 = vcmp.eq.f32.partialorder %v4882_v23, inf  ;;  %vm529_vm8 = vcmp.eq.f32.partialorder %v4882_v23, 0.0 }
 0x105   :  { %v4118_v35 = vpop.eup %4117  ;;  %v468_v61 = vsel %vm466_vm15, %v467_v32, %v465_v34  ;;  %v530_v6 = vand.u32 2147483648, %v4882_v23 }
 0x106   :  { %v484_v36 = vmul.f32 %v4118_v35, %v401_v1  ;;  %v579_v37 = vsub.f32 %v468_v61, %v4707_v0  ;;  %v581_v42 = vsub.f32 %v468_v61, %v4785_v8  ;;  %v578_v43 = vsub.f32 %v468_v61, %v4688_v55 }
 0x107   :  { %v580_v44 = vsub.f32 %v468_v61, %v4771_v59 }
 0x108   :  { %v4886_v38 = vpop.xlane.xlu0 %394  ;;  %v486_v47 = vsel %vm485_vm1, %v401_v1, %v484_v36  ;;  %v643_v50 = vmul.f32 -9.9803915, %v579_v37  ;;  %v645_v2 = vmul.f32 -9.9803915, %v581_v42  ;;  %v642_v3 = vmul.f32 -9.9803915, %v578_v43 }
 0x109   :  { %v4120_v40 = vpop.eup %4119  ;;  %4125 = vrsqrt.f32 %v4886_v38  ;;  %v489_v52 = vsel %vm487_vm2, %v488_v39, %v486_v47  ;;  %v644_v4 = vmul.f32 -9.9803915, %v580_v44  ;;  %vm471_vm9 = vcmp.eq.f32.partialorder %v4886_v38, inf }
 0x10a   :  { %v498_v48 = vmul.f32 %v4120_v40, %v407_v58  ;;  %vm473_vm10 = vcmp.eq.f32.partialorder %v4886_v38, 0.0  ;;  %v4905_v7 = vsub.f32 %v489_v52, %v4688_v55  ;;  %v474_v10 = vand.u32 2147483648, %v4886_v38 }
 0x10b   :  { %v4910_v11 = vsub.f32 %v489_v52, %v4707_v0  ;;  %v707_v14 = vmul.f32 %v643_v50, %v579_v37  ;;  %v4916_v16 = vsub.f32 %v489_v52, %v4771_v59  ;;  %v4919_v62 = vsub.f32 %v489_v52, %v4785_v8 }
 0x10c   :  { %v4893_v53 = vpop.xlane.xlu0 %397  ;;  %v500_v5 = vsel %vm499_vm3, %v407_v58, %v498_v48  ;;  %v709_v51 = vmul.f32 %v645_v2, %v581_v42  ;;  %v4926_v45 = vmul.f32 %v642_v3, %v578_v43  ;;  %v4928_v18 = vmul.f32 %v644_v4, %v580_v44 }
 0x10d   :  { %v4122_v57 = vpop.eup %4121  ;;  %4127 = vrsqrt.f32 %v4893_v53  ;;  %v503_v12 = vsel %vm501_vm4, %v502_v49, %v500_v5  ;;  %v481_v17 = vand.u32 2147483648, %v4893_v53  ;;  %v4931_v31 = vmul.f32 -9.9803915, %v4905_v7 }
 0x10e   :  { %v512_v9 = vmul.f32 %v4122_v57, %v4879_v28  ;;  %vm478_vm11 = vcmp.eq.f32.partialorder %v4893_v53, inf  ;;  %v4935_v19 = vsub.f32 %v503_v12, %v4688_v55  ;;  %v4941_v13 = vmul.f32 -9.9803915, %v4910_v11 }
 0x10f   :  { %vm480_vm12 = vcmp.eq.f32.partialorder %v4893_v53, 0.0  ;;  %v4945_v22 = vsub.f32 %v503_v12, %v4707_v0  ;;  %v4948_v24 = vsub.f32 %v503_v12, %v4771_v59  ;;  %v4951_v26 = vsub.f32 %v503_v12, %v4785_v8 }
 0x110   :  { %v4913_v25 = vpop.xlane.xlu0 %403  ;;  %v514_v60 = vsel %vm513_vm5, %v4879_v28, %v512_v9  ;;  %v4956_v27 = vmul.f32 -9.9803915, %v4916_v16  ;;  %v4959_v58 = vmul.f32 -9.9803915, %v4919_v62  ;;  %v796_v28 = vmul.f32 1.442695, %v707_v14 }
 0x111   :  { %v4124_v15 = vpop.eup %4123  ;;  %4129 = vrsqrt.f32 %v4913_v25  ;;  %v517_v20 = vsel %vm515_vm6, %v516_v56, %v514_v60  ;;  %vm492_vm13 = vcmp.eq.f32.partialorder %v4913_v25, inf  ;;  %v4974_v61 = vmul.f32 -9.9803915, %v4935_v19 }
 0x112   :  { %v526_v21 = vmul.f32 %v4124_v15, %v4882_v23  ;;  %v4964_v32 = vsub.f32 %v517_v20, %v4688_v55  ;;  %v4967_v33 = vsub.f32 %v517_v20, %v4707_v0  ;;  %vm494_vm14 = vcmp.eq.f32.partialorder %v4913_v25, 0.0 }
 0x113   :  { %v495_v36 = vand.u32 2147483648, %v4913_v25  ;;  %v4981_v39 = vmul.f32 -9.9803915, %v4945_v22  ;;  %v4984_v40 = vmul.f32 -9.9803915, %v4948_v24  ;;  %v4990_v43 = vsub.f32 %v517_v20, %v4771_v59 }
 0x114   :  { %v4953_v1 = vpop.xlane.xlu0 %409  ;;  %v528_v34 = vsel %vm527_vm7, %v4882_v23, %v526_v21  ;;  %v4987_v42 = vmul.f32 -9.9803915, %v4951_v26  ;;  %v4998_v23 = vsub.f32 %v517_v20, %v4785_v8  ;;  %v5005_v52 = vmul.f32 -9.9803915, %v4964_v32 }
 0x115   :  { %4131 = vrsqrt.f32 %v4953_v1  ;;  %v531_v37 = vsel %vm529_vm8, %v530_v6, %v528_v34  ;;  %v5008_v56 = vmul.f32 -9.9803915, %v4967_v33  ;;  %vm506_vm0 = vcmp.eq.f32.partialorder %v4953_v1, inf }
 0x116   :  { %v4126_v29 = vpop.eup %4125  ;;  %v5011_v57 = vsub.f32 %v531_v37, %v4688_v55  ;;  %v5023_v9 = vmul.f32 -9.9803915, %v4990_v43  ;;  %vm508_vm15 = vcmp.eq.f32.partialorder %v4953_v1, 0.0  ;;  %v5030_v14 = vmul.f32 -9.9803915, %v4998_v23 }
 0x117   :  { %v470_v35 = vmul.f32 %v4126_v29, %v4886_v38  ;;  %v800_v15 = vmul.f32 1.442695, %v709_v51  ;;  %v794_v63 = vmul.f32 1.442695, %v4926_v45  ;;  %v798_v54 = vmul.f32 1.442695, %v4928_v18 }
 0x118   :  { %v4992_v44 = vpop.xlane.xlu0 %415  ;;  %6544 = vst [vmem:[#allocation6_spill] sm:$0xff] %v5011_v57  ;;  %v5036_v34 = vmul.f32 -9.9803915, %v5011_v57  ;;  %vm1633_vm7 = vcmask 261120  }
 0x119   :  { %v472_v47 = vsel %vm471_vm9, %v4886_v38, %v470_v35  ;;  %4133 = vrsqrt.f32 %v4992_v44  ;;  %v5018_v38 = vsub.f32 %v531_v37, %v4707_v0  ;;  %vm520_vm1 = vcmp.eq.f32.partialorder %v4992_v44, inf }
 0x11a   :  { %v4128_v49 = vpop.eup %4127  ;;  %v475_v50 = vsel %vm473_vm10, %v474_v10, %v472_v47  ;;  %v5027_v10 = vsub.f32 %v531_v37, %v4771_v59  ;;  %4135 = vpow2.f32 %v796_v28  ;;  %6546 = vst [vmem:[#allocation8_spill] sm:$0xff] %v5036_v34  ;;  %vm522_vm2 = vcmp.eq.f32.partialorder %v4992_v44, 0.0 }
 0x11b   :  { %v582_v2 = vsub.f32 %v475_v50, %v4688_v55  ;;  %v583_v3 = vsub.f32 %v475_v50, %v4707_v0  ;;  %v585_v4 = vsub.f32 %v475_v50, %v4785_v8  ;;  %v584_v5 = vsub.f32 %v475_v50, %v4771_v59 }
 0x11c   :  { %v477_v6 = vmul.f32 %v4128_v49, %v4893_v53  ;;  %6545 = vst [vmem:[#allocation7_spill] sm:$0xff] %v5027_v10  ;;  %v5044_v28 = vmul.f32 -9.9803915, %v5018_v38  ;;  %v5047_v50 = vsub.f32 %v531_v37, %v4785_v8  ;;  %4137 = vpow2.f32 %v800_v15 }
 0x11d   :  { %v647_v12 = vmul.f32 -9.9803915, %v583_v3  ;;  %v646_v20 = vmul.f32 -9.9803915, %v582_v2  ;;  %v649_v21 = vmul.f32 -9.9803915, %v585_v4  ;;  %v720_v34 = vmul.f32 %v4956_v27, %v4916_v16 }
 0x11e   :  { %v4130_v60 = vpop.eup %4129  ;;  %v479_v29 = vsel %vm478_vm11, %v4893_v53, %v477_v6  ;;  %v648_v49 = vmul.f32 -9.9803915, %v584_v5  ;;  %v5050_v6 = vmul.f32 -9.9803915, %v5027_v10 }
 0x11f   :  { %v482_v35 = vsel %vm480_vm12, %v481_v17, %v479_v29  ;;  %v491_v47 = vmul.f32 %v4130_v60, %v4913_v25  ;;  %v711_v51 = vmul.f32 %v647_v12, %v583_v3  ;;  %v713_v29 = vmul.f32 %v649_v21, %v585_v4 }
 0x120   :  { %6547 = vst [vmem:[#allocation9_spill] sm:$0xff] %v5050_v6  ;;  %v587_v53 = vsub.f32 %v482_v35, %v4707_v0  ;;  %v523_v12 = vand.u32 2147483648, %v4992_v44  ;;  %v710_v48 = vmul.f32 %v646_v20, %v582_v2  ;;  %v586_v30 = vsub.f32 %v482_v35, %v4688_v55 }
 0x121   :  { %v493_v17 = vsel %vm492_vm13, %v4913_v25, %v491_v47  ;;  %v804_v60 = vmul.f32 1.442695, %v711_v51  ;;  %v588_v45 = vsub.f32 %v482_v35, %v4771_v59  ;;  %v719_v47 = vmul.f32 %v4941_v13, %v4910_v11 }
 0x122   :  { %v4132_v3 = vpop.eup %4131  ;;  %v496_v37 = vsel %vm494_vm14, %v495_v36, %v493_v17  ;;  %v589_v4 = vsub.f32 %v482_v35, %v4785_v8  ;;  %v808_v36 = vmul.f32 1.442695, %v713_v29  ;;  %v651_v21 = vmul.f32 -9.9803915, %v587_v53 }
 0x123   :  { %v505_v25 = vmul.f32 %v4132_v3, %v4953_v1  ;;  %4139 = vpow2.f32 %v804_v60  ;;  %v5070_v2 = vsub.f32 %v496_v37, %v4688_v55  ;;  %v712_v15 = vmul.f32 %v648_v49, %v584_v5  ;;  %v1359_v49 = vld [vmem:[%s6529_s5 + $0x18] sm:$0xff] }
 0x124   :  { %4141 = vpow2.f32 %v794_v63  ;;  %v595_v51 = vsub.f32 %v496_v37, %v4707_v0  ;;  %v802_v11 = vmul.f32 1.442695, %v710_v48  ;;  %v5077_v13 = vsub.f32 %v496_v37, %v4771_v59  ;;  %3849 = vmatprep.subr.mxu0 %v1359_v49  ;;  %4009 = vmatprep.subr.mxu1 %v1359_v49 }
 0x125   :  { %v507_v18 = vsel %vm506_vm0, %v4953_v1, %v505_v25  ;;  %4143 = vpow2.f32 %v808_v36  ;;  %v597_v35 = vsub.f32 %v496_v37, %v4785_v8  ;;  %v6548_v17 = vand.u32 2147483648, %v4953_v1  ;;  %3850 = vmatpush3.msra.mxu0 %v1359_v49  ;;  %4013 = vmatpush3.msra.mxu1 %v1359_v49 }
 0x126   :  { %v4134_v20 = vpop.eup %4133  ;;  %v653_v60 = vmul.f32 -9.9803915, %v589_v4  ;;  %v806_v3 = vmul.f32 1.442695, %v712_v15  ;;  %4145 = vpow2.f32 %v802_v11  ;;  %v715_v1 = vmul.f32 %v651_v21, %v587_v53 }
 0x127   :  { %v510_v63 = vsel %vm508_vm15, %v6548_v17, %v507_v18  ;;  %v519_v5 = vmul.f32 %v4134_v20, %v4992_v44  ;;  %v820_v25 = vmul.f32 1.442695, %v719_v47  ;;  %v4136_v36 = vpop.eup %4135  ;;  %v650_v20 = vmul.f32 -9.9803915, %v586_v30 }
 0x128   :  { %v5089_v29 = vsub.f32 %v510_v63, %v4688_v55  ;;  %v5092_v48 = vsub.f32 %v510_v63, %v4707_v0  ;;  %v5095_v37 = vsub.f32 %v510_v63, %v4771_v59  ;;  %v652_v18 = vmul.f32 -9.9803915, %v588_v45 }
 0x129   :  { %v658_v17 = vmul.f32 -9.9803915, %v5070_v2  ;;  %4147 = vpow2.f32 %v798_v54  ;;  %v659_v46 = vmul.f32 -9.9803915, %v595_v51  ;;  %v660_v41 = vmul.f32 -9.9803915, %v5077_v13 }
 0x12a   :  { %v661_v15 = vmul.f32 -9.9803915, %v597_v35  ;;  %v521_v6 = vsel %vm520_vm1, %v4992_v44, %v519_v5  ;;  %v5103_v53 = vsub.f32 %v510_v63, %v4785_v8  ;;  %4149 = vpow2.f32 %v806_v3  ;;  %v4138_v3 = vpop.eup %4137 }
 0x12b   :  { %v812_v47 = vmul.f32 1.442695, %v715_v1  ;;  %v717_v21 = vmul.f32 %v653_v60, %v589_v4  ;;  %v5106_v11 = vmul.f32 -9.9803915, %v5089_v29  ;;  %v667_v54 = vmul.f32 -9.9803915, %v5092_v48 }
 0x12c   :  { %v5110_v49 = vmul.f32 -9.9803915, %v5095_v37  ;;  %4151 = vpow2.f32 %v820_v25  ;;  %v524_v10 = vsel %vm522_vm2, %v523_v12, %v521_v6  ;;  %v721_v63 = vmul.f32 %v4959_v58, %v4919_v62 }
 0x12d   :  { %4153 = vpow2.f32 %v812_v47  ;;  %v816_v5 = vmul.f32 1.442695, %v717_v21  ;;  %v714_v1 = vmul.f32 %v650_v20, %v586_v30  ;;  %v718_v4 = vmul.f32 %v4931_v31, %v4905_v7 }
 0x12e   :  { %v716_v60 = vmul.f32 %v652_v18, %v588_v45  ;;  %v824_v57 = vmul.f32 1.442695, %v721_v63  ;;  %v723_v25 = vmul.f32 %v659_v46, %v595_v51  ;;  %v727_v44 = vmul.f32 %v4981_v39, %v4945_v22 }
 0x12f   :  { %4155 = vpow2.f32 %v816_v5  ;;  %v810_v12 = vmul.f32 1.442695, %v714_v1  ;;  %v818_v47 = vmul.f32 1.442695, %v718_v4  ;;  %v725_v58 = vmul.f32 %v661_v15, %v597_v35 }
 0x130   :  { %v4140_v6 = vpop.eup %4139  ;;  %v814_v62 = vmul.f32 1.442695, %v716_v60  ;;  %v669_v30 = vmul.f32 -9.9803915, %v5103_v53  ;;  %4157 = vpow2.f32 %v824_v57  ;;  %v822_v7 = vmul.f32 1.442695, %v720_v34 }
 0x131   :  { %v4142_v21 = vpop.eup %4141  ;;  %v887_v20 = vpack.c.bf16 %v4140_v6, %v4136_v36  ;;  %4159 = vpow2.f32 %v810_v12  ;;  %v828_v16 = vmul.f32 1.442695, %v723_v25  ;;  %v836_v27 = vmul.f32 1.442695, %v727_v44 }
 0x132   :  { %v4144_v31 = vpop.eup %4143  ;;  %v729_v46 = vmul.f32 %v4987_v42, %v4951_v26  ;;  %4161 = vpow2.f32 %v818_v47  ;;  %v722_v39 = vmul.f32 %v658_v17, %v5070_v2  ;;  %v726_v45 = vmul.f32 %v4974_v61, %v4935_v19 }
 0x133   :  { %1218 = vmatprep.mubr.bf16.mxu1 %v887_v20  ;;  %v889_v22 = vpack.c.bf16 %v4144_v31, %v4138_v3  ;;  %v5129_v51 = vsub.f32 %v524_v10, %v4688_v55  ;;  %4163 = vpow2.f32 %v814_v62  ;;  %v832_v57 = vmul.f32 1.442695, %v725_v58  ;;  %v4146_v35 = vpop.eup %4145 }
 0x134   :  { %v724_v34 = vmul.f32 %v660_v41, %v5077_v13  ;;  %v611_v36 = vsub.f32 %v524_v10, %v4707_v0  ;;  %4165 = vpow2.f32 %v822_v7  ;;  %v840_v26 = vmul.f32 1.442695, %v729_v46  ;;  %v6550_v46 = vld [vmem:[#allocation8_spill] sm:$0xff] }
 0x135   :  { %1315 = vmatprep.mubr.bf16.mxu0 %v889_v22  ;;  %v728_v42 = vmul.f32 %v4984_v40, %v4948_v24  ;;  %v886_v18 = vpack.c.bf16 %v4146_v35, %v4142_v21  ;;  %4167 = vpow2.f32 %v828_v16  ;;  %v826_v19 = vmul.f32 1.442695, %v722_v39 }
 0x136   :  { %v4148_v2 = vpop.eup %4147  ;;  %v731_v55 = vmul.f32 %v667_v54, %v5092_v48  ;;  %v5137_v61 = vsub.f32 %v524_v10, %v4771_v59  ;;  %4169 = vpow2.f32 %v836_v27  ;;  %v834_v41 = vmul.f32 1.442695, %v726_v45  ;;  %v6549_v27 = vld [vmem:[#allocation6_spill] sm:$0xff] }
 0x137   :  { %v735_v0 = vmul.f32 %v5008_v56, %v4967_v33  ;;  %v4150_v13 = vpop.eup %4149  ;;  %v613_v17 = vsub.f32 %v524_v10, %v4785_v8  ;;  %1219 = vmatmul.mubr.bf16.gmra.mxu1 %v886_v18  ;;  %4171 = vpow2.f32 %v832_v57  ;;  %v830_v24 = vmul.f32 1.442695, %v724_v34 }
 0x138   :  { %v733_v40 = vmul.f32 %v669_v30, %v5103_v53  ;;  %v888_v63 = vpack.c.bf16 %v4150_v13, %v4148_v2  ;;  %4173 = vpow2.f32 %v840_v26  ;;  %v838_v48 = vmul.f32 1.442695, %v728_v42 }
 0x139   :  { %v4152_v15 = vpop.eup %4151  ;;  %v737_v59 = vmul.f32 %v5030_v14, %v4998_v23  ;;  %v675_v5 = vmul.f32 -9.9803915, %v611_v36  ;;  %4175 = vpow2.f32 %v826_v19  ;;  %v844_v3 = vmul.f32 1.442695, %v731_v55 }
 0x13a   :  { %v4154_v54 = vpop.eup %4153  ;;  %v730_v33 = vmul.f32 %v5106_v11, %v5089_v29  ;;  %1316 = vmatmul.mubr.bf16.gmra.mxu0 %v888_v63  ;;  %4177 = vpow2.f32 %v834_v41  ;;  %v852_v56 = vmul.f32 1.442695, %v735_v0  ;;  %v734_v10 = vmul.f32 %v5005_v52, %v4964_v32 }
 0x13b   :  { %v891_v8 = vpack.c.bf16 %v4152_v15, %v4154_v54  ;;  %v677_v1 = vmul.f32 -9.9803915, %v613_v17  ;;  %4179 = vpow2.f32 %v830_v24  ;;  %v848_v4 = vmul.f32 1.442695, %v733_v40 }
 0x13c   :  { %v4156_v53 = vpop.eup %4155  ;;  %v732_v23 = vmul.f32 %v5110_v49, %v5095_v37  ;;  %v681_v14 = vmul.f32 -9.9803915, %v5047_v50  ;;  %4181 = vpow2.f32 %v838_v48  ;;  %v856_v60 = vmul.f32 1.442695, %v737_v59 }
 0x13d   :  { %1226 = vmatprep.mubr.bf16.mxu1 %v891_v8  ;;  %v736_v29 = vmul.f32 %v5023_v9, %v4990_v43  ;;  %v4158_v11 = vpop.eup %4157  ;;  %v674_v25 = vmul.f32 -9.9803915, %v5129_v51  ;;  %4183 = vpow2.f32 %v844_v3  ;;  %v842_v32 = vmul.f32 1.442695, %v730_v33 }
 0x13e   :  { %v739_v52 = vmul.f32 %v675_v5, %v611_v36  ;;  %v4160_v44 = vpop.eup %4159  ;;  %v893_v6 = vpack.c.bf16 %v4158_v11, %v4156_v53  ;;  %4185 = vpow2.f32 %v852_v56  ;;  %v850_v12 = vmul.f32 1.442695, %v734_v10  ;;  %v6551_v36 = vld [vmem:[#allocation7_spill] sm:$0xff] }
 0x13f   :  { %v743_v37 = vmul.f32 %v5044_v28, %v5018_v38  ;;  %v4162_v49 = vpop.eup %4161  ;;  %v676_v47 = vmul.f32 -9.9803915, %v5137_v61  ;;  %4187 = vpow2.f32 %v848_v4  ;;  %v846_v62 = vmul.f32 1.442695, %v732_v23 }
 0x140   :  { %v741_v58 = vmul.f32 %v677_v1, %v613_v17  ;;  %v4164_v43 = vpop.eup %4163  ;;  %1323 = vmatprep.mubr.bf16.mxu0 %v893_v6  ;;  %v890_v9 = vpack.c.bf16 %v4162_v49, %v4160_v44  ;;  %4189 = vpow2.f32 %v856_v60  ;;  %v854_v21 = vmul.f32 1.442695, %v736_v29  ;;  %v1356_v49 = vld [vmem:[%s6529_s5] sm:$0xff] }
 0x141   :  { %v745_v30 = vmul.f32 %v681_v14, %v5047_v50  ;;  %v4166_v20 = vpop.eup %4165  ;;  %4191 = vpow2.f32 %v842_v32  ;;  %v860_v7 = vmul.f32 1.442695, %v739_v52  ;;  %v738_v31 = vmul.f32 %v674_v25, %v5129_v51  ;;  %v6552_v51 = vld [vmem:[#allocation9_spill] sm:$0xff] }
 0x142   :  { %v4168_v16 = vpop.eup %4167  ;;  %1227 = vmatmul.mubr.bf16.gmra.mxu1 %v890_v9  ;;  %v892_v38 = vpack.c.bf16 %v4166_v20, %v4164_v43  ;;  %4193 = vpow2.f32 %v850_v12  ;;  %v868_v28 = vmul.f32 1.442695, %v743_v37  ;;  %v742_v22 = vmul.f32 %v6550_v46, %v6549_v27  ;;  %v1358_v12 = vld [vmem:[%s6529_s5 + $0x10] sm:$0xff]  ;;  %v1357_v37 = vld [vmem:[%s6529_s5 + $0x8] sm:$0xff] }
 0x143   :  { %v4170_v39 = vpop.eup %4169  ;;  %4195 = vpow2.f32 %v846_v62  ;;  %v864_v45 = vmul.f32 1.442695, %v741_v58  ;;  %v740_v57 = vmul.f32 %v676_v47, %v5137_v61  ;;  %v872_v35 = vmul.f32 1.442695, %v745_v30  ;;  %3851 = vmatprep.subr.mxu0 %v1358_v12  ;;  %4010 = vmatprep.subr.mxu1 %v1358_v12  ;;  %v5177_v47 = vld [vmem:[%s6529_s5 + $0x38] sm:$0xff] }
 0x144   :  { %v4172_v34 = vpop.eup %4171  ;;  %1324 = vmatmul.mubr.bf16.gmra.mxu0 %v892_v38  ;;  %v895_v50 = vpack.c.bf16 %v4170_v39, %v4168_v16  ;;  %4197 = vpow2.f32 %v854_v21  ;;  %v744_v26 = vmul.f32 %v6552_v51, %v6551_v36  ;;  %v858_v2 = vmul.f32 1.442695, %v738_v31  ;;  %4014 = vmatpush3.msra.mxu1 %v1358_v12  ;;  %v1368_v51 = vld [vmem:[%s6528_s6] sm:$0xf] }
 0x145   :  { %v4174_v42 = vpop.eup %4173  ;;  %4199 = vpow2.f32 %v860_v7  ;;  %v866_v55 = vmul.f32 1.442695, %v742_v22  ;;  %v862_v0 = vmul.f32 1.442695, %v740_v57  ;;  %3852 = vmatpush3.msra.mxu0 %v1358_v12  ;;  %4011 = vmatprep.subr.mxu1 %v1357_v37 }
 0x146   :  { %v4176_v18 = vpop.eup %4175  ;;  %1234 = vmatprep.mubr.bf16.mxu1 %v895_v50  ;;  %v897_v19 = vpack.c.bf16 %v4174_v42, %v4172_v34  ;;  %4201 = vpow2.f32 %v868_v28  ;;  %v870_v17 = vmul.f32 1.442695, %v744_v26  ;;  %3853 = vmatprep.subr.mxu0 %v1357_v37 }
 0x147   :  { %v4178_v41 = vpop.eup %4177  ;;  %4203 = vpow2.f32 %v864_v45  ;;  %3854 = vmatpush3.msra.mxu0 %v1357_v37  ;;  %4015 = vmatpush3.msra.mxu1 %v1357_v37 }
 0x148   :  { %v4180_v61 = vpop.eup %4179  ;;  %1331 = vmatprep.mubr.bf16.mxu0 %v897_v19  ;;  %v894_v13 = vpack.c.bf16 %v4178_v41, %v4176_v18  ;;  %4205 = vpow2.f32 %v872_v35  ;;  %3855 = vmatprep.subr.mxu0 %v1356_v49 }
 0x149   :  { %v4182_v24 = vpop.eup %4181  ;;  %4207 = vpow2.f32 %v858_v2  ;;  %3856 = vmatpush3.msra.mxu0 %v1356_v49  ;;  %4012 = vmatprep.subr.mxu1 %v1356_v49  ;;  %v6553_v2 = vld [vmem:[#allocation3_spill] sm:$0xff] }
 0x14a   :  { %v4184_v40 = vpop.eup %4183  ;;  %1235 = vmatmul.mubr.bf16.gmra.mxu1 %v894_v13  ;;  %v896_v15 = vpack.c.bf16 %v4182_v24, %v4180_v61  ;;  %4209 = vpow2.f32 %v866_v55  ;;  %3881 = vmatprep.subr.mxu0 %v5177_v47  ;;  %v5216_v18 = vrot.slane %v1368_v51, %v6553_v2  ;;  %v5218_v61 = vpop.permute.xlu0 %2558 }
 0x14b   :  { %v4186_v63 = vpop.eup %4185  ;;  %4211 = vpow2.f32 %v862_v0  ;;  %4016 = vmatpush3.msra.mxu1 %v1356_v49 }
 0x14c   :  { %v4188_v48 = vpop.eup %4187  ;;  %1332 = vmatmul.mubr.bf16.gmra.mxu0 %v896_v15  ;;  %v899_v59 = vpack.c.bf16 %v4186_v63, %v4184_v40  ;;  %4213 = vpow2.f32 %v870_v17 }
 0x14d   :  { %v4190_v54 = vpop.eup %4189 }
 0x14e   :  { %v4192_v5 = vpop.eup %4191  ;;  %1242 = vmatprep.mubr.bf16.mxu1 %v899_v59  ;;  %v901_v3 = vpack.c.bf16 %v4190_v54, %v4188_v48 }
 0x14f   :  { %v4194_v33 = vpop.eup %4193 }
 0x150   :  { %v4196_v8 = vpop.eup %4195  ;;  %1339 = vmatprep.mubr.bf16.mxu0 %v901_v3  ;;  %v898_v56 = vpack.c.bf16 %v4194_v33, %v4192_v5 }
 0x151   :  { %v4198_v10 = vpop.eup %4197 }
 0x152   :  { %v4200_v53 = vpop.eup %4199  ;;  %1243 = vmatmul.mubr.bf16.gmra.mxu1 %v898_v56  ;;  %v900_v1 = vpack.c.bf16 %v4198_v10, %v4196_v8 }
 0x153   :  { %v4202_v4 = vpop.eup %4201 }
 0x154   :  { %v4204_v23 = vpop.eup %4203  ;;  %1340 = vmatmul.mubr.bf16.gmra.mxu0 %v900_v1  ;;  %v903_v14 = vpack.c.bf16 %v4202_v4, %v4200_v53 }
 0x155   :  { %v4206_v60 = vpop.eup %4205 }
 0x156   :  { %v4208_v29 = vpop.eup %4207  ;;  %1250 = vmatprep.mubr.bf16.mxu1 %v903_v14  ;;  %v905_v11 = vpack.c.bf16 %v4206_v60, %v4204_v23 }
 0x157   :  { %v4210_v25 = vpop.eup %4209 }
 0x158   :  { %v4212_v32 = vpop.eup %4211  ;;  %1347 = vmatprep.mubr.bf16.mxu0 %v905_v11  ;;  %v902_v52 = vpack.c.bf16 %v4210_v25, %v4208_v29 }
 0x159   :  { %v4214_v44 = vpop.eup %4213 }
 0x15a   :  { %1251 = vmatmul.mubr.bf16.gmra.mxu1 %v902_v52  ;;  %v904_v6 = vpack.c.bf16 %v4214_v44, %v4212_v32 }
 0x15c   :  { %1348 = vmatmul.mubr.bf16.gmra.mxu0 %v904_v6 }
 0x15e   :  { %v5180_v62 = vpop.f32.mrf.mxu0 }
 0x160   :  { %v5182_v58 = vpop.f32.mrf.mxu0 }
 0x165   :  { %v5184_v43 = vpop.f32.mrf.mxu0 }
 0x167   :  { %v5186_v9 = vpop.f32.mrf.mxu0 }
 0x182   :  { %v3611_v20 = vpop.f32.mrf.mxu1 }
 0x184   :  { %v3612_v16 = vpop.f32.mrf.mxu1 }
 0x185   :  { %v3613_v19 = vadd.f32 %v3612_v16, %v3611_v20 }
 0x186   :  { %v3614_v27 = vpop.f32.mrf.mxu1 }
 0x188   :  { %v3615_v39 = vpop.f32.mrf.mxu1 }
 0x189   :  { %v3616_v24 = vadd.f32 %v3615_v39, %v3614_v27 }
 0x18a   :  { %v3617_v34 = vpop.f32.mrf.mxu1 }
 0x18c   :  { %v3618_v36 = vpop.f32.mrf.mxu1 }
 0x18d   :  { %v3619_v33 = vadd.f32 %v3618_v36, %v3617_v34 }
 0x18e   :  { %v3620_v55 = vpop.f32.mrf.mxu1 }
 0x190   :  { %v3621_v40 = vpop.f32.mrf.mxu1 }
 0x191   :  { %v3622_v37 = vadd.f32 %v3621_v40, %v3620_v55 }
 0x192   :  { %v5188_v21 = vpop.f32.mrf.mxu0 }
 0x194   :  { %v5190_v30 = vpop.f32.mrf.mxu0 }
 0x196   :  { %v5192_v7 = vpop.f32.mrf.mxu0 }
 0x198   :  { %v5194_v31 = vpop.f32.mrf.mxu0 }
 0x19a   :  { %v5196_v38 = vpop.f32.mrf.mxu0 }
 0x19c   :  { %v5198_v28 = vpop.f32.mrf.mxu0 }
 0x19e   :  { %v5200_v46 = vpop.f32.mrf.mxu0 }
 0x1a0   :  { %v5202_v22 = vpop.f32.mrf.mxu0 }
 0x1a2   :  { %v5204_v45 = vpop.f32.mrf.mxu0 }
 0x1a4   :  { %v5206_v57 = vpop.f32.mrf.mxu0 }
 0x1a6   :  { %v5208_v50 = vpop.f32.mrf.mxu0 }
 0x1a8   :  { %v5210_v35 = vpop.f32.mrf.mxu0 }
 0x1aa   :  { %v3675_v26 = vpop.f32.mrf.mxu0 }
 0x1ac   :  { %v3676_v42 = vpop.f32.mrf.mxu0 }
 0x1ad   :  { %v3677_v41 = vadd.f32 %v3676_v42, %v3675_v26 }
 0x1ae   :  { %v3678_v0 = vpop.f32.mrf.mxu0 }
 0x1af   :  { %v1294_v13 = vadd.f32 %v3677_v41, %v3613_v19 }
 0x1b0   :  { %v3679_v17 = vpop.f32.mrf.mxu0 }
 0x1b1   :  { %v5221_v15 = vadd.f32 %v5216_v18, %v1294_v13  ;;  %v3680_v63 = vadd.f32 %v3679_v17, %v3678_v0  ;;  %v5224_v48 = vadd.f32 %v5218_v61, %v1294_v13 }
 0x1b2   :  { %v3681_v59 = vpop.f32.mrf.mxu0 }
 0x1b3   :  { %v1405_v54 = vmin.f32 %v5221_v15, 20.0  ;;  %v1297_v5 = vadd.f32 %v3680_v63, %v3616_v24  ;;  %v3623_v3 = vpop.f32.mrf.mxu1  ;;  %v2593_v56 = vmin.f32 %v5224_v48, 20.0  ;;  %vm1389_vm4 = vcmp.gt.f32.partialorder %v5221_v15, 20.0 }
 0x1b4   :  { %v3682_v8 = vpop.f32.mrf.mxu0  ;;  %vm2577_vm8 = vcmp.gt.f32.partialorder %v5224_v48, 20.0 }
 0x1b5   :  { %v1421_v10 = vmul.f32 1.442695, %v1405_v54  ;;  %v5229_v53 = vadd.f32 %v5216_v18, %v1297_v5  ;;  %v3683_v1 = vadd.f32 %v3682_v8, %v3681_v59  ;;  %v5232_v4 = vadd.f32 %v5218_v61, %v1297_v5  ;;  %v3624_v23 = vpop.f32.mrf.mxu1 }
 0x1b6   :  { %v3684_v14 = vpop.f32.mrf.mxu0  ;;  %v2609_v60 = vmul.f32 1.442695, %v2593_v56  ;;  %v3625_v42 = vadd.f32 %v3624_v23, %v3623_v3 }
 0x1b7   :  { %4215 = vpow2.f32 %v1421_v10  ;;  %v1406_v29 = vmin.f32 %v5229_v53, 20.0  ;;  %v1302_v11 = vadd.f32 %v3683_v1, %v3619_v33  ;;  %v2594_v32 = vmin.f32 %v5232_v4, 20.0  ;;  %v3626_v49 = vpop.f32.mrf.mxu1 }
 0x1b8   :  { %v3685_v25 = vpop.f32.mrf.mxu0  ;;  %4217 = vpow2.f32 %v2609_v60  ;;  %vm1390_vm5 = vcmp.gt.f32.partialorder %v5229_v53, 20.0  ;;  %vm2578_vm11 = vcmp.gt.f32.partialorder %v5232_v4, 20.0 }
 0x1b9   :  { %v1423_v52 = vmul.f32 1.442695, %v1406_v29  ;;  %v5237_v44 = vadd.f32 %v5216_v18, %v1302_v11  ;;  %v5240_v6 = vadd.f32 %v5218_v61, %v1302_v11  ;;  %v3686_v12 = vadd.f32 %v3685_v25, %v3684_v14  ;;  %v3627_v41 = vpop.f32.mrf.mxu1 }
 0x1ba   :  { %v3687_v20 = vpop.f32.mrf.mxu0  ;;  %v2611_v16 = vmul.f32 1.442695, %v2594_v32  ;;  %v3628_v63 = vadd.f32 %v3627_v41, %v3626_v49 }
 0x1bb   :  { %4219 = vpow2.f32 %v1423_v52  ;;  %v1407_v27 = vmin.f32 %v5237_v44, 20.0  ;;  %v2595_v39 = vmin.f32 %v5240_v6, 20.0  ;;  %v1305_v34 = vadd.f32 %v3686_v12, %v3622_v37 }
 0x1bc   :  { %v3688_v36 = vpop.f32.mrf.mxu0  ;;  %4221 = vpow2.f32 %v2611_v16  ;;  %vm1391_vm12 = vcmp.gt.f32.partialorder %v5237_v44, 20.0  ;;  %vm2579_vm0 = vcmp.gt.f32.partialorder %v5240_v6, 20.0 }
 0x1bd   :  { %v1425_v51 = vmul.f32 1.442695, %v1407_v27  ;;  %v2613_v26 = vmul.f32 1.442695, %v2595_v39  ;;  %v3689_v2 = vadd.f32 %v3688_v36, %v3687_v20  ;;  %v5245_v19 = vadd.f32 %v5216_v18, %v1305_v34 }
 0x1be   :  { %v5248_v55 = vadd.f32 %v5218_v61, %v1305_v34  ;;  %v3690_v0 = vpop.f32.mrf.mxu0 }
 0x1bf   :  { %4223 = vpow2.f32 %v1425_v51  ;;  %v1310_v13 = vadd.f32 %v3689_v2, %v3625_v42  ;;  %v1408_v17 = vmin.f32 %v5245_v19, 20.0  ;;  %vm1392_vm1 = vcmp.gt.f32.partialorder %v5245_v19, 20.0 }
 0x1c0   :  { %4225 = vpow2.f32 %v2613_v26  ;;  %v2596_v24 = vmin.f32 %v5248_v55, 20.0  ;;  %v3691_v40 = vpop.f32.mrf.mxu0  ;;  %vm2580_vm2 = vcmp.gt.f32.partialorder %v5248_v55, 20.0 }
 0x1c1   :  { %v5253_v59 = vadd.f32 %v5216_v18, %v1310_v13  ;;  %v5256_v54 = vadd.f32 %v5218_v61, %v1310_v13  ;;  %v3692_v5 = vadd.f32 %v3691_v40, %v3690_v0  ;;  %v1427_v3 = vmul.f32 1.442695, %v1408_v17 }
 0x1c2   :  { %v2615_v33 = vmul.f32 1.442695, %v2596_v24 }
 0x1c3   :  { %v1409_v8 = vmin.f32 %v5253_v59, 20.0  ;;  %v2597_v56 = vmin.f32 %v5256_v54, 20.0  ;;  %v1313_v10 = vadd.f32 %v3692_v5, %v3628_v63  ;;  %4227 = vpow2.f32 %v1427_v3 }
 0x1c4   :  { %v4216_v1 = vpop.eup %4215  ;;  %4229 = vpow2.f32 %v2615_v33 }
 0x1c5   :  { %v1429_v23 = vmul.f32 1.442695, %v1409_v8  ;;  %v2617_v14 = vmul.f32 1.442695, %v2597_v56  ;;  %v5261_v60 = vadd.f32 %v5216_v18, %v1313_v10  ;;  %v5264_v29 = vadd.f32 %v5218_v61, %v1313_v10  ;;  %v4218_v25 = vpop.eup %4217 }
 0x1c6   :  { %v1453_v11 = vadd.f32 1.0, %v4216_v1  ;;  %v2641_v27 = vadd.f32 1.0, %v4218_v25  ;;  %v1456_v39 = vmul.f32 -0.5, %v4216_v1  ;;  %v1459_v42 = vand.u32 2147483647, %v4216_v1 }
 0x1c7   :  { %4231 = vpow2.f32 %v1429_v23  ;;  %v1410_v32 = vmin.f32 %v5261_v60, 20.0  ;;  %v2598_v12 = vmin.f32 %v5264_v29, 20.0  ;;  %v2644_v2 = vmul.f32 -0.5, %v4218_v25 }
 0x1c8   :  { %v4220_v52 = vpop.eup %4219  ;;  %4233 = vpow2.f32 %v2617_v14  ;;  %v1457_v13 = vadd.f32 1.0, %v1456_v39  ;;  %vm5272_vm3 = vcmp.lt.f32.partialorder %v1459_v42, 0.0004427343  ;;  %v2647_v33 = vand.u32 2147483647, %v4218_v25 }
 0x1c9   :  { %v5268_v37 = vpop.eup %4221  ;;  %v1462_v49 = vadd.f32 1.0, %v4220_v52  ;;  %v1431_v20 = vmul.f32 1.442695, %v1410_v32  ;;  %v2619_v16 = vmul.f32 1.442695, %v2598_v12  ;;  %4235 = vlog2.f32 %v1453_v11 }
 0x1ca   :  { %v2650_v36 = vadd.f32 1.0, %v5268_v37  ;;  %v1465_v26 = vmul.f32 -0.5, %v4220_v52  ;;  %v1468_v0 = vand.u32 2147483647, %v4220_v52  ;;  %v2653_v17 = vmul.f32 -0.5, %v5268_v37 }
 0x1cb   :  { %4237 = vlog2.f32 %v1462_v49  ;;  %v2645_v10 = vadd.f32 1.0, %v2644_v2  ;;  %v2656_v23 = vand.u32 2147483647, %v5268_v37  ;;  %v1458_v32 = vmul.f32 %v4216_v1, %v1457_v13 }
 0x1cc   :  { %v4224_v34 = vpop.eup %4223  ;;  %4239 = vpow2.f32 %v1431_v20  ;;  %v1466_v5 = vadd.f32 1.0, %v1465_v26  ;;  %vm5281_vm6 = vcmp.lt.f32.partialorder %v1468_v0, 0.0004427343  ;;  %vm5292_vm9 = vcmp.lt.f32.partialorder %v2647_v33, 0.0004427343 }
 0x1cd   :  { %v4226_v51 = vpop.eup %4225  ;;  %4241 = vpow2.f32 %v2619_v16  ;;  %v1471_v41 = vadd.f32 1.0, %v4224_v34  ;;  %v1474_v24 = vmul.f32 -0.5, %v4224_v34  ;;  %v2654_v16 = vadd.f32 1.0, %v2653_v17 }
 0x1ce   :  { %4243 = vlog2.f32 %v2641_v27  ;;  %v2659_v40 = vadd.f32 1.0, %v4226_v51  ;;  %v2662_v8 = vmul.f32 -0.5, %v4226_v51  ;;  %v1477_v39 = vand.u32 2147483647, %v4224_v34 }
 0x1cf   :  { %4245 = vlog2.f32 %v2650_v36  ;;  %v1475_v27 = vadd.f32 1.0, %v1474_v24  ;;  %v2665_v42 = vand.u32 2147483647, %v4226_v51  ;;  %v2646_v1 = vmul.f32 %v4218_v25, %v2645_v10 }
 0x1d0   :  { %4247 = vlog2.f32 %v1471_v41  ;;  %v4228_v63 = vpop.eup %4227  ;;  %v2663_v26 = vadd.f32 1.0, %v2662_v8  ;;  %v1467_v41 = vmul.f32 %v4220_v52, %v1466_v5  ;;  %vm5296_vm10 = vcmp.lt.f32.partialorder %v2656_v23, 0.0004427343 }
 0x1d1   :  { %v5276_v56 = vpop.eup %4229  ;;  %4249 = vlog2.f32 %v2659_v40  ;;  %v1480_v14 = vadd.f32 1.0, %v4228_v63  ;;  %v1483_v12 = vmul.f32 -0.5, %v4228_v63  ;;  %v1486_v40 = vand.u32 2147483647, %v4228_v63 }
 0x1d2   :  { %v2668_v49 = vadd.f32 1.0, %v5276_v56  ;;  %v2655_v5 = vmul.f32 %v5268_v37, %v2654_v16  ;;  %v1476_v33 = vmul.f32 %v4224_v34, %v1475_v27  ;;  %vm5304_vm13 = vcmp.lt.f32.partialorder %v1477_v39, 0.0004427343 }
 0x1d3   :  { %4251 = vlog2.f32 %v1480_v14  ;;  %v1484_v24 = vadd.f32 1.0, %v1483_v12  ;;  %vm5312_vm14 = vcmp.lt.f32.partialorder %v2665_v42, 0.0004427343  ;;  %v2671_v34 = vmul.f32 -0.5, %v5276_v56 }
 0x1d4   :  { %v5286_v20 = vpop.eup %4231  ;;  %4253 = vlog2.f32 %v2668_v49  ;;  %v5310_v49 = vmul.f32 %v4226_v51, %v2663_v26  ;;  %v2674_v16 = vand.u32 2147483647, %v5276_v56  ;;  %vm5331_vm15 = vcmp.lt.f32.partialorder %v1486_v40, 0.0004427343 }
 0x1d5   :  { %v5288_v36 = vpop.eup %4233  ;;  %v1489_v2 = vadd.f32 1.0, %v5286_v20  ;;  %v5329_v42 = vmul.f32 %v4228_v63, %v1484_v24 }
 0x1d6   :  { %v4236_v17 = vpop.eup %4235  ;;  %v2677_v8 = vadd.f32 1.0, %v5288_v36  ;;  %v2680_v24 = vmul.f32 -0.5, %v5288_v36 }
 0x1d7   :  { %4255 = vlog2.f32 %v1489_v2  ;;  %v1455_v25 = vmul.f32 0.6931472, %v4236_v17 }
 0x1d8   :  { %v4238_v52 = vpop.eup %4237  ;;  %4257 = vlog2.f32 %v2677_v8 }
 0x1d9   :  { %v5308_v23 = vpop.eup %4239  ;;  %v1464_v14 = vmul.f32 0.6931472, %v4238_v52  ;;  %v1461_v37 = vsel %vm5272_vm3, %v1458_v32, %v1455_v25  ;;  %v1492_v32 = vmul.f32 -0.5, %v5286_v20  ;;  %vm1393_vm3 = vcmp.gt.f32.partialorder %v5253_v59, 20.0 }
 0x1da   :  { %v5316_v2 = vpop.eup %4241  ;;  %v1498_v27 = vadd.f32 1.0, %v5308_v23  ;;  %v1597_v26 = vsel %vm1389_vm4, %v5221_v15, %v1461_v37  ;;  %v1362_v37 = vld [vmem:[%s6529_s5 + $0x30] sm:$0xff]  ;;  %vm5369_vm4 = vcmp.lt.f32.partialorder %v2674_v16, 0.0004427343 }
 0x1db   :  { %v4244_v51 = vpop.eup %4243  ;;  %v1470_v39 = vsel %vm5281_vm6, %v1467_v41, %v1464_v14  ;;  %v3409_v11 = vadd.f32 -0.6931472, %v1597_v26  ;;  %v2686_v40 = vadd.f32 1.0, %v5316_v2  ;;  %v2672_v14 = vadd.f32 1.0, %v2671_v34 }
 0x1dc   :  { %v4246_v17 = vpop.eup %4245  ;;  %v1598_v8 = vsel %vm1390_vm5, %v5229_v53, %v1470_v39  ;;  %v2643_v41 = vmul.f32 0.6931472, %v4244_v51  ;;  %4259 = vlog2.f32 %v1498_v27  ;;  %v1495_v27 = vand.u32 2147483647, %v5286_v20 }
 0x1dd   :  { %v4248_v52 = vpop.eup %4247  ;;  %v3410_v15 = vadd.f32 -0.6931472, %v1598_v8  ;;  %v2652_v63 = vmul.f32 0.6931472, %v4246_v17  ;;  %3857 = vmatprep.mubr.msk.f32.mxu0 %vm1633_vm7, %v3409_v11  ;;  %v1493_v0 = vadd.f32 1.0, %v1492_v32  ;;  %4261 = vlog2.f32 %v2686_v40 }
 0x1de   :  { %v2649_v25 = vsel %vm5292_vm9, %v2646_v1, %v2643_v41  ;;  %v1473_v53 = vmul.f32 0.6931472, %v4248_v52  ;;  %v4250_v51 = vpop.eup %4249  ;;  %vm5385_vm5 = vcmp.lt.f32.partialorder %v1495_v27, 0.0004427343 }
 0x1df   :  { %v2785_v39 = vsel %vm2577_vm8, %v5224_v48, %v2649_v25  ;;  %3858 = vmatmul.mubr.msk.f32.vlgmr.msra.gmra.mxu0 %vm1633_vm7, %v3410_v15  ;;  %v2658_v1 = vsel %vm5296_vm10, %v2655_v5, %v2652_v63  ;;  %v2661_v8 = vmul.f32 0.6931472, %v4250_v51  ;;  %v1361_v48 = vld [vmem:[%s6529_s5 + $0x28] sm:$0xff]  ;;  %v2673_v63 = vmul.f32 %v5276_v56, %v2672_v14 }
 0x1e0   :  { %v3498_v34 = vadd.f32 -0.6931472, %v2785_v39  ;;  %v2786_v26 = vsel %vm2578_vm11, %v5232_v4, %v2658_v1  ;;  %v1479_v17 = vsel %vm5304_vm13, %v1476_v33, %v1473_v53  ;;  %3882 = vmatpush3.msra.mxu0 %v5177_v47  ;;  %v4252_v11 = vpop.eup %4251  ;;  %v2681_v4 = vadd.f32 1.0, %v2680_v24  ;;  %v1360_v47 = vld [vmem:[%s6529_s5 + $0x20] sm:$0xff] }
 0x1e1   :  { %v1599_v13 = vsel %vm1391_vm12, %v5237_v44, %v1479_v17  ;;  %3883 = vmatprep.subr.mxu0 %v1362_v37  ;;  %v1501_v33 = vmul.f32 -0.5, %v5308_v23  ;;  %v4254_v10 = vpop.eup %4253  ;;  %v3499_v32 = vadd.f32 -0.6931472, %v2786_v26  ;;  %v2667_v44 = vsel %vm5312_vm14, %v5310_v49, %v2661_v8 }
 0x1e2   :  { %2837 = vrot.lane.b32.xlu1 %v3498_v34, %s4412_s27  ;;  %v3411_v41 = vadd.f32 -0.6931472, %v1599_v13  ;;  %v1482_v16 = vmul.f32 0.6931472, %v4252_v11  ;;  %3884 = vmatpush3.msra.mxu0 %v1362_v37  ;;  %v2787_v52 = vsel %vm2579_vm0, %v5240_v6, %v2667_v44  ;;  %v2670_v15 = vmul.f32 0.6931472, %v4254_v10 }
 0x1e3   :  { %3885 = vmatprep.subr.mxu0 %v1361_v48  ;;  %v3500_v25 = vadd.f32 -0.6931472, %v2787_v52  ;;  %v1494_v12 = vmul.f32 %v5286_v20, %v1493_v0  ;;  %v2683_v6 = vand.u32 2147483647, %v5288_v36  ;;  %v2689_v37 = vmul.f32 -0.5, %v5316_v2 }
 0x1e4   :  { %v4256_v40 = vpop.eup %4255  ;;  %3860 = vmatprep.mubr.msk.f32.mxu0 %vm1633_vm7, %v3411_v41  ;;  %v1488_v49 = vsel %vm5331_vm15, %v5329_v42, %v1482_v16  ;;  %3886 = vmatpush3.msra.mxu0 %v1361_v48  ;;  %v2676_v53 = vsel %vm5369_vm4, %v2673_v63, %v2670_v15  ;;  %v3492_v42 = vld [vmem:[%s6529_s5 + $0x78] sm:$0xff]  ;;  %v2682_v27 = vmul.f32 %v5288_v36, %v2681_v4  ;;  %v1502_v51 = vadd.f32 1.0, %v1501_v33 }
 0x1e5   :  { %v1600_v56 = vsel %vm1392_vm1, %v5245_v19, %v1488_v49  ;;  %v1491_v14 = vmul.f32 0.6931472, %v4256_v40  ;;  %3887 = vmatprep.subr.mxu0 %v1360_v47  ;;  %v4258_v3 = vpop.eup %4257  ;;  %2841 = vrot.lane.b32.xlu0 %v3500_v25, %s4412_s27  ;;  %v2788_v19 = vsel %vm2580_vm2, %v5248_v55, %v2676_v53  ;;  %v1504_v34 = vand.u32 2147483647, %v5308_v23 }
 0x1e6   :  { %2839 = vrot.lane.b32.xlu1 %v3499_v32, %s4412_s27  ;;  %v3412_v20 = vadd.f32 -0.6931472, %v1600_v56  ;;  %v3501_v39 = vadd.f32 -0.6931472, %v2788_v19  ;;  %v2679_v0 = vmul.f32 0.6931472, %v4258_v3  ;;  %3888 = vmatpush3.msra.mxu0 %v1360_v47  ;;  %v1503_v13 = vmul.f32 %v5308_v23, %v1502_v51 }
 0x1e7   :  { %v1497_v1 = vsel %vm5385_vm5, %v1494_v12, %v1491_v14  ;;  %vm2684_vm6 = vcmp.lt.f32.partialorder %v2683_v6, 0.0004427343  ;;  %3945 = vmatprep.subr.mxu0 %v3492_v42  ;;  %vm2581_vm8 = vcmp.gt.f32.partialorder %v5256_v54, 20.0  ;;  %v2690_v8 = vadd.f32 1.0, %v2689_v37 }
 0x1e8   :  { %3861 = vmatmul.mubr.msk.f32.gmra.mxu0 %vm1633_vm7, %v3412_v20  ;;  %v1601_v26 = vsel %vm1393_vm3, %v5253_v59, %v1497_v1  ;;  %v2685_v36 = vsel %vm2684_vm6, %v2682_v27, %v2679_v0  ;;  %v2692_v5 = vand.u32 2147483647, %v5316_v2  ;;  %vm1505_vm9 = vcmp.lt.f32.partialorder %v1504_v34, 0.0004427343 }
 0x1e9   :  { %v4260_v55 = vpop.eup %4259  ;;  %v3413_v17 = vadd.f32 -0.6931472, %v1601_v26  ;;  %v2789_v48 = vsel %vm2581_vm8, %v5256_v54, %v2685_v36  ;;  %vm1394_vm10 = vcmp.gt.f32.partialorder %v5261_v60, 20.0  ;;  %v2691_v54 = vmul.f32 %v5316_v2, %v2690_v8 }
 0x1ea   :  { %2843 = vrot.lane.b32.xlu1 %v3501_v39, %s4412_s27  ;;  %v1500_v11 = vmul.f32 0.6931472, %v4260_v55  ;;  %v3502_v59 = vadd.f32 -0.6931472, %v2789_v48  ;;  %v4262_v4 = vpop.eup %4261  ;;  %vm2693_vm11 = vcmp.lt.f32.partialorder %v2692_v5, 0.0004427343 }
 0x1eb   :  { %3863 = vmatprep.mubr.msk.f32.mxu0 %vm1633_vm7, %v3413_v17  ;;  %v2688_v10 = vmul.f32 0.6931472, %v4262_v4  ;;  %vm2582_vm12 = vcmp.gt.f32.partialorder %v5264_v29, 20.0 }
 0x1ec   :  { %v1506_v33 = vsel %vm1505_vm9, %v1503_v13, %v1500_v11  ;;  %2845 = vrot.lane.b32.xlu0 %v3502_v59, %s4412_s27 }
 0x1ed   :  { %v1602_v47 = vsel %vm1394_vm10, %v5261_v60, %v1506_v33  ;;  %v2694_v23 = vsel %vm2693_vm11, %v2691_v54, %v2688_v10  ;;  %v3491_v60 = vld [vmem:[%s6529_s5 + $0x70] sm:$0xff] }
 0x1ee   :  { %v3414_v32 = vadd.f32 -0.6931472, %v1602_v47  ;;  %v2790_v41 = vsel %vm2582_vm12, %v5264_v29, %v2694_v23  ;;  %v3490_v29 = vld [vmem:[%s6529_s5 + $0x68] sm:$0xff] }
 0x1ef   :  { %v3503_v44 = vadd.f32 -0.6931472, %v2790_v41 }
 0x1f0   :  { %3864 = vmatmul.mubr.msk.f32.gmra.mxu0 %vm1633_vm7, %v3414_v32 }
 0x1f1   :  { %3889 = vmatprep.mubr.msk.f32.mxu0 %vm1633_vm7, %v5182_v58  ;;  %2847 = vrot.lane.b32.xlu1 %v3503_v44, %s4412_s27  ;;  %v3489_v58 = vld [vmem:[%s6529_s5 + $0x60] sm:$0xff] }
 0x1f4   :  { %3890 = vmatmul.mubr.msk.f32.vlgmr.msra.gmra.mxu0 %vm1633_vm7, %v5180_v62 }
 0x1f5   :  { %3892 = vmatprep.mubr.msk.f32.mxu0 %vm1633_vm7, %v5186_v9  ;;  %3946 = vmatpush3.msra.mxu0 %v3492_v42 }
 0x1f6   :  { %3947 = vmatprep.subr.mxu0 %v3491_v60 }
 0x1f7   :  { %3948 = vmatpush3.msra.mxu0 %v3491_v60  ;;  %v3629_v62 = vpop.f32.mrf.mxu1 }
 0x1f8   :  { %3893 = vmatmul.mubr.msk.f32.gmra.mxu0 %vm1633_vm7, %v5184_v43  ;;  %3949 = vmatprep.subr.mxu0 %v3490_v29 }
 0x1f9   :  { %3895 = vmatprep.mubr.msk.f32.mxu0 %vm1633_vm7, %v5190_v30  ;;  %3950 = vmatpush3.msra.mxu0 %v3490_v29  ;;  %v3630_v9 = vpop.f32.mrf.mxu1 }
 0x1fa   :  { %3951 = vmatprep.subr.mxu0 %v3489_v58  ;;  %v3693_v2 = vpop.f32.mrf.mxu0  ;;  %v3631_v16 = vadd.f32 %v3630_v9, %v3629_v62 }
 0x1fb   :  { %3952 = vmatpush3.msra.mxu0 %v3489_v58  ;;  %v3632_v52 = vpop.f32.mrf.mxu1 }
 0x1fc   :  { %3896 = vmatmul.mubr.msk.f32.gmra.mxu0 %vm1633_vm7, %v5188_v21  ;;  %v3694_v15 = vpop.f32.mrf.mxu0 }
 0x1fd   :  { %3898 = vmatprep.mubr.msk.f32.mxu0 %vm1633_vm7, %v5194_v31  ;;  %v3695_v43 = vadd.f32 %v3694_v15, %v3693_v2  ;;  %v3633_v63 = vpop.f32.mrf.mxu1 }
 0x1fe   :  { %v3696_v30 = vpop.f32.mrf.mxu0  ;;  %v3634_v40 = vadd.f32 %v3633_v63, %v3632_v52 }
 0x1ff   :  { %v1318_v24 = vadd.f32 %v3695_v43, %v3631_v16 }
 0x200   :  { %3899 = vmatmul.mubr.msk.f32.gmra.mxu0 %vm1633_vm7, %v5192_v7  ;;  %v3697_v25 = vpop.f32.mrf.mxu0 }
 0x201   :  { %3901 = vmatprep.mubr.msk.f32.mxu0 %vm1633_vm7, %v5198_v28  ;;  %v5459_v21 = vadd.f32 %v5216_v18, %v1318_v24  ;;  %v3698_v49 = vadd.f32 %v3697_v25, %v3696_v30  ;;  %v5467_v6 = vadd.f32 %v5218_v61, %v1318_v24 }
 0x202   :  { %v3635_v31 = vpop.f32.mrf.mxu1 }
 0x203   :  { %v1411_v7 = vmin.f32 %v5459_v21, 20.0  ;;  %v1321_v12 = vadd.f32 %v3698_v49, %v3634_v40  ;;  %v2599_v3 = vmin.f32 %v5467_v6, 20.0  ;;  %vm1395_vm13 = vcmp.gt.f32.partialorder %v5459_v21, 20.0 }
 0x204   :  { %3902 = vmatmul.mubr.msk.f32.gmra.mxu0 %vm1633_vm7, %v5196_v38  ;;  %v3699_v28 = vpop.f32.mrf.mxu0  ;;  %v3636_v56 = vpop.f32.mrf.mxu1  ;;  %vm2583_vm2 = vcmp.gt.f32.partialorder %v5467_v6, 20.0 }
 0x205   :  { %3904 = vmatprep.mubr.msk.f32.mxu0 %vm1633_vm7, %v5202_v22  ;;  %v1433_v53 = vmul.f32 1.442695, %v1411_v7  ;;  %v5470_v14 = vadd.f32 %v5216_v18, %v1321_v12  ;;  %v3637_v38 = vadd.f32 %v3636_v56, %v3635_v31  ;;  %v5479_v39 = vadd.f32 %v5218_v61, %v1321_v12 }
 0x206   :  { %v3700_v37 = vpop.f32.mrf.mxu0  ;;  %v3638_v42 = vpop.f32.mrf.mxu1  ;;  %v2621_v26 = vmul.f32 1.442695, %v2599_v3 }
 0x207   :  { %4263 = vpow2.f32 %v1433_v53  ;;  %v1412_v22 = vmin.f32 %v5470_v14, 20.0  ;;  %v3701_v20 = vadd.f32 %v3700_v37, %v3699_v28  ;;  %v2600_v8 = vmin.f32 %v5479_v39, 20.0 }
 0x208   :  { %3905 = vmatmul.mubr.msk.f32.gmra.mxu0 %vm1633_vm7, %v5200_v46  ;;  %v3702_v19 = vpop.f32.mrf.mxu0  ;;  %v3639_v27 = vpop.f32.mrf.mxu1  ;;  %vm1396_vm14 = vcmp.gt.f32.partialorder %v5470_v14, 20.0  ;;  %vm2584_vm3 = vcmp.gt.f32.partialorder %v5479_v39, 20.0 }
 0x209   :  { %3907 = vmatprep.mubr.msk.f32.mxu0 %vm1633_vm7, %v5206_v57  ;;  %v1435_v51 = vmul.f32 1.442695, %v1412_v22  ;;  %v3640_v1 = vadd.f32 %v3639_v27, %v3638_v42  ;;  %v1326_v46 = vadd.f32 %v3701_v20, %v3637_v38  ;;  %v2623_v54 = vmul.f32 1.442695, %v2600_v8 }
 0x20a   :  { %v3703_v0 = vpop.f32.mrf.mxu0  ;;  %v3641_v34 = vpop.f32.mrf.mxu1 }
 0x20b   :  { %4265 = vpow2.f32 %v1435_v51  ;;  %v3704_v57 = vadd.f32 %v3703_v0, %v3702_v19  ;;  %v5486_v55 = vadd.f32 %v5216_v18, %v1326_v46  ;;  %v5490_v48 = vadd.f32 %v5218_v61, %v1326_v46 }
 0x20c   :  { %3908 = vmatmul.mubr.msk.f32.gmra.mxu0 %vm1633_vm7, %v5204_v45  ;;  %v3705_v17 = vpop.f32.mrf.mxu0  ;;  %v3642_v36 = vpop.f32.mrf.mxu1  ;;  %4267 = vpow2.f32 %v2621_v26 }
 0x20d   :  { %3910 = vmatprep.mubr.msk.f32.mxu0 %vm1633_vm7, %v5210_v35  ;;  %v1329_v45 = vadd.f32 %v3704_v57, %v3640_v1  ;;  %v3643_v11 = vadd.f32 %v3642_v36, %v3641_v34  ;;  %v1413_v5 = vmin.f32 %v5486_v55, 20.0  ;;  %v2601_v32 = vmin.f32 %v5490_v48, 20.0 }
 0x20e   :  { %v3706_v13 = vpop.f32.mrf.mxu0  ;;  %v3644_v35 = vpop.f32.mrf.mxu1  ;;  %4269 = vpow2.f32 %v2623_v54  ;;  %vm1397_vm4 = vcmp.gt.f32.partialorder %v5486_v55, 20.0  ;;  %vm2585_vm6 = vcmp.gt.f32.partialorder %v5490_v48, 20.0 }
 0x20f   :  { %v5496_v59 = vadd.f32 %v5216_v18, %v1329_v45  ;;  %v3707_v4 = vadd.f32 %v3706_v13, %v3705_v17  ;;  %v5499_v33 = vadd.f32 %v5218_v61, %v1329_v45  ;;  %v1437_v29 = vmul.f32 1.442695, %v1413_v5 }
 0x210   :  { %3911 = vmatmul.mubr.msk.f32.gmra.mxu0 %vm1633_vm7, %v5208_v50  ;;  %v3708_v47 = vpop.f32.mrf.mxu0  ;;  %v3645_v10 = vpop.f32.mrf.mxu1  ;;  %v2625_v15 = vmul.f32 1.442695, %v2601_v32 }
 0x211   :  { %v1334_v23 = vadd.f32 %v3707_v4, %v3643_v11  ;;  %v1414_v50 = vmin.f32 %v5496_v59, 20.0  ;;  %v3646_v41 = vadd.f32 %v3645_v10, %v3644_v35  ;;  %v2602_v9 = vmin.f32 %v5499_v33, 20.0 }
 0x212   :  { %v3709_v44 = vpop.f32.mrf.mxu0  ;;  %v3647_v60 = vpop.f32.mrf.mxu1  ;;  %4271 = vpow2.f32 %v1437_v29  ;;  %vm1398_vm9 = vcmp.gt.f32.partialorder %v5496_v59, 20.0  ;;  %vm2586_vm11 = vcmp.gt.f32.partialorder %v5499_v33, 20.0 }
 0x213   :  { %v5504_v58 = vadd.f32 %v5216_v18, %v1334_v23  ;;  %v3710_v2 = vadd.f32 %v3709_v44, %v3708_v47  ;;  %v5510_v43 = vadd.f32 %v5218_v61, %v1334_v23  ;;  %v1439_v63 = vmul.f32 1.442695, %v1414_v50 }
 0x214   :  { %v5506_v62 = vpop.eup %4263  ;;  %v3711_v16 = vpop.f32.mrf.mxu0  ;;  %v2627_v28 = vmul.f32 1.442695, %v2602_v9 }
 0x215   :  { %v3648_v52 = vpop.f32.mrf.mxu1  ;;  %v1415_v30 = vmin.f32 %v5504_v58, 20.0  ;;  %v1337_v24 = vadd.f32 %v3710_v2, %v3646_v41  ;;  %v1507_v49 = vadd.f32 1.0, %v5506_v62  ;;  %v2603_v22 = vmin.f32 %v5510_v43, 20.0 }
 0x216   :  { %v3712_v40 = vpop.f32.mrf.mxu0  ;;  %v3649_v31 = vadd.f32 %v3648_v52, %v3647_v60  ;;  %v1510_v27 = vmul.f32 -0.5, %v5506_v62  ;;  %v1513_v45 = vand.u32 2147483647, %v5506_v62 }
 0x217   :  { %v3650_v25 = vpop.f32.mrf.mxu1  ;;  %v3713_v7 = vadd.f32 %v3712_v40, %v3711_v16  ;;  %v5517_v56 = vadd.f32 %v5216_v18, %v1337_v24  ;;  %v5520_v53 = vadd.f32 %v5218_v61, %v1337_v24  ;;  %4273 = vlog2.f32 %v1507_v49  ;;  %v5555_v49 = vld [vmem:[%s6529_s5 + $0x58] sm:$0xff] }
 0x218   :  { %v5514_v12 = vpop.eup %4265  ;;  %v3714_v38 = vpop.f32.mrf.mxu0  ;;  %4275 = vpow2.f32 %v2625_v15  ;;  %v1441_v3 = vmul.f32 1.442695, %v1415_v30  ;;  %v2629_v17 = vmul.f32 1.442695, %v2603_v22  ;;  %v1511_v23 = vadd.f32 1.0, %v1510_v27  ;;  %3913 = vmatprep.subr.mxu1 %v5555_v49 }
 0x219   :  { %v3651_v37 = vpop.f32.mrf.mxu1  ;;  %v1516_v42 = vadd.f32 1.0, %v5514_v12  ;;  %4277 = vpow2.f32 %v1439_v63  ;;  %v1416_v51 = vmin.f32 %v5517_v56, 20.0  ;;  %v2604_v1 = vmin.f32 %v5520_v53, 20.0  ;;  %v5534_v11 = vpop.eup %4267 }
 0x21a   :  { %v3715_v20 = vpop.f32.mrf.mxu0  ;;  %v1342_v46 = vadd.f32 %v3713_v7, %v3649_v31  ;;  %v3652_v0 = vadd.f32 %v3651_v37, %v3650_v25  ;;  %v1519_v13 = vmul.f32 -0.5, %v5514_v12  ;;  %v1522_v2 = vand.u32 2147483647, %v5514_v12 }
 0x21b   :  { %v3653_v19 = vpop.f32.mrf.mxu1  ;;  %4279 = vlog2.f32 %v1516_v42  ;;  %v3716_v34 = vadd.f32 %v3715_v20, %v3714_v38  ;;  %v1443_v10 = vmul.f32 1.442695, %v1416_v51  ;;  %v2631_v54 = vmul.f32 1.442695, %v2604_v1  ;;  %v5549_v15 = vpop.eup %4269 }
 0x21c   :  { %4281 = vpow2.f32 %v2627_v28  ;;  %v3717_v57 = vpop.f32.mrf.mxu0  ;;  %v5528_v36 = vadd.f32 %v5216_v18, %v1342_v46  ;;  %v5531_v8 = vadd.f32 %v5218_v61, %v1342_v46  ;;  %v2695_v52 = vadd.f32 1.0, %v5534_v11 }
 0x21d   :  { %v3654_v26 = vpop.f32.mrf.mxu1  ;;  %4283 = vpow2.f32 %v1441_v3  ;;  %v1345_v35 = vadd.f32 %v3716_v34, %v3652_v0  ;;  %v1520_v63 = vadd.f32 1.0, %v1519_v13  ;;  %vm5558_vm0 = vcmp.lt.f32.partialorder %v1513_v45, 0.0004427343 }
 0x21e   :  { %v3655_v5 = vadd.f32 %v3654_v26, %v3653_v19  ;;  %v3718_v4 = vpop.f32.mrf.mxu0  ;;  %v1417_v32 = vmin.f32 %v5528_v36, 20.0  ;;  %v2605_v50 = vmin.f32 %v5531_v8, 20.0  ;;  %4285 = vpow2.f32 %v2629_v17 }
 0x21f   :  { %v3656_v47 = vpop.f32.mrf.mxu1  ;;  %v5541_v41 = vadd.f32 %v5216_v18, %v1345_v35  ;;  %v5544_v44 = vadd.f32 %v5218_v61, %v1345_v35  ;;  %v3719_v60 = vadd.f32 %v3718_v4, %v3717_v57  ;;  %4287 = vpow2.f32 %v1443_v10  ;;  %v5563_v38 = vpop.eup %4271 }
 0x220   :  { %v3720_v29 = vpop.f32.mrf.mxu0  ;;  %v1445_v30 = vmul.f32 1.442695, %v1417_v32  ;;  %4289 = vpow2.f32 %v2631_v54  ;;  %v2633_v37 = vmul.f32 1.442695, %v2605_v50  ;;  %v1512_v22 = vmul.f32 %v5506_v62, %v1511_v23 }
 0x221   :  { %v3657_v9 = vpop.f32.mrf.mxu1  ;;  %v1418_v24 = vmin.f32 %v5541_v41, 20.0  ;;  %v1350_v40 = vadd.f32 %v3719_v60, %v3655_v5  ;;  %v2606_v31 = vmin.f32 %v5544_v44, 20.0  ;;  %4291 = vlog2.f32 %v2695_v52 }
 0x222   :  { %v3658_v16 = vadd.f32 %v3657_v9, %v3656_v47  ;;  %v3721_v25 = vpop.f32.mrf.mxu0  ;;  %v1521_v1 = vmul.f32 %v5514_v12, %v1520_v63  ;;  %4293 = vpow2.f32 %v1445_v30  ;;  %vm5585_vm15 = vcmp.lt.f32.partialorder %v1522_v2, 0.0004427343 }
 0x223   :  { %v3722_v7 = vadd.f32 %v3721_v25, %v3720_v29  ;;  %v5566_v42 = vadd.f32 %v5216_v18, %v1350_v40  ;;  %v1447_v20 = vmul.f32 1.442695, %v1418_v24  ;;  %v5570_v19 = vadd.f32 %v5218_v61, %v1350_v40  ;;  %v1366_v24 = vld [vmem:[%s6529_s5 + $0x50] sm:$0xff] }
 0x224   :  { %v4274_v3 = vpop.eup %4273  ;;  %v2635_v57 = vmul.f32 1.442695, %v2606_v31  ;;  %4295 = vpow2.f32 %v2633_v37  ;;  %v2698_v35 = vmul.f32 -0.5, %v5534_v11  ;;  %v2704_v32 = vadd.f32 1.0, %v5549_v15 }
 0x225   :  { %v1353_v27 = vadd.f32 %v3722_v7, %v3658_v16  ;;  %v5572_v51 = vpop.eup %4275  ;;  %v1419_v46 = vmin.f32 %v5566_v42, 20.0  ;;  %v1509_v0 = vmul.f32 0.6931472, %v4274_v3  ;;  %v2607_v62 = vmin.f32 %v5570_v19, 20.0  ;;  %v1365_v7 = vld [vmem:[%s6529_s5 + $0x48] sm:$0xff] }
 0x226   :  { %v5576_v34 = vpop.eup %4277  ;;  %4297 = vpow2.f32 %v1447_v20  ;;  %v2699_v2 = vadd.f32 1.0, %v2698_v35  ;;  %v1525_v52 = vadd.f32 1.0, %v5563_v38  ;;  %v2707_v31 = vmul.f32 -0.5, %v5549_v15 }
 0x227   :  { %v5580_v26 = vadd.f32 %v5216_v18, %v1353_v27  ;;  %v5583_v17 = vadd.f32 %v5218_v61, %v1353_v27  ;;  %v1515_v12 = vsel %vm5558_vm0, %v1512_v22, %v1509_v0  ;;  %v1449_v18 = vmul.f32 1.442695, %v1419_v46  ;;  %v1364_v0 = vld [vmem:[%s6529_s5 + $0x40] sm:$0xff] }
 0x228   :  { %v4280_v45 = vpop.eup %4279  ;;  %v2637_v61 = vmul.f32 1.442695, %v2607_v62  ;;  %v1603_v54 = vsel %vm1395_vm13, %v5459_v21, %v1515_v12  ;;  %4299 = vpow2.f32 %v2635_v57  ;;  %v2701_v21 = vand.u32 2147483647, %v5534_v11 }
 0x229   :  { %v5592_v5 = vpop.eup %4281  ;;  %v1518_v4 = vmul.f32 0.6931472, %v4280_v45  ;;  %v1420_v47 = vmin.f32 %v5580_v26, 20.0  ;;  %v2608_v10 = vmin.f32 %v5583_v17, 20.0  ;;  %v3415_v60 = vadd.f32 -0.6931472, %v1603_v54 }
 0x22a   :  { %v5600_v23 = vpop.eup %4283  ;;  %4301 = vlog2.f32 %v2704_v32  ;;  %v2700_v25 = vmul.f32 %v5534_v11, %v2699_v2  ;;  %vm5627_vm1 = vcmp.lt.f32.partialorder %v2701_v21, 0.0004427343  ;;  %v1528_v22 = vmul.f32 -0.5, %v5563_v38 }
 0x22b   :  { %v1524_v50 = vsel %vm5585_vm15, %v1521_v1, %v1518_v4  ;;  %v1451_v9 = vmul.f32 1.442695, %v1420_v47  ;;  %4303 = vpow2.f32 %v1449_v18  ;;  %3866 = vmatprep.mubr.msk.f32.mxu1 %vm1633_vm7, %v3415_v60  ;;  %v5610_v63 = vpop.eup %4285  ;;  %v2639_v30 = vmul.f32 1.442695, %v2608_v10 }
 0x22c   :  { %v1604_v29 = vsel %vm1396_vm14, %v5470_v14, %v1524_v50  ;;  %4305 = vpow2.f32 %v2637_v61  ;;  %v2713_v14 = vadd.f32 1.0, %v5572_v51  ;;  %v5617_v40 = vpop.eup %4287  ;;  %v1534_v3 = vadd.f32 1.0, %v5576_v34 }
 0x22d   :  { %v3416_v16 = vadd.f32 -0.6931472, %v1604_v29  ;;  %4307 = vlog2.f32 %v1525_v52  ;;  %v5625_v28 = vpop.eup %4289  ;;  %v2716_v20 = vmul.f32 -0.5, %v5572_v51  ;;  %v2722_v27 = vadd.f32 1.0, %v5592_v5 }
 0x22e   :  { %4309 = vpow2.f32 %v1451_v9  ;;  %v4292_v11 = vpop.eup %4291  ;;  %v2708_v57 = vadd.f32 1.0, %v2707_v31  ;;  %v1531_v62 = vand.u32 2147483647, %v5563_v38  ;;  %v1537_v45 = vmul.f32 -0.5, %v5576_v34 }
 0x22f   :  { %3867 = vmatmul.mubr.msk.f32.vlgmr.msra.gmra.mxu1 %vm1633_vm7, %v3416_v16  ;;  %4311 = vlog2.f32 %v2713_v14  ;;  %v5636_v1 = vpop.eup %4293  ;;  %v2697_v46 = vmul.f32 0.6931472, %v4292_v11  ;;  %v1529_v35 = vadd.f32 1.0, %v1528_v22  ;;  %v2725_v4 = vmul.f32 -0.5, %v5592_v5 }
 0x230   :  { %3914 = vmatpush3.msra.mxu1 %v5555_v49  ;;  %4313 = vpow2.f32 %v2639_v30  ;;  %v2710_v49 = vand.u32 2147483647, %v5549_v15  ;;  %v1543_v18 = vadd.f32 1.0, %v5600_v23  ;;  %v2717_v54 = vadd.f32 1.0, %v2716_v20 }
 0x231   :  { %3915 = vmatprep.subr.mxu1 %v1366_v24  ;;  %4315 = vlog2.f32 %v1534_v3  ;;  %v5645_v13 = vpop.eup %4295  ;;  %v2703_v12 = vsel %vm5627_vm1, %v2700_v25, %v2697_v46  ;;  %v2719_v32 = vand.u32 2147483647, %v5572_v51  ;;  %v1540_v60 = vand.u32 2147483647, %v5576_v34 }
 0x232   :  { %3916 = vmatpush3.msra.mxu1 %v1366_v24  ;;  %4317 = vlog2.f32 %v2722_v27  ;;  %v2791_v61 = vsel %vm2583_vm2, %v5467_v6, %v2703_v12  ;;  %vm5657_vm5 = vcmp.lt.f32.partialorder %v2710_v49, 0.0004427343  ;;  %v1546_v29 = vmul.f32 -0.5, %v5600_v23 }
 0x233   :  { %3917 = vmatprep.subr.mxu1 %v1365_v7  ;;  %v5652_v47 = vpop.eup %4297  ;;  %v3504_v50 = vadd.f32 -0.6931472, %v2791_v61  ;;  %4319 = vlog2.f32 %v1543_v18  ;;  %v2709_v6 = vmul.f32 %v5549_v15, %v2708_v57  ;;  %vm5668_vm8 = vcmp.lt.f32.partialorder %v1531_v62, 0.0004427343 }
 0x234   :  { %3918 = vmatpush3.msra.mxu1 %v1365_v7  ;;  %v1538_v16 = vadd.f32 1.0, %v1537_v45  ;;  %v2731_v21 = vadd.f32 1.0, %v5610_v63  ;;  %v1530_v30 = vmul.f32 %v5563_v38, %v1529_v35  ;;  %v2726_v24 = vadd.f32 1.0, %v2725_v4 }
 0x235   :  { %3919 = vmatprep.subr.mxu1 %v1364_v0  ;;  %v5665_v9 = vpop.eup %4299  ;;  %2849 = vrot.lane.b32.xlu0 %v3504_v50, %s4412_s27  ;;  %v2728_v14 = vand.u32 2147483647, %v5592_v5  ;;  %v1552_v25 = vadd.f32 1.0, %v5617_v40  ;;  %v2718_v7 = vmul.f32 %v5572_v51, %v2717_v54  ;;  %vm5681_vm10 = vcmp.lt.f32.partialorder %v2719_v32, 0.0004427343 }
 0x236   :  { %3920 = vmatpush3.msra.mxu1 %v1364_v0  ;;  %4321 = vlog2.f32 %v2731_v21  ;;  %vm5688_vm12 = vcmp.lt.f32.partialorder %v1540_v60, 0.0004427343  ;;  %v1547_v3 = vadd.f32 1.0, %v1546_v29  ;;  %v1549_v11 = vand.u32 2147483647, %v5600_v23 }
 0x237   :  { %v4302_v52 = vpop.eup %4301  ;;  %4323 = vlog2.f32 %v1552_v25  ;;  %v1539_v20 = vmul.f32 %v5576_v34, %v1538_v16  ;;  %v2734_v27 = vmul.f32 -0.5, %v5610_v63  ;;  %v2740_v46 = vadd.f32 1.0, %v5625_v28 }
 0x238   :  { %v5678_v15 = vpop.eup %4303  ;;  %v2706_v31 = vmul.f32 0.6931472, %v4302_v52  ;;  %vm1399_vm13 = vcmp.gt.f32.partialorder %v5504_v58, 20.0  ;;  %v2727_v45 = vmul.f32 %v5592_v5, %v2726_v24  ;;  %vm5705_vm14 = vcmp.lt.f32.partialorder %v2728_v14, 0.0004427343 }
 0x239   :  { %v5686_v22 = vpop.eup %4305  ;;  %v1555_v4 = vmul.f32 -0.5, %v5617_v40  ;;  %4325 = vlog2.f32 %v2740_v46  ;;  %v1561_v18 = vadd.f32 1.0, %v5636_v1  ;;  %v1548_v54 = vmul.f32 %v5600_v23, %v1547_v3 }
 0x23a   :  { %v4308_v49 = vpop.eup %4307  ;;  %v2712_v51 = vsel %vm5657_vm5, %v2709_v6, %v2706_v31  ;;  %vm5716_vm0 = vcmp.lt.f32.partialorder %v1549_v11, 0.0004427343  ;;  %vm2587_vm15 = vcmp.gt.f32.partialorder %v5510_v43, 20.0  ;;  %v2735_v60 = vadd.f32 1.0, %v2734_v27 }
 0x23b   :  { %v5698_v0 = vpop.eup %4309  ;;  %v2792_v57 = vsel %vm2584_vm3, %v5479_v39, %v2712_v51  ;;  %v1527_v62 = vmul.f32 0.6931472, %v4308_v49  ;;  %v2737_v29 = vand.u32 2147483647, %v5610_v63  ;;  %4327 = vlog2.f32 %v1561_v18 }
 0x23c   :  { %v4312_v34 = vpop.eup %4311  ;;  %v3505_v35 = vadd.f32 -0.6931472, %v2792_v57  ;;  %vm1400_vm1 = vcmp.gt.f32.partialorder %v5517_v56, 20.0  ;;  %v1558_v21 = vand.u32 2147483647, %v5617_v40  ;;  %v2743_v24 = vmul.f32 -0.5, %v5625_v28 }
 0x23d   :  { %v5711_v61 = vpop.eup %4313  ;;  %v1533_v10 = vsel %vm5668_vm8, %v1530_v30, %v1527_v62  ;;  %v2715_v39 = vmul.f32 0.6931472, %v4312_v34  ;;  %v1556_v30 = vadd.f32 1.0, %v1555_v4  ;;  %v1564_v31 = vmul.f32 -0.5, %v5636_v1 }
 0x23e   :  { %v4316_v32 = vpop.eup %4315  ;;  %2851 = vrot.lane.b32.xlu1 %v3505_v35, %s4412_s27  ;;  %v1605_v50 = vsel %vm1397_vm4, %v5486_v55, %v1533_v10  ;;  %v2736_v11 = vmul.f32 %v5610_v63, %v2735_v60  ;;  %vm5745_vm2 = vcmp.lt.f32.partialorder %v2737_v29, 0.0004427343  ;;  %v2746_v46 = vand.u32 2147483647, %v5625_v28 }
 0x23f   :  { %v4318_v6 = vpop.eup %4317  ;;  %v3417_v23 = vadd.f32 -0.6931472, %v1605_v50  ;;  %v2721_v2 = vsel %vm5681_vm10, %v2718_v7, %v2715_v39  ;;  %v1536_v16 = vmul.f32 0.6931472, %v4316_v32  ;;  %v2749_v7 = vadd.f32 1.0, %v5645_v13 }
 0x240   :  { %v2793_v55 = vsel %vm2585_vm6, %v5490_v48, %v2721_v2  ;;  %v2724_v52 = vmul.f32 0.6931472, %v4318_v6  ;;  %v4320_v37 = vpop.eup %4319  ;;  %v1570_v57 = vadd.f32 1.0, %v5652_v47  ;;  %v1565_v12 = vadd.f32 1.0, %v1564_v31 }
 0x241   :  { %3869 = vmatprep.mubr.msk.f32.mxu1 %vm1633_vm7, %v3417_v23  ;;  %v3506_v14 = vadd.f32 -0.6931472, %v2793_v55  ;;  %v1542_v25 = vsel %vm5688_vm12, %v1539_v20, %v1536_v16  ;;  %v1545_v20 = vmul.f32 0.6931472, %v4320_v37  ;;  %4329 = vlog2.f32 %v2749_v7 }
 0x242   :  { %v1606_v3 = vsel %vm1398_vm9, %v5496_v59, %v1542_v25  ;;  %v2730_v48 = vsel %vm5705_vm14, %v2727_v45, %v2724_v52  ;;  %v2744_v59 = vadd.f32 1.0, %v2743_v24  ;;  %v1557_v45 = vmul.f32 %v5617_v40, %v1556_v30 }
 0x243   :  { %2853 = vrot.lane.b32.xlu0 %v3506_v14, %s4412_s27  ;;  %v3418_v38 = vadd.f32 -0.6931472, %v1606_v3  ;;  %v2794_v51 = vsel %vm2586_vm11, %v5499_v33, %v2730_v48  ;;  %v4322_v63 = vpop.eup %4321  ;;  %v1551_v62 = vsel %vm5716_vm0, %v1548_v54, %v1545_v20  ;;  %v1567_v34 = vand.u32 2147483647, %v5636_v1 }
 0x244   :  { %v3507_v27 = vadd.f32 -0.6931472, %v2794_v51  ;;  %v4324_v33 = vpop.eup %4323  ;;  %v1607_v35 = vsel %vm1399_vm13, %v5504_v58, %v1551_v62  ;;  %v2733_v4 = vmul.f32 0.6931472, %v4322_v63  ;;  %vm5764_vm3 = vcmp.lt.f32.partialorder %v1558_v21, 0.0004427343 }
 0x245   :  { %3870 = vmatmul.mubr.msk.f32.gmra.mxu1 %vm1633_vm7, %v3418_v38  ;;  %vm2588_vm4 = vcmp.gt.f32.partialorder %v5520_v53, 20.0  ;;  %v3419_v10 = vadd.f32 -0.6931472, %v1607_v35  ;;  %v1554_v39 = vmul.f32 0.6931472, %v4324_v33  ;;  %v2752_v40 = vmul.f32 -0.5, %v5645_v13 }
 0x246   :  { %2855 = vrot.lane.b32.xlu1 %v3507_v27, %s4412_s27  ;;  %4331 = vlog2.f32 %v1570_v57  ;;  %v2739_v54 = vsel %vm5745_vm2, %v2736_v11, %v2733_v4  ;;  %v2745_v5 = vmul.f32 %v5625_v28, %v2744_v59  ;;  %vm5773_vm5 = vcmp.lt.f32.partialorder %v2746_v46, 0.0004427343  ;;  %v4326_v50 = vpop.eup %4325 }
 0x247   :  { %v2758_v58 = vadd.f32 1.0, %v5665_v9  ;;  %3872 = vmatprep.mubr.msk.f32.mxu1 %vm1633_vm7, %v3419_v10  ;;  %v2795_v60 = vsel %vm2587_vm15, %v5510_v43, %v2739_v54  ;;  %v1560_v29 = vsel %vm5764_vm3, %v1557_v45, %v1554_v39  ;;  %v1566_v6 = vmul.f32 %v5636_v1, %v1565_v12 }
 0x248   :  { %vm5785_vm6 = vcmp.lt.f32.partialorder %v1567_v34, 0.0004427343  ;;  %v3508_v23 = vadd.f32 -0.6931472, %v2795_v60  ;;  %v1608_v2 = vsel %vm1400_vm1, %v5517_v56, %v1560_v29  ;;  %v2742_v16 = vmul.f32 0.6931472, %v4326_v50  ;;  %v4328_v21 = vpop.eup %4327 }
 0x249   :  { %4333 = vlog2.f32 %v2758_v58  ;;  %v3420_v55 = vadd.f32 -0.6931472, %v1608_v2  ;;  %v2753_v52 = vadd.f32 1.0, %v2752_v40  ;;  %v1573_v43 = vmul.f32 -0.5, %v5652_v47 }
 0x24a   :  { %v1579_v30 = vadd.f32 1.0, %v5678_v15  ;;  %vm1401_vm8 = vcmp.gt.f32.partialorder %v5528_v36, 20.0  ;;  %2857 = vrot.lane.b32.xlu0 %v3508_v23, %s4412_s27  ;;  %v2748_v1 = vsel %vm5773_vm5, %v2745_v5, %v2742_v16  ;;  %v1563_v24 = vmul.f32 0.6931472, %v4328_v21 }
 0x24b   :  { %v2755_v14 = vand.u32 2147483647, %v5645_v13  ;;  %3873 = vmatmul.mubr.msk.f32.gmra.mxu1 %vm1633_vm7, %v3420_v55  ;;  %v2796_v56 = vsel %vm2588_vm4, %v5520_v53, %v2748_v1  ;;  %v1576_v7 = vand.u32 2147483647, %v5652_v47  ;;  %v2761_v37 = vmul.f32 -0.5, %v5665_v9 }
 0x24c   :  { %4335 = vlog2.f32 %v1579_v30  ;;  %v3509_v25 = vadd.f32 -0.6931472, %v2796_v56  ;;  %v1569_v31 = vsel %vm5785_vm6, %v1566_v6, %v1563_v24  ;;  %v2754_v48 = vmul.f32 %v5645_v13, %v2753_v52 }
 0x24d   :  { %v1609_v3 = vsel %vm1401_vm8, %v5528_v36, %v1569_v31  ;;  %v1574_v11 = vadd.f32 1.0, %v1573_v43  ;;  %v2767_v49 = vadd.f32 1.0, %v5686_v22  ;;  %vm5811_vm9 = vcmp.lt.f32.partialorder %v2755_v14, 0.0004427343 }
 0x24e   :  { %v4330_v38 = vpop.eup %4329  ;;  %2859 = vrot.lane.b32.xlu1 %v3509_v25, %s4412_s27  ;;  %v3421_v53 = vadd.f32 -0.6931472, %v1609_v3  ;;  %v1582_v27 = vmul.f32 -0.5, %v5678_v15  ;;  %v1588_v59 = vadd.f32 1.0, %v5698_v0  ;;  %vm2589_vm10 = vcmp.gt.f32.partialorder %v5531_v8, 20.0 }
 0x24f   :  { %v2751_v36 = vmul.f32 0.6931472, %v4330_v38  ;;  %4337 = vlog2.f32 %v2767_v49  ;;  %v2762_v13 = vadd.f32 1.0, %v2761_v37  ;;  %v1575_v57 = vmul.f32 %v5652_v47, %v1574_v11 }
 0x250   :  { %3875 = vmatprep.mubr.msk.f32.mxu1 %vm1633_vm7, %v3421_v53  ;;  %4339 = vlog2.f32 %v1588_v59  ;;  %v2764_v63 = vand.u32 2147483647, %v5665_v9  ;;  %v2776_v62 = vadd.f32 1.0, %v5711_v61  ;;  %vm1402_vm11 = vcmp.gt.f32.partialorder %v5541_v41, 20.0 }
 0x251   :  { %v2757_v46 = vsel %vm5811_vm9, %v2754_v48, %v2751_v36  ;;  %vm5827_vm12 = vcmp.lt.f32.partialorder %v1576_v7, 0.0004427343  ;;  %v1583_v4 = vadd.f32 1.0, %v1582_v27  ;;  %v2770_v10 = vmul.f32 -0.5, %v5686_v22 }
 0x252   :  { %v2797_v33 = vsel %vm2589_vm10, %v5531_v8, %v2757_v46  ;;  %4341 = vlog2.f32 %v2776_v62  ;;  %v2763_v39 = vmul.f32 %v5665_v9, %v2762_v13  ;;  %v1585_v40 = vand.u32 2147483647, %v5678_v15 }
 0x253   :  { %v4332_v45 = vpop.eup %4331  ;;  %v3510_v18 = vadd.f32 -0.6931472, %v2797_v33  ;;  %v1591_v8 = vmul.f32 -0.5, %v5698_v0  ;;  %vm5840_vm13 = vcmp.lt.f32.partialorder %v2764_v63, 0.0004427343  ;;  %vm2590_vm14 = vcmp.gt.f32.partialorder %v5544_v44, 20.0 }
 0x254   :  { %v2838_v51 = vpop.permute.xlu1 %2837  ;;  %v1572_v47 = vmul.f32 0.6931472, %v4332_v45  ;;  %v1584_v29 = vmul.f32 %v5678_v15, %v1583_v4  ;;  %v2771_v6 = vadd.f32 1.0, %v2770_v10  ;;  %v2779_v28 = vmul.f32 -0.5, %v5711_v61 }
 0x255   :  { %3953 = vmatprep.mubr.msk.f32.mxu0 %vm1633_vm7, %v2838_v51  ;;  %2861 = vrot.lane.b32.xlu0 %v3510_v18, %s4412_s27  ;;  %vm5853_vm0 = vcmp.lt.f32.partialorder %v1585_v40, 0.0004427343  ;;  %v1592_v21 = vadd.f32 1.0, %v1591_v8  ;;  %vm1403_vm15 = vcmp.gt.f32.partialorder %v5566_v42, 20.0  ;;  %v1594_v43 = vand.u32 2147483647, %v5698_v0 }
 0x256   :  { %v4334_v54 = vpop.eup %4333  ;;  %v1578_v5 = vsel %vm5827_vm12, %v1575_v57, %v1572_v47  ;;  %vm2591_vm1 = vcmp.gt.f32.partialorder %v5570_v19, 20.0  ;;  %v2772_v24 = vmul.f32 %v5686_v22, %v2771_v6  ;;  %v2780_v14 = vadd.f32 1.0, %v2779_v28  ;;  %v6609_v18 = vld [vmem:[#allocation5_spill] sm:$0xff] }
 0x257   :  { %v2842_v34 = vpop.permute.xlu0 %2841  ;;  %v1610_v50 = vsel %vm1402_vm11, %v5541_v41, %v1578_v5  ;;  %v2760_v9 = vmul.f32 0.6931472, %v4334_v54  ;;  %v2773_v41 = vand.u32 2147483647, %v5686_v22  ;;  %v1593_v31 = vmul.f32 %v5698_v0, %v1592_v21 }
 0x258   :  { %v2840_v12 = vpop.permute.xlu1 %2839  ;;  %v3422_v60 = vadd.f32 -0.6931472, %v1610_v50  ;;  %v2782_v7 = vand.u32 2147483647, %v5711_v61  ;;  %vm1595_vm3 = vcmp.lt.f32.partialorder %v1594_v43, 0.0004427343  ;;  %v2781_v49 = vmul.f32 %v5711_v61, %v2780_v14 }
 0x259   :  { %3954 = vmatmul.mubr.msk.f32.vlgmr.msra.gmra.mxu0 %vm1633_vm7, %v2840_v12  ;;  %v4336_v23 = vpop.eup %4335  ;;  %v2766_v2 = vsel %vm5840_vm13, %v2763_v39, %v2760_v9  ;;  %vm5869_vm2 = vcmp.lt.f32.partialorder %v2773_v41, 0.0004427343  ;;  %vm1404_vm4 = vcmp.gt.f32.partialorder %v5580_v26, 20.0  ;;  %vm2592_vm6 = vcmp.gt.f32.partialorder %v5583_v17, 20.0 }
 0x25a   :  { %3956 = vmatprep.mubr.msk.f32.mxu0 %vm1633_vm7, %v2842_v34  ;;  %3876 = vmatmul.mubr.msk.f32.gmra.mxu1 %vm1633_vm7, %v3422_v60  ;;  %v2798_v15 = vsel %vm2590_vm14, %v5544_v44, %v2766_v2  ;;  %v1581_v52 = vmul.f32 0.6931472, %v4336_v23  ;;  %vm2783_vm5 = vcmp.lt.f32.partialorder %v2782_v7, 0.0004427343  ;;  %vm2525_vm8 = vcmask 523520  }
 0x25b   :  { %v3511_v30 = vadd.f32 -0.6931472, %v2798_v15 }
 0x25c   :  { %v2844_v58 = vpop.permute.xlu1 %2843  ;;  %v1587_v1 = vsel %vm5853_vm0, %v1584_v29, %v1581_v52  ;;  %v4338_v56 = vpop.eup %4337 }
 0x25d   :  { %3957 = vmatmul.mubr.msk.f32.gmra.mxu0 %vm1633_vm7, %v2844_v58  ;;  %2863 = vrot.lane.b32.xlu1 %v3511_v30, %s4412_s27  ;;  %v1611_v25 = vsel %vm1403_vm15, %v5566_v42, %v1587_v1  ;;  %v4340_v37 = vpop.eup %4339  ;;  %v2769_v48 = vmul.f32 0.6931472, %v4338_v56 }
 0x25e   :  { %v2846_v55 = vpop.permute.xlu0 %2845  ;;  %v3423_v3 = vadd.f32 -0.6931472, %v1611_v25  ;;  %v1590_v22 = vmul.f32 0.6931472, %v4340_v37 }
 0x25f   :  { %3959 = vmatprep.mubr.msk.f32.mxu0 %vm1633_vm7, %v2846_v55  ;;  %v2775_v42 = vsel %vm5869_vm2, %v2772_v24, %v2769_v48  ;;  %v4342_v38 = vpop.eup %4341 }
 0x260   :  { %3878 = vmatprep.mubr.msk.f32.mxu1 %vm1633_vm7, %v3423_v3  ;;  %v2799_v0 = vsel %vm2591_vm1, %v5570_v19, %v2775_v42  ;;  %v1596_v51 = vsel %vm1595_vm3, %v1593_v31, %v1590_v22  ;;  %v2778_v27 = vmul.f32 0.6931472, %v4342_v38  ;;  %v5893_v19 = vld [vmem:[%s6528_s6] sm:$0xf] }
 0x261   :  { %v3512_v53 = vadd.f32 -0.6931472, %v2799_v0  ;;  %v1612_v20 = vsel %vm1404_vm4, %v5580_v26, %v1596_v51  ;;  %v6608_v26 = vld [vmem:[#allocation4_spill] sm:$0xff]  ;;  %v5922_v47 = vrot.slane %v5893_v19, %v6609_v18 }
 0x262   :  { %v3424_v59 = vadd.f32 -0.6931472, %v1612_v20  ;;  %v2784_v36 = vsel %vm2783_vm5, %v2781_v49, %v2778_v27  ;;  %v5897_v46 = vrot.slane %v5893_v19, %v6608_v26 }
 0x263   :  { %v2848_v11 = vpop.permute.xlu1 %2847  ;;  %2865 = vrot.lane.b32.xlu0 %v3512_v53, %s4412_s27  ;;  %v2800_v61 = vsel %vm2592_vm6, %v5583_v17, %v2784_v36 }
 0x264   :  { %3960 = vmatmul.mubr.msk.f32.gmra.mxu0 %vm1633_vm7, %v2848_v11  ;;  %3879 = vmatmul.mubr.msk.f32.gmra.mxu1 %vm1633_vm7, %v3424_v59  ;;  %v3513_v13 = vadd.f32 -0.6931472, %v2800_v61 }
 0x266   :  { %2867 = vrot.lane.b32.xlu1 %v3513_v13, %s4412_s27 }
 0x29f   :  { %v3859_v57 = vpop.f32.mrf.mxu0 }
 0x2a0   :  { %v1754_v63 = vadd.f32 %v3859_v57, %v5897_v46 }
 0x2a1   :  { %v1748_v62 = vpop.f32.mrf.mxu0 }
 0x2a2   :  { %2462 = vst.msk [vmem:[%s6530_s7 + $0x8] sm:$0xff] %vm1633_vm7, %v1754_v63  ;;  %v1749_v17 = vadd.f32 %v1748_v62, %v5897_v46 }
 0x2a4   :  { %2461 = vst.msk [vmem:[%s6530_s7] sm:$0xff] %vm1633_vm7, %v1749_v17 }
 0x2a7   :  { %v2850_v35 = vpop.permute.xlu0 %2849 }
 0x2a8   :  { %v3862_v45 = vpop.f32.mrf.mxu0  ;;  %3962 = vmatprep.mubr.msk.f32.mxu0 %vm1633_vm7, %v2850_v35 }
 0x2a9   :  { %v1764_v12 = vadd.f32 %v3862_v45, %v5897_v46 }
 0x2aa   :  { %v1758_v34 = vpop.f32.mrf.mxu0 }
 0x2ab   :  { %2464 = vst.msk [vmem:[%s6530_s7 + $0x18] sm:$0xff] %vm1633_vm7, %v1764_v12  ;;  %v1759_v33 = vadd.f32 %v1758_v34, %v5897_v46 }
 0x2ad   :  { %2463 = vst.msk [vmem:[%s6530_s7 + $0x10] sm:$0xff] %vm1633_vm7, %v1759_v33  ;;  %v6020_v33 = vld [vmem:[%s6528_s6 + $0x4] sm:$0xf] }
 0x2ae   :  { %v6024_v35 = vrot.slane %v6020_v33, %v6608_v26 }
 0x2b0   :  { %v3865_v4 = vpop.f32.mrf.mxu0  ;;  %v2852_v54 = vpop.permute.xlu1 %2851 }
 0x2b1   :  { %v1774_v10 = vadd.f32 %v3865_v4, %v5897_v46  ;;  %3963 = vmatmul.mubr.msk.f32.gmra.mxu0 %vm1633_vm7, %v2852_v54 }
 0x2b2   :  { %v1768_v39 = vpop.f32.mrf.mxu0 }
 0x2b3   :  { %2466 = vst.msk [vmem:[%s6530_s7 + $0x28] sm:$0xff] %vm1633_vm7, %v1774_v10  ;;  %v1769_v40 = vadd.f32 %v1768_v39, %v5897_v46 }
 0x2b4   :  { %v3891_v8 = vpop.f32.mrf.mxu0 }
 0x2b5   :  { %2465 = vst.msk [vmem:[%s6530_s7 + $0x20] sm:$0xff] %vm1633_vm7, %v1769_v40  ;;  %v1951_v5 = vadd.f32 %v3891_v8, %v5922_v47  ;;  %v2854_v60 = vpop.permute.xlu0 %2853 }
 0x2b6   :  { %v1945_v32 = vpop.f32.mrf.mxu0  ;;  %3965 = vmatprep.mubr.msk.f32.mxu0 %vm1633_vm7, %v2854_v60 }
 0x2b7   :  { %v1946_v58 = vadd.f32 %v1945_v32, %v5922_v47  ;;  %2479 = vrot.lane.b32.xlu1 %v1951_v5, %s4411_s4 }
 0x2b8   :  { %v3894_v50 = vpop.f32.mrf.mxu0  ;;  %v2856_v23 = vpop.permute.xlu1 %2855 }
 0x2b9   :  { %v1961_v9 = vadd.f32 %v3894_v50, %v5922_v47  ;;  %3921 = vmatprep.mubr.msk.f32.mxu1 %vm1633_vm7, %v1946_v58  ;;  %2477 = vrot.lane.b32.xlu0 %v1946_v58, %s4411_s4 }
 0x2ba   :  { %v1955_v29 = vpop.f32.mrf.mxu0  ;;  %3922 = vmatmul.mubr.msk.f32.vlgmr.msra.gmra.mxu1 %vm1633_vm7, %v1951_v5  ;;  %3966 = vmatmul.mubr.msk.f32.gmra.mxu0 %vm1633_vm7, %v2856_v23 }
 0x2bb   :  { %v1956_v6 = vadd.f32 %v1955_v29, %v5922_v47  ;;  %2483 = vrot.lane.b32.xlu1 %v1961_v9, %s4411_s4 }
 0x2bc   :  { %v3897_v28 = vpop.f32.mrf.mxu0  ;;  %v2858_v52 = vpop.permute.xlu0 %2857 }
 0x2bd   :  { %v1971_v2 = vadd.f32 %v3897_v28, %v5922_v47  ;;  %3924 = vmatprep.mubr.msk.f32.mxu1 %vm1633_vm7, %v1956_v6  ;;  %2481 = vrot.lane.b32.xlu0 %v1956_v6, %s4411_s4 }
 0x2be   :  { %v1965_v16 = vpop.f32.mrf.mxu0  ;;  %3925 = vmatmul.mubr.msk.f32.gmra.mxu1 %vm1633_vm7, %v1961_v9  ;;  %3968 = vmatprep.mubr.msk.f32.mxu0 %vm1633_vm7, %v2858_v52  ;;  %v3496_v52 = vld [vmem:[%s6529_s5 + $0x98] sm:$0xff] }
 0x2bf   :  { %v1966_v41 = vadd.f32 %v1965_v16, %v5922_v47  ;;  %2487 = vrot.lane.b32.xlu1 %v1971_v2, %s4411_s4  ;;  %3977 = vmatprep.subr.mxu1 %v3496_v52 }
 0x2c0   :  { %v3900_v21 = vpop.f32.mrf.mxu0  ;;  %v2860_v14 = vpop.permute.xlu1 %2859  ;;  %3978 = vmatpush3.msra.mxu1 %v3496_v52 }
 0x2c1   :  { %v1981_v55 = vadd.f32 %v3900_v21, %v5922_v47  ;;  %3927 = vmatprep.mubr.msk.f32.mxu1 %vm1633_vm7, %v1966_v41  ;;  %2485 = vrot.lane.b32.xlu0 %v1966_v41, %s4411_s4 }
 0x2c2   :  { %v1975_v15 = vpop.f32.mrf.mxu0  ;;  %3928 = vmatmul.mubr.msk.f32.gmra.mxu1 %vm1633_vm7, %v1971_v2  ;;  %3969 = vmatmul.mubr.msk.f32.gmra.mxu0 %vm1633_vm7, %v2860_v14 }
 0x2c3   :  { %v1976_v43 = vadd.f32 %v1975_v15, %v5922_v47  ;;  %2491 = vrot.lane.b32.xlu1 %v1981_v55, %s4411_s4 }
 0x2c4   :  { %v3903_v30 = vpop.f32.mrf.mxu0 }
 0x2c5   :  { %v1991_v1 = vadd.f32 %v3903_v30, %v5922_v47  ;;  %3930 = vmatprep.mubr.msk.f32.mxu1 %vm1633_vm7, %v1976_v43  ;;  %2489 = vrot.lane.b32.xlu0 %v1976_v43, %s4411_s4  ;;  %v3495_v30 = vld [vmem:[%s6529_s5 + $0x90] sm:$0xff] }
 0x2c6   :  { %v1985_v24 = vpop.f32.mrf.mxu0  ;;  %3931 = vmatmul.mubr.msk.f32.gmra.mxu1 %vm1633_vm7, %v1981_v55  ;;  %3979 = vmatprep.subr.mxu1 %v3495_v30 }
 0x2c7   :  { %v1986_v56 = vadd.f32 %v1985_v24, %v5922_v47  ;;  %2495 = vrot.lane.b32.xlu1 %v1991_v1, %s4411_s4  ;;  %v2862_v48 = vpop.permute.xlu0 %2861  ;;  %3980 = vmatpush3.msra.mxu1 %v3495_v30 }
 0x2c8   :  { %v3906_v25 = vpop.f32.mrf.mxu0  ;;  %3971 = vmatprep.mubr.msk.f32.mxu0 %vm1633_vm7, %v2862_v48 }
 0x2c9   :  { %v2001_v44 = vadd.f32 %v3906_v25, %v5922_v47  ;;  %3933 = vmatprep.mubr.msk.f32.mxu1 %vm1633_vm7, %v1986_v56  ;;  %2493 = vrot.lane.b32.xlu0 %v1986_v56, %s4411_s4  ;;  %v3494_v25 = vld [vmem:[%s6529_s5 + $0x88] sm:$0xff] }
 0x2ca   :  { %v1995_v31 = vpop.f32.mrf.mxu0  ;;  %3934 = vmatmul.mubr.msk.f32.gmra.mxu1 %vm1633_vm7, %v1991_v1  ;;  %3981 = vmatprep.subr.mxu1 %v3494_v25 }
 0x2cb   :  { %v1996_v7 = vadd.f32 %v1995_v31, %v5922_v47  ;;  %2499 = vrot.lane.b32.xlu1 %v2001_v44, %s4411_s4  ;;  %3982 = vmatpush3.msra.mxu1 %v3494_v25  ;;  %v3493_v31 = vld [vmem:[%s6529_s5 + $0x80] sm:$0xff] }
 0x2cc   :  { %v3909_v37 = vpop.f32.mrf.mxu0  ;;  %3983 = vmatprep.subr.mxu1 %v3493_v31 }
 0x2cd   :  { %v2011_v3 = vadd.f32 %v3909_v37, %v5922_v47  ;;  %3936 = vmatprep.mubr.msk.f32.mxu1 %vm1633_vm7, %v1996_v7  ;;  %2497 = vrot.lane.b32.xlu0 %v1996_v7, %s4411_s4 }
 0x2ce   :  { %v2005_v22 = vpop.f32.mrf.mxu0  ;;  %3937 = vmatmul.mubr.msk.f32.gmra.mxu1 %vm1633_vm7, %v2001_v44 }
 0x2cf   :  { %v2006_v11 = vadd.f32 %v2005_v22, %v5922_v47  ;;  %2503 = vrot.lane.b32.xlu1 %v2011_v3, %s4411_s4  ;;  %v2864_v51 = vpop.permute.xlu1 %2863  ;;  %3984 = vmatpush3.msra.mxu1 %v3493_v31 }
 0x2d0   :  { %v3912_v42 = vpop.f32.mrf.mxu0  ;;  %3972 = vmatmul.mubr.msk.f32.gmra.mxu0 %vm1633_vm7, %v2864_v51 }
 0x2d1   :  { %v2021_v49 = vadd.f32 %v3912_v42, %v5922_v47  ;;  %3939 = vmatprep.mubr.msk.f32.mxu1 %vm1633_vm7, %v2006_v11  ;;  %2501 = vrot.lane.b32.xlu0 %v2006_v11, %s4411_s4 }
 0x2d2   :  { %v2015_v38 = vpop.f32.mrf.mxu0  ;;  %3940 = vmatmul.mubr.msk.f32.gmra.mxu1 %vm1633_vm7, %v2011_v3 }
 0x2d3   :  { %v2016_v0 = vadd.f32 %v2015_v38, %v5922_v47  ;;  %2507 = vrot.lane.b32.xlu1 %v2021_v49, %s4411_s4 }
 0x2d5   :  { %3942 = vmatprep.mubr.msk.f32.mxu1 %vm1633_vm7, %v2016_v0  ;;  %2505 = vrot.lane.b32.xlu0 %v2016_v0, %s4411_s4  ;;  %v2866_v53 = vpop.permute.xlu0 %2865 }
 0x2d6   :  { %3943 = vmatmul.mubr.msk.f32.gmra.mxu1 %vm1633_vm7, %v2021_v49  ;;  %3974 = vmatprep.mubr.msk.f32.mxu0 %vm1633_vm7, %v2866_v53  ;;  %v6610_v49 = vld [vmem:[#allocation2_spill] sm:$0xff] }
 0x2d7   :  { %v6611_v38 = vsub.s32 3, %v6610_v49 }
 0x2d8   :  { %v2868_v20 = vpop.permute.xlu1 %2867 }
 0x2d9   :  { %3975 = vmatmul.mubr.msk.f32.gmra.mxu0 %vm1633_vm7, %v2868_v20  ;;  %v6160_v0 = vrot.slane %v5893_v19, %v6611_v38 }
 0x2ef   :  { %v3868_v27 = vpop.f32.mrf.mxu1 }
 0x2f0   :  { %v1784_v59 = vadd.f32 %v3868_v27, %v5897_v46 }
 0x2f1   :  { %v1778_v36 = vpop.f32.mrf.mxu1 }
 0x2f2   :  { %2468 = vst.msk [vmem:[%s6530_s7 + $0x38] sm:$0xff] %vm1633_vm7, %v1784_v59  ;;  %v1779_v61 = vadd.f32 %v1778_v36, %v5897_v46 }
 0x2f4   :  { %2467 = vst.msk [vmem:[%s6530_s7 + $0x30] sm:$0xff] %vm1633_vm7, %v1779_v61 }
 0x305   :  { %v3871_v13 = vpop.f32.mrf.mxu1 }
 0x306   :  { %v1794_v57 = vadd.f32 %v3871_v13, %v5897_v46 }
 0x307   :  { %v1788_v63 = vpop.f32.mrf.mxu1 }
 0x308   :  { %2470 = vst.msk [vmem:[%s6530_s7 + $0x48] sm:$0xff] %vm1633_vm7, %v1794_v57  ;;  %v1789_v62 = vadd.f32 %v1788_v63, %v5897_v46 }
 0x30a   :  { %2469 = vst.msk [vmem:[%s6530_s7 + $0x40] sm:$0xff] %vm1633_vm7, %v1789_v62 }
 0x30b   :  { %v3874_v17 = vpop.f32.mrf.mxu1 }
 0x30c   :  { %v1804_v45 = vadd.f32 %v3874_v17, %v5897_v46 }
 0x30d   :  { %v1798_v12 = vpop.f32.mrf.mxu1 }
 0x30e   :  { %2472 = vst.msk [vmem:[%s6530_s7 + $0x58] sm:$0xff] %vm1633_vm7, %v1804_v45  ;;  %v1799_v34 = vadd.f32 %v1798_v12, %v5897_v46 }
 0x310   :  { %2471 = vst.msk [vmem:[%s6530_s7 + $0x50] sm:$0xff] %vm1633_vm7, %v1799_v34 }
 0x319   :  { %v3955_v4 = vpop.f32.mrf.mxu0 }
 0x31a   :  { %v2973_v47 = vadd.f32 %v3955_v4, %v6024_v35  ;;  %v3877_v54 = vpop.f32.mrf.mxu1 }
 0x31b   :  { %v2967_v10 = vpop.f32.mrf.mxu0  ;;  %v1814_v32 = vadd.f32 %v3877_v54, %v5897_v46 }
 0x31c   :  { %3547 = vst.msk [vmem:[%s6530_s7 + $0x88] sm:$0xff] %vm1633_vm7, %v2973_v47  ;;  %v2968_v39 = vadd.f32 %v2967_v10, %v6024_v35  ;;  %v1808_v58 = vpop.f32.mrf.mxu1 }
 0x31d   :  { %v3958_v40 = vpop.f32.mrf.mxu0  ;;  %2474 = vst.msk [vmem:[%s6530_s7 + $0x68] sm:$0xff] %vm1633_vm7, %v1814_v32  ;;  %v1809_v50 = vadd.f32 %v1808_v58, %v5897_v46 }
 0x31e   :  { %3546 = vst.msk [vmem:[%s6530_s7 + $0x80] sm:$0xff] %vm1633_vm7, %v2968_v39  ;;  %v2983_v26 = vadd.f32 %v3958_v40, %v6024_v35 }
 0x31f   :  { %v2977_v8 = vpop.f32.mrf.mxu0  ;;  %2473 = vst.msk [vmem:[%s6530_s7 + $0x60] sm:$0xff] %vm1633_vm7, %v1809_v50 }
 0x320   :  { %3549 = vst.msk [vmem:[%s6530_s7 + $0x98] sm:$0xff] %vm1633_vm7, %v2983_v26  ;;  %v2978_v5 = vadd.f32 %v2977_v8, %v6024_v35 }
 0x322   :  { %3548 = vst.msk [vmem:[%s6530_s7 + $0x90] sm:$0xff] %vm1633_vm7, %v2978_v5 }
 0x324   :  { %v3961_v9 = vpop.f32.mrf.mxu0  ;;  %v3880_v23 = vpop.f32.mrf.mxu1 }
 0x325   :  { %v2993_v60 = vadd.f32 %v3961_v9, %v6024_v35  ;;  %v1824_v16 = vadd.f32 %v3880_v23, %v5897_v46 }
 0x326   :  { %v2987_v29 = vpop.f32.mrf.mxu0  ;;  %v1818_v41 = vpop.f32.mrf.mxu1 }
 0x327   :  { %3551 = vst.msk [vmem:[%s6530_s7 + $0xa8] sm:$0xff] %vm1633_vm7, %v2993_v60  ;;  %v2988_v6 = vadd.f32 %v2987_v29, %v6024_v35  ;;  %2476 = vst.msk [vmem:[%s6530_s7 + $0x78] sm:$0xff] %vm1633_vm7, %v1824_v16  ;;  %v1819_v55 = vadd.f32 %v1818_v41, %v5897_v46 }
 0x329   :  { %v2480_v28 = vpop.permute.xlu1 %2479  ;;  %3550 = vst.msk [vmem:[%s6530_s7 + $0xa0] sm:$0xff] %vm1633_vm7, %v2988_v6  ;;  %2475 = vst.msk [vmem:[%s6530_s7 + $0x70] sm:$0xff] %vm1633_vm7, %v1819_v55 }
 0x32a   :  { %2527 = vst.msk [vmem:[%s6530_s7 + $0x8] sm:$0xff] %vm2525_vm8, %v2480_v28 }
 0x32b   :  { %v2478_v2 = vpop.permute.xlu0 %2477 }
 0x32c   :  { %2526 = vst.msk [vmem:[%s6530_s7] sm:$0xff] %vm2525_vm8, %v2478_v2 }
 0x32d   :  { %v2484_v21 = vpop.permute.xlu1 %2483 }
 0x32e   :  { %2529 = vst.msk [vmem:[%s6530_s7 + $0x18] sm:$0xff] %vm2525_vm8, %v2484_v21 }
 0x32f   :  { %v2482_v15 = vpop.permute.xlu0 %2481 }
 0x330   :  { %2528 = vst.msk [vmem:[%s6530_s7 + $0x10] sm:$0xff] %vm2525_vm8, %v2482_v15 }
 0x331   :  { %v2488_v46 = vpop.permute.xlu1 %2487 }
 0x332   :  { %2531 = vst.msk [vmem:[%s6530_s7 + $0x28] sm:$0xff] %vm2525_vm8, %v2488_v46 }
 0x333   :  { %v2486_v43 = vpop.permute.xlu0 %2485 }
 0x334   :  { %2530 = vst.msk [vmem:[%s6530_s7 + $0x20] sm:$0xff] %vm2525_vm8, %v2486_v43 }
 0x335   :  { %v2492_v1 = vpop.permute.xlu1 %2491 }
 0x336   :  { %2533 = vst.msk [vmem:[%s6530_s7 + $0x38] sm:$0xff] %vm2525_vm8, %v2492_v1 }
 0x337   :  { %v2490_v24 = vpop.permute.xlu0 %2489 }
 0x338   :  { %2532 = vst.msk [vmem:[%s6530_s7 + $0x30] sm:$0xff] %vm2525_vm8, %v2490_v24 }
 0x339   :  { %v2496_v14 = vpop.permute.xlu1 %2495 }
 0x33a   :  { %2535 = vst.msk [vmem:[%s6530_s7 + $0x48] sm:$0xff] %vm2525_vm8, %v2496_v14 }
 0x33b   :  { %v2494_v56 = vpop.permute.xlu0 %2493 }
 0x33c   :  { %2534 = vst.msk [vmem:[%s6530_s7 + $0x40] sm:$0xff] %vm2525_vm8, %v2494_v56 }
 0x33d   :  { %v2500_v44 = vpop.permute.xlu1 %2499 }
 0x33e   :  { %2537 = vst.msk [vmem:[%s6530_s7 + $0x58] sm:$0xff] %vm2525_vm8, %v2500_v44 }
 0x33f   :  { %v2498_v7 = vpop.permute.xlu0 %2497 }
 0x340   :  { %2536 = vst.msk [vmem:[%s6530_s7 + $0x50] sm:$0xff] %vm2525_vm8, %v2498_v7 }
 0x341   :  { %v2504_v37 = vpop.permute.xlu1 %2503 }
 0x342   :  { %2539 = vst.msk [vmem:[%s6530_s7 + $0x68] sm:$0xff] %vm2525_vm8, %v2504_v37 }
 0x343   :  { %v2502_v3 = vpop.permute.xlu0 %2501 }
 0x344   :  { %2538 = vst.msk [vmem:[%s6530_s7 + $0x60] sm:$0xff] %vm2525_vm8, %v2502_v3 }
 0x345   :  { %v2508_v48 = vpop.permute.xlu1 %2507 }
 0x346   :  { %2541 = vst.msk [vmem:[%s6530_s7 + $0x78] sm:$0xff] %vm2525_vm8, %v2508_v48 }
 0x347   :  { %v2506_v22 = vpop.permute.xlu0 %2505 }
 0x348   :  { %2540 = vst.msk [vmem:[%s6530_s7 + $0x70] sm:$0xff] %vm2525_vm8, %v2506_v22 }
 0x371   :  { %v3964_v11 = vpop.f32.mrf.mxu0 }
 0x372   :  { %v3003_v42 = vadd.f32 %v3964_v11, %v6024_v35 }
 0x373   :  { %v2997_v51 = vpop.f32.mrf.mxu0 }
 0x374   :  { %3553 = vst.msk [vmem:[%s6530_s7 + $0xb8] sm:$0xff] %vm1633_vm7, %v3003_v42  ;;  %v2998_v53 = vadd.f32 %v2997_v51, %v6024_v35 }
 0x376   :  { %3552 = vst.msk [vmem:[%s6530_s7 + $0xb0] sm:$0xff] %vm1633_vm7, %v2998_v53 }
 0x37a   :  { %v3923_v20 = vpop.f32.mrf.mxu1  ;;  %v3967_v13 = vpop.f32.mrf.mxu0 }
 0x37b   :  { %v6172_v27 = vadd.f32 %v3923_v20, %v6160_v0  ;;  %v3013_v45 = vadd.f32 %v3967_v13, %v6024_v35 }
 0x37c   :  { %v2142_v59 = vpop.f32.mrf.mxu1  ;;  %v3007_v12 = vpop.f32.mrf.mxu0 }
 0x37d   :  { %v2238_v19 = vmin.f32 %v6172_v27, 20.0  ;;  %v6176_v36 = vadd.f32 %v2142_v59, %v6160_v0  ;;  %3555 = vst.msk [vmem:[%s6530_s7 + $0xc8] sm:$0xff] %vm1633_vm7, %v3013_v45  ;;  %v3008_v39 = vadd.f32 %v3007_v12, %v6024_v35  ;;  %vm2222_vm9 = vcmp.gt.f32.partialorder %v6172_v27, 20.0 }
 0x37e   :  { %v3926_v61 = vpop.f32.mrf.mxu1 }
 0x37f   :  { %v2255_v57 = vmul.f32 1.442695, %v2238_v19  ;;  %v2237_v63 = vmin.f32 %v6176_v36, 20.0  ;;  %v6180_v62 = vadd.f32 %v3926_v61, %v6160_v0  ;;  %3554 = vst.msk [vmem:[%s6530_s7 + $0xc0] sm:$0xff] %vm1633_vm7, %v3008_v39  ;;  %vm2221_vm11 = vcmp.gt.f32.partialorder %v6176_v36, 20.0 }
 0x380   :  { %v2152_v17 = vpop.f32.mrf.mxu1 }
 0x381   :  { %4343 = vpow2.f32 %v2255_v57  ;;  %v2253_v34 = vmul.f32 1.442695, %v2237_v63  ;;  %v2240_v4 = vmin.f32 %v6180_v62, 20.0  ;;  %v6185_v47 = vadd.f32 %v2152_v17, %v6160_v0 }
 0x382   :  { %v3929_v10 = vpop.f32.mrf.mxu1  ;;  %v3970_v6 = vpop.f32.mrf.mxu0  ;;  %vm2224_vm14 = vcmp.gt.f32.partialorder %v6180_v62, 20.0 }
 0x383   :  { %4345 = vpow2.f32 %v2253_v34  ;;  %v2259_v40 = vmul.f32 1.442695, %v2240_v4  ;;  %v6193_v26 = vadd.f32 %v3929_v10, %v6160_v0  ;;  %v2239_v8 = vmin.f32 %v6185_v47, 20.0 }
 0x384   :  { %v2162_v54 = vpop.f32.mrf.mxu1  ;;  %v3023_v23 = vadd.f32 %v3970_v6, %v6024_v35  ;;  %v3017_v41 = vpop.f32.mrf.mxu0  ;;  %vm2223_vm15 = vcmp.gt.f32.partialorder %v6185_v47, 20.0 }
 0x385   :  { %4347 = vpow2.f32 %v2259_v40  ;;  %v2242_v5 = vmin.f32 %v6193_v26, 20.0  ;;  %v6202_v32 = vadd.f32 %v2162_v54, %v6160_v0  ;;  %v2257_v58 = vmul.f32 1.442695, %v2239_v8 }
 0x386   :  { %v3932_v50 = vpop.f32.mrf.mxu1  ;;  %3557 = vst.msk [vmem:[%s6530_s7 + $0xd8] sm:$0xff] %vm1633_vm7, %v3023_v23  ;;  %v3018_v15 = vadd.f32 %v3017_v41, %v6024_v35  ;;  %vm2226_vm3 = vcmp.gt.f32.partialorder %v6193_v26, 20.0 }
 0x387   :  { %v2263_v9 = vmul.f32 1.442695, %v2242_v5  ;;  %v2241_v60 = vmin.f32 %v6202_v32, 20.0  ;;  %v6206_v29 = vadd.f32 %v3932_v50, %v6160_v0  ;;  %4349 = vpow2.f32 %v2257_v58 }
 0x388   :  { %v2172_v28 = vpop.f32.mrf.mxu1  ;;  %3556 = vst.msk [vmem:[%s6530_s7 + $0xd0] sm:$0xff] %vm1633_vm7, %v3018_v15  ;;  %vm2225_vm4 = vcmp.gt.f32.partialorder %v6202_v32, 20.0 }
 0x389   :  { %4351 = vpow2.f32 %v2263_v9  ;;  %v2261_v2 = vmul.f32 1.442695, %v2241_v60  ;;  %v2244_v16 = vmin.f32 %v6206_v29, 20.0  ;;  %v6211_v21 = vadd.f32 %v2172_v28, %v6160_v0 }
 0x38a   :  { %v3935_v55 = vpop.f32.mrf.mxu1  ;;  %vm2228_vm5 = vcmp.gt.f32.partialorder %v6206_v29, 20.0 }
 0x38b   :  { %4353 = vpow2.f32 %v2261_v2  ;;  %v2267_v52 = vmul.f32 1.442695, %v2244_v16  ;;  %v6219_v46 = vadd.f32 %v3935_v55, %v6160_v0  ;;  %v2243_v43 = vmin.f32 %v6211_v21, 20.0 }
 0x38c   :  { %v2182_v30 = vpop.f32.mrf.mxu1 }
 0x38d   :  { %4355 = vpow2.f32 %v2267_v52  ;;  %v2246_v1 = vmin.f32 %v6219_v46, 20.0  ;;  %v6228_v24 = vadd.f32 %v2182_v30, %v6160_v0  ;;  %v2265_v56 = vmul.f32 1.442695, %v2243_v43 }
 0x38e   :  { %v4344_v14 = vpop.eup %4343  ;;  %v3938_v31 = vpop.f32.mrf.mxu1 }
 0x38f   :  { %v2294_v25 = vadd.f32 1.0, %v4344_v14  ;;  %v2271_v44 = vmul.f32 1.442695, %v2246_v1  ;;  %4357 = vpow2.f32 %v2265_v56  ;;  %v2245_v37 = vmin.f32 %v6228_v24, 20.0 }
 0x390   :  { %v4346_v7 = vpop.eup %4345  ;;  %v6232_v11 = vadd.f32 %v3938_v31, %v6160_v0  ;;  %v2297_v49 = vmul.f32 -0.5, %v4344_v14  ;;  %v2300_v20 = vand.u32 2147483647, %v4344_v14  ;;  %v2192_v23 = vpop.f32.mrf.mxu1 }
 0x391   :  { %4359 = vlog2.f32 %v2294_v25  ;;  %v2285_v3 = vadd.f32 1.0, %v4346_v7  ;;  %v2269_v22 = vmul.f32 1.442695, %v2245_v37  ;;  %v2288_v38 = vmul.f32 -0.5, %v4346_v7 }
 0x392   :  { %v4348_v48 = vpop.eup %4347  ;;  %4361 = vpow2.f32 %v2271_v44  ;;  %v2248_v61 = vmin.f32 %v6232_v11, 20.0  ;;  %v2298_v17 = vadd.f32 1.0, %v2297_v49  ;;  %v2291_v12 = vand.u32 2147483647, %v4346_v7 }
 0x393   :  { %4363 = vlog2.f32 %v2285_v3  ;;  %v2312_v42 = vadd.f32 1.0, %v4348_v48  ;;  %v2315_v59 = vmul.f32 -0.5, %v4348_v48  ;;  %v2289_v45 = vadd.f32 1.0, %v2288_v38 }
 0x394   :  { %4365 = vpow2.f32 %v2269_v22  ;;  %v4350_v51 = vpop.eup %4349  ;;  %v2318_v34 = vand.u32 2147483647, %v4348_v48  ;;  %vm6241_vm10 = vcmp.lt.f32.partialorder %v2300_v20, 0.0004427343  ;;  %v2275_v54 = vmul.f32 1.442695, %v2248_v61  ;;  %v3941_v22 = vpop.f32.mrf.mxu1 }
 0x395   :  { %4367 = vlog2.f32 %v2312_v42  ;;  %v2303_v19 = vadd.f32 1.0, %v4350_v51  ;;  %v2306_v13 = vmul.f32 -0.5, %v4350_v51  ;;  %v2316_v8 = vadd.f32 1.0, %v2315_v59 }
 0x396   :  { %v4352_v53 = vpop.eup %4351  ;;  %v2309_v58 = vand.u32 2147483647, %v4350_v51  ;;  %v2299_v9 = vmul.f32 %v4344_v14, %v2298_v17  ;;  %vm6247_vm12 = vcmp.lt.f32.partialorder %v2291_v12, 0.0004427343  ;;  %v2290_v16 = vmul.f32 %v4346_v7, %v2289_v45 }
 0x397   :  { %v2330_v57 = vadd.f32 1.0, %v4352_v53  ;;  %4369 = vlog2.f32 %v2303_v19  ;;  %v2333_v4 = vmul.f32 -0.5, %v4352_v53  ;;  %v2307_v5 = vadd.f32 1.0, %v2306_v13 }
 0x398   :  { %v6235_v63 = vpop.eup %4353  ;;  %v2336_v6 = vand.u32 2147483647, %v4352_v53  ;;  %vm6254_vm13 = vcmp.lt.f32.partialorder %v2318_v34, 0.0004427343  ;;  %v2317_v56 = vmul.f32 %v4348_v48, %v2316_v8  ;;  %vm6264_vm0 = vcmp.lt.f32.partialorder %v2309_v58, 0.0004427343  ;;  %v2202_v58 = vpop.f32.mrf.mxu1 }
 0x399   :  { %4371 = vlog2.f32 %v2330_v57  ;;  %v2321_v10 = vadd.f32 1.0, %v6235_v63  ;;  %v2324_v28 = vmul.f32 -0.5, %v6235_v63  ;;  %v2334_v55 = vadd.f32 1.0, %v2333_v4 }
 0x39a   :  { %v6238_v39 = vpop.eup %4355  ;;  %v2327_v52 = vand.u32 2147483647, %v6235_v63  ;;  %v2308_v25 = vmul.f32 %v4350_v51, %v2307_v5  ;;  %vm6269_vm1 = vcmp.lt.f32.partialorder %v2336_v6, 0.0004427343  ;;  %v6279_v51 = vadd.f32 %v2192_v23, %v6160_v0 }
 0x39b   :  { %4373 = vlog2.f32 %v2321_v10  ;;  %v2348_v50 = vadd.f32 1.0, %v6238_v39  ;;  %v2351_v43 = vmul.f32 -0.5, %v6238_v39  ;;  %v2325_v37 = vadd.f32 1.0, %v2324_v28 }
 0x39c   :  { %v6252_v2 = vpop.eup %4357  ;;  %v2335_v38 = vmul.f32 %v4352_v53, %v2334_v55  ;;  %vm6281_vm2 = vcmp.lt.f32.partialorder %v2327_v52, 0.0004427343  ;;  %v2354_v61 = vand.u32 2147483647, %v6238_v39  ;;  %v6295_v45 = vadd.f32 %v3941_v22, %v6160_v0  ;;  %v3973_v52 = vpop.f32.mrf.mxu0 }
 0x39d   :  { %4375 = vlog2.f32 %v2348_v50  ;;  %v2339_v30 = vadd.f32 1.0, %v6252_v2  ;;  %v2352_v19 = vadd.f32 1.0, %v2351_v43  ;;  %v2342_v13 = vmul.f32 -0.5, %v6252_v2 }
 0x39e   :  { %v4360_v15 = vpop.eup %4359  ;;  %4377 = vpow2.f32 %v2275_v54  ;;  %v2326_v34 = vmul.f32 %v6235_v63, %v2325_v37  ;;  %v2345_v54 = vand.u32 2147483647, %v6252_v2  ;;  %v2247_v5 = vmin.f32 %v6279_v51, 20.0 }
 0x39f   :  { %v6261_v1 = vpop.eup %4361  ;;  %v2296_v14 = vmul.f32 0.6931472, %v4360_v15  ;;  %4379 = vlog2.f32 %v2339_v30  ;;  %v2353_v6 = vmul.f32 %v6238_v39, %v2352_v19  ;;  %vm6309_vm6 = vcmp.lt.f32.partialorder %v2354_v61, 0.0004427343  ;;  %v3027_v61 = vpop.f32.mrf.mxu0 }
 0x3a0   :  { %v4364_v31 = vpop.eup %4363  ;;  %v2366_v3 = vadd.f32 1.0, %v6261_v1  ;;  %v2369_v4 = vmul.f32 -0.5, %v6261_v1  ;;  %v2372_v23 = vand.u32 2147483647, %v6261_v1  ;;  %v2273_v39 = vmul.f32 1.442695, %v2247_v5 }
 0x3a1   :  { %v6274_v42 = vpop.eup %4365  ;;  %v2302_v48 = vsel %vm6241_vm10, %v2299_v9, %v2296_v14  ;;  %v2287_v49 = vmul.f32 0.6931472, %v4364_v31  ;;  %vm6329_vm10 = vcmp.lt.f32.partialorder %v2345_v54, 0.0004427343 }
 0x3a2   :  { %v4368_v20 = vpop.eup %4367  ;;  %4381 = vlog2.f32 %v2366_v3  ;;  %v2430_v57 = vsel %vm2222_vm9, %v6172_v27, %v2302_v48  ;;  %v2357_v27 = vadd.f32 1.0, %v6274_v42  ;;  %vm2227_vm9 = vcmp.gt.f32.partialorder %v6211_v21, 20.0 }
 0x3a3   :  { %v2293_v53 = vsel %vm6247_vm12, %v2290_v16, %v2287_v49  ;;  %v2314_v17 = vmul.f32 0.6931472, %v4368_v20  ;;  %v3474_v9 = vadd.f32 -0.6931472, %v2430_v57  ;;  %v2370_v15 = vadd.f32 1.0, %v2369_v4 }
 0x3a4   :  { %v2429_v12 = vsel %vm2221_vm11, %v6176_v36, %v2293_v53  ;;  %v4370_v10 = vpop.eup %4369  ;;  %v2343_v36 = vadd.f32 1.0, %v2342_v13  ;;  %4383 = vlog2.f32 %v2357_v27  ;;  %v2360_v3 = vmul.f32 -0.5, %v6274_v42 }
 0x3a5   :  { %v3473_v40 = vadd.f32 -0.6931472, %v2429_v12  ;;  %v2320_v8 = vsel %vm6254_vm13, %v2317_v56, %v2314_v17  ;;  %v2305_v60 = vmul.f32 0.6931472, %v4370_v10  ;;  %v3944_v56 = vpop.f32.mrf.mxu1  ;;  %v6339_v49 = vadd.f32 %v2202_v58, %v6160_v0 }
 0x3a6   :  { %v4372_v50 = vpop.eup %4371  ;;  %v2432_v41 = vsel %vm2224_vm14, %v6180_v62, %v2320_v8  ;;  %v2250_v62 = vmin.f32 %v6295_v45, 20.0  ;;  %v2344_v31 = vmul.f32 %v6252_v2, %v2343_v36  ;;  %vm6347_vm11 = vcmp.lt.f32.partialorder %v2372_v23, 0.0004427343 }
 0x3a7   :  { %v2332_v63 = vmul.f32 0.6931472, %v4372_v50  ;;  %3985 = vmatprep.mubr.msk.f32.mxu1 %vm1633_vm7, %v3473_v40  ;;  %v2311_v55 = vsel %vm6264_vm0, %v2308_v25, %v2305_v60  ;;  %v2371_v53 = vmul.f32 %v6261_v1, %v2370_v15  ;;  %4385 = vpow2.f32 %v2273_v39 }
 0x3a8   :  { %v4374_v16 = vpop.eup %4373  ;;  %3986 = vmatmul.mubr.msk.f32.vlgmr.msra.gmra.mxu1 %vm1633_vm7, %v3474_v9  ;;  %v2431_v43 = vsel %vm2223_vm15, %v6185_v47, %v2311_v55  ;;  %v3476_v47 = vadd.f32 -0.6931472, %v2432_v41  ;;  %v2279_v19 = vmul.f32 1.442695, %v2250_v62  ;;  %v2361_v17 = vadd.f32 1.0, %v2360_v3 }
 0x3a9   :  { %v2338_v30 = vsel %vm6269_vm1, %v2335_v38, %v2332_v63  ;;  %v2323_v14 = vmul.f32 0.6931472, %v4374_v16  ;;  %v3475_v25 = vadd.f32 -0.6931472, %v2431_v43  ;;  %v2249_v40 = vmin.f32 %v6339_v49, 20.0 }
 0x3aa   :  { %v4376_v44 = vpop.eup %4375  ;;  %v2434_v2 = vsel %vm2226_vm3, %v6193_v26, %v2338_v30  ;;  %v2212_v26 = vpop.f32.mrf.mxu1  ;;  %4387 = vpow2.f32 %v2279_v19  ;;  %v6362_v1 = vadd.f32 %v3944_v56, %v6160_v0  ;;  %v3033_v58 = vadd.f32 %v3973_v52, %v6024_v35 }
 0x3ab   :  { %v6334_v22 = vpop.eup %4377  ;;  %v2329_v7 = vsel %vm6281_vm2, %v2326_v34, %v2323_v14  ;;  %v2350_v48 = vmul.f32 0.6931472, %v4376_v44  ;;  %3988 = vmatprep.mubr.msk.f32.mxu1 %vm1633_vm7, %v3475_v25  ;;  %v3976_v34 = vpop.f32.mrf.mxu0  ;;  %v3478_v27 = vadd.f32 -0.6931472, %v2434_v2  ;;  %v6368_v5 = vadd.f32 %v2212_v26, %v6160_v0 }
 0x3ac   :  { %v2433_v38 = vsel %vm2225_vm4, %v6202_v32, %v2329_v7  ;;  %v4380_v59 = vpop.eup %4379  ;;  %3989 = vmatmul.mubr.msk.f32.gmra.mxu1 %vm1633_vm7, %v3476_v47  ;;  %v2384_v12 = vadd.f32 1.0, %v6334_v22  ;;  %v2363_v50 = vand.u32 2147483647, %v6274_v42  ;;  %v2277_v9 = vmul.f32 1.442695, %v2249_v40  ;;  %3559 = vst.msk [vmem:[%s6530_s7 + $0xe8] sm:$0xff] %vm1633_vm7, %v3033_v58 }
 0x3ad   :  { %v3477_v13 = vadd.f32 -0.6931472, %v2433_v38  ;;  %v2356_v57 = vsel %vm6309_vm6, %v2353_v6, %v2350_v48  ;;  %v2341_v32 = vmul.f32 0.6931472, %v4380_v59  ;;  %v2252_v60 = vmin.f32 %v6362_v1, 20.0  ;;  %v3037_v28 = vpop.f32.mrf.mxu0 }
 0x3ae   :  { %v2436_v10 = vsel %vm2228_vm5, %v6206_v29, %v2356_v57  ;;  %v2362_v6 = vmul.f32 %v6274_v42, %v2361_v17  ;;  %v2251_v0 = vmin.f32 %v6368_v5, 20.0  ;;  %4389 = vpow2.f32 %v2277_v9 }
 0x3af   :  { %v4382_v4 = vpop.eup %4381  ;;  %3991 = vmatprep.mubr.msk.f32.mxu1 %vm1633_vm7, %v3477_v13  ;;  %v2347_v8 = vsel %vm6329_vm10, %v2344_v31, %v2341_v32  ;;  %v3480_v36 = vadd.f32 -0.6931472, %v2436_v10  ;;  %v2283_v16 = vmul.f32 1.442695, %v2252_v60  ;;  %v3028_v41 = vadd.f32 %v3027_v61, %v6024_v35 }
 0x3b0   :  { %v2368_v54 = vmul.f32 0.6931472, %v4382_v4  ;;  %v2435_v29 = vsel %vm2227_vm9, %v6211_v21, %v2347_v8  ;;  %3992 = vmatmul.mubr.msk.f32.gmra.mxu1 %vm1633_vm7, %v3478_v27  ;;  %4391 = vlog2.f32 %v2384_v12  ;;  %v2281_v15 = vmul.f32 1.442695, %v2251_v0 }
 0x3b1   :  { %v3479_v63 = vadd.f32 -0.6931472, %v2435_v29  ;;  %v4384_v21 = vpop.eup %4383  ;;  %v3043_v42 = vadd.f32 %v3976_v34, %v6024_v35  ;;  %vm2230_vm12 = vcmp.gt.f32.partialorder %v6219_v46, 20.0  ;;  %vm2364_vm13 = vcmp.lt.f32.partialorder %v2363_v50, 0.0004427343  ;;  %3558 = vst.msk [vmem:[%s6530_s7 + $0xe0] sm:$0xff] %vm1633_vm7, %v3028_v41 }
 0x3b2   :  { %v2374_v23 = vsel %vm6347_vm11, %v2371_v53, %v2368_v54  ;;  %v2359_v55 = vmul.f32 0.6931472, %v4384_v21  ;;  %4393 = vpow2.f32 %v2283_v16  ;;  %v3038_v39 = vadd.f32 %v3037_v28, %v6024_v35 }
 0x3b3   :  { %3994 = vmatprep.mubr.msk.f32.mxu1 %vm1633_vm7, %v3479_v63  ;;  %v2438_v52 = vsel %vm2230_vm12, %v6219_v46, %v2374_v23  ;;  %vm2229_vm14 = vcmp.gt.f32.partialorder %v6228_v24, 20.0  ;;  %4395 = vpow2.f32 %v2281_v15  ;;  %3561 = vst.msk [vmem:[%s6530_s7 + $0xf8] sm:$0xff] %vm1633_vm7, %v3043_v42  ;;  %v2390_v20 = vand.u32 2147483647, %v6334_v22 }
 0x3b4   :  { %3995 = vmatmul.mubr.msk.f32.gmra.mxu1 %vm1633_vm7, %v3480_v36  ;;  %v2365_v43 = vsel %vm2364_vm13, %v2362_v6, %v2359_v55  ;;  %3560 = vst.msk [vmem:[%s6530_s7 + $0xf0] sm:$0xff] %vm1633_vm7, %v3038_v39  ;;  %v3482_v14 = vadd.f32 -0.6931472, %v2438_v52  ;;  %v4386_v62 = vpop.eup %4385  ;;  %vm2232_vm15 = vcmp.gt.f32.partialorder %v6232_v11, 20.0  ;;  %vm2231_vm2 = vcmp.gt.f32.partialorder %v6279_v51, 20.0 }
 0x3b5   :  { %v2437_v30 = vsel %vm2229_vm14, %v6228_v24, %v2365_v43  ;;  %v2375_v56 = vadd.f32 1.0, %v4386_v62  ;;  %v2387_v24 = vmul.f32 -0.5, %v6334_v22  ;;  %v2378_v7 = vmul.f32 -0.5, %v4386_v62 }
 0x3b6   :  { %v3481_v35 = vadd.f32 -0.6931472, %v2437_v30  ;;  %v2381_v57 = vand.u32 2147483647, %v4386_v62  ;;  %vm2391_vm0 = vcmp.lt.f32.partialorder %v2390_v20, 0.0004427343 }
 0x3b7   :  { %v4388_v46 = vpop.eup %4387  ;;  %4397 = vlog2.f32 %v2375_v56  ;;  %v2388_v2 = vadd.f32 1.0, %v2387_v24  ;;  %v2379_v59 = vadd.f32 1.0, %v2378_v7  ;;  %vm2234_vm4 = vcmp.gt.f32.partialorder %v6295_v45, 20.0 }
 0x3b8   :  { %3997 = vmatprep.mubr.msk.f32.mxu1 %vm1633_vm7, %v3481_v35  ;;  %v2402_v44 = vadd.f32 1.0, %v4388_v46  ;;  %v2405_v61 = vmul.f32 -0.5, %v4388_v46  ;;  %v2408_v27 = vand.u32 2147483647, %v4388_v46  ;;  %vm2382_vm1 = vcmp.lt.f32.partialorder %v2381_v57, 0.0004427343 }
 0x3b9   :  { %3998 = vmatmul.mubr.msk.f32.gmra.mxu1 %vm1633_vm7, %v3482_v14  ;;  %v2389_v13 = vmul.f32 %v6334_v22, %v2388_v2  ;;  %v2380_v4 = vmul.f32 %v4386_v62, %v2379_v59  ;;  %vm2233_vm5 = vcmp.gt.f32.partialorder %v6339_v49, 20.0  ;;  %vm2236_vm11 = vcmp.gt.f32.partialorder %v6362_v1, 20.0 }
 0x3ba   :  { %4399 = vlog2.f32 %v2402_v44  ;;  %v2406_v17 = vadd.f32 1.0, %v2405_v61  ;;  %vm6419_vm3 = vcmp.lt.f32.partialorder %v2408_v27, 0.0004427343  ;;  %vm2235_vm12 = vcmp.gt.f32.partialorder %v6368_v5, 20.0 }
 0x3bb   :  { %v4390_v25 = vpop.eup %4389  ;;  %v3049_v24 = vrot.slane %v6020_v33, %v6609_v18 }
 0x3bc   :  { %v2393_v37 = vadd.f32 1.0, %v4390_v25  ;;  %v2396_v53 = vmul.f32 -0.5, %v4390_v25  ;;  %v2407_v50 = vmul.f32 %v4388_v46, %v2406_v17  ;;  %v2399_v9 = vand.u32 2147483647, %v4390_v25 }
 0x3bd   :  { %v4392_v31 = vpop.eup %4391 }
 0x3be   :  { %4401 = vlog2.f32 %v2393_v37  ;;  %v2386_v19 = vmul.f32 0.6931472, %v4392_v31  ;;  %v2397_v58 = vadd.f32 1.0, %v2396_v53  ;;  %vm2400_vm6 = vcmp.lt.f32.partialorder %v2399_v9, 0.0004427343 }
 0x3bf   :  { %v4394_v3 = vpop.eup %4393 }
 0x3c0   :  { %v6409_v47 = vpop.eup %4395  ;;  %v2420_v48 = vadd.f32 1.0, %v4394_v3  ;;  %v2392_v32 = vsel %vm2391_vm0, %v2389_v13, %v2386_v19  ;;  %v2423_v10 = vmul.f32 -0.5, %v4394_v3  ;;  %v2398_v16 = vmul.f32 %v4390_v25, %v2397_v58 }
 0x3c1   :  { %v2411_v38 = vadd.f32 1.0, %v6409_v47  ;;  %v2414_v8 = vmul.f32 -0.5, %v6409_v47  ;;  %v2440_v54 = vsel %vm2232_vm15, %v6232_v11, %v2392_v32  ;;  %v2426_v11 = vand.u32 2147483647, %v4394_v3 }
 0x3c2   :  { %4403 = vlog2.f32 %v2420_v48  ;;  %v2424_v63 = vadd.f32 1.0, %v2423_v10  ;;  %v3484_v0 = vadd.f32 -0.6931472, %v2440_v54  ;;  %v2417_v41 = vand.u32 2147483647, %v6409_v47 }
 0x3c3   :  { %4405 = vlog2.f32 %v2411_v38  ;;  %v2415_v21 = vadd.f32 1.0, %v2414_v8  ;;  %vm2427_vm9 = vcmp.lt.f32.partialorder %v2426_v11, 0.0004427343 }
 0x3c4   :  { %v4398_v26 = vpop.eup %4397  ;;  %v2425_v52 = vmul.f32 %v4394_v3, %v2424_v63  ;;  %vm2418_vm10 = vcmp.lt.f32.partialorder %v2417_v41, 0.0004427343 }
 0x3c5   :  { %v2377_v34 = vmul.f32 0.6931472, %v4398_v26  ;;  %v2416_v35 = vmul.f32 %v6409_v47, %v2415_v21 }
 0x3c7   :  { %v4400_v12 = vpop.eup %4399  ;;  %v2383_v22 = vsel %vm2382_vm1, %v2380_v4, %v2377_v34 }
 0x3c8   :  { %v2404_v40 = vmul.f32 0.6931472, %v4400_v12  ;;  %v2439_v29 = vsel %vm2231_vm2, %v6279_v51, %v2383_v22 }
 0x3c9   :  { %v3483_v60 = vadd.f32 -0.6931472, %v2439_v29 }
 0x3ca   :  { %v2410_v28 = vsel %vm6419_vm3, %v2407_v50, %v2404_v40 }
 0x3cb   :  { %v4402_v6 = vpop.eup %4401  ;;  %4000 = vmatprep.mubr.msk.f32.mxu1 %vm1633_vm7, %v3483_v60  ;;  %v2442_v15 = vsel %vm2234_vm4, %v6295_v45, %v2410_v28 }
 0x3cc   :  { %v2395_v23 = vmul.f32 0.6931472, %v4402_v6  ;;  %4001 = vmatmul.mubr.msk.f32.gmra.mxu1 %vm1633_vm7, %v3484_v0  ;;  %v3486_v46 = vadd.f32 -0.6931472, %v2442_v15 }
 0x3ce   :  { %v2401_v42 = vsel %vm2400_vm6, %v2398_v16, %v2395_v23 }
 0x3cf   :  { %v4404_v51 = vpop.eup %4403  ;;  %v2441_v43 = vsel %vm2233_vm5, %v6339_v49, %v2401_v42 }
 0x3d0   :  { %v4406_v55 = vpop.eup %4405  ;;  %v2422_v39 = vmul.f32 0.6931472, %v4404_v51  ;;  %v3485_v14 = vadd.f32 -0.6931472, %v2441_v43 }
 0x3d1   :  { %v2413_v30 = vmul.f32 0.6931472, %v4406_v55 }
 0x3d2   :  { %v2428_v62 = vsel %vm2427_vm9, %v2425_v52, %v2422_v39  ;;  %4003 = vmatprep.mubr.msk.f32.mxu1 %vm1633_vm7, %v3485_v14 }
 0x3d3   :  { %v2419_v56 = vsel %vm2418_vm10, %v2416_v35, %v2413_v30  ;;  %v2444_v45 = vsel %vm2236_vm11, %v6362_v1, %v2428_v62  ;;  %4004 = vmatmul.mubr.msk.f32.gmra.mxu1 %vm1633_vm7, %v3486_v46 }
 0x3d4   :  { %v2443_v44 = vsel %vm2235_vm12, %v6368_v5, %v2419_v56  ;;  %v3488_v25 = vadd.f32 -0.6931472, %v2444_v45 }
 0x3d5   :  { %v3487_v49 = vadd.f32 -0.6931472, %v2443_v44 }
 0x3d7   :  { %4006 = vmatprep.mubr.msk.f32.mxu1 %vm1633_vm7, %v3487_v49 }
 0x3d8   :  { %4007 = vmatmul.mubr.msk.f32.gmra.mxu1 %vm1633_vm7, %v3488_v25 }
 0x468   :  { %v3987_v31 = vpop.f32.mrf.mxu1 }
 0x469   :  { %v3170_v37 = vadd.f32 %v3987_v31, %v3049_v24 }
 0x46a   :  { %v3164_v3 = vpop.f32.mrf.mxu1 }
 0x46b   :  { %v3165_v47 = vadd.f32 %v3164_v3, %v3049_v24  ;;  %3278 = vrot.lane.b32.xlu1 %v3170_v37, %s4411_s4 }
 0x46c   :  { %v3990_v1 = vpop.f32.mrf.mxu1 }
 0x46d   :  { %3276 = vrot.lane.b32.xlu0 %v3165_v47, %s4411_s4  ;;  %v3180_v5 = vadd.f32 %v3990_v1, %v3049_v24 }
 0x46e   :  { %v3174_v7 = vpop.f32.mrf.mxu1 }
 0x46f   :  { %v3175_v48 = vadd.f32 %v3174_v7, %v3049_v24  ;;  %3282 = vrot.lane.b32.xlu1 %v3180_v5, %s4411_s4 }
 0x470   :  { %v3993_v2 = vpop.f32.mrf.mxu1 }
 0x471   :  { %v3190_v38 = vadd.f32 %v3993_v2, %v3049_v24  ;;  %3280 = vrot.lane.b32.xlu0 %v3175_v48, %s4411_s4 }
 0x472   :  { %v3184_v20 = vpop.f32.mrf.mxu1 }
 0x473   :  { %v3185_v18 = vadd.f32 %v3184_v20, %v3049_v24  ;;  %3286 = vrot.lane.b32.xlu1 %v3190_v38, %s4411_s4 }
 0x474   :  { %v3996_v33 = vpop.f32.mrf.mxu1 }
 0x475   :  { %v3200_v19 = vadd.f32 %v3996_v33, %v3049_v24  ;;  %3284 = vrot.lane.b32.xlu0 %v3185_v18, %s4411_s4 }
 0x476   :  { %v3194_v61 = vpop.f32.mrf.mxu1 }
 0x477   :  { %v3195_v59 = vadd.f32 %v3194_v61, %v3049_v24  ;;  %3290 = vrot.lane.b32.xlu1 %v3200_v19, %s4411_s4 }
 0x479   :  { %3288 = vrot.lane.b32.xlu0 %v3195_v59, %s4411_s4  ;;  %v3999_v13 = vpop.f32.mrf.mxu1 }
 0x47a   :  { %v3210_v57 = vadd.f32 %v3999_v13, %v3049_v24 }
 0x47b   :  { %v3204_v53 = vpop.f32.mrf.mxu1 }
 0x47c   :  { %v3205_v26 = vadd.f32 %v3204_v53, %v3049_v24  ;;  %3294 = vrot.lane.b32.xlu1 %v3210_v57, %s4411_s4 }
 0x47e   :  { %3292 = vrot.lane.b32.xlu0 %v3205_v26, %s4411_s4 }
 0x48c   :  { %v4002_v32 = vpop.f32.mrf.mxu1 }
 0x48d   :  { %v3220_v17 = vadd.f32 %v4002_v32, %v3049_v24 }
 0x48e   :  { %v3214_v12 = vpop.f32.mrf.mxu1 }
 0x48f   :  { %v3215_v34 = vadd.f32 %v3214_v12, %v3049_v24  ;;  %3298 = vrot.lane.b32.xlu1 %v3220_v17, %s4411_s4 }
 0x491   :  { %3296 = vrot.lane.b32.xlu0 %v3215_v34, %s4411_s4 }
 0x493   :  { %v4005_v4 = vpop.f32.mrf.mxu1 }
 0x494   :  { %v3230_v27 = vadd.f32 %v4005_v4, %v3049_v24 }
 0x495   :  { %v3224_v10 = vpop.f32.mrf.mxu1 }
 0x496   :  { %v3225_v40 = vadd.f32 %v3224_v10, %v3049_v24  ;;  %3302 = vrot.lane.b32.xlu1 %v3230_v27, %s4411_s4 }
 0x498   :  { %v4008_v8 = vpop.f32.mrf.mxu1  ;;  %3300 = vrot.lane.b32.xlu0 %v3225_v40, %s4411_s4 }
 0x499   :  { %v3240_v54 = vadd.f32 %v4008_v8, %v3049_v24 }
 0x49a   :  { %v3234_v22 = vpop.f32.mrf.mxu1 }
 0x49b   :  { %v3235_v58 = vadd.f32 %v3234_v22, %v3049_v24  ;;  %3306 = vrot.lane.b32.xlu1 %v3240_v54, %s4411_s4 }
 0x49d   :  { %3304 = vrot.lane.b32.xlu0 %v3235_v58, %s4411_s4 }
 0x4dd   :  { %v3279_v29 = vpop.permute.xlu1 %3278 }
 0x4de   :  { %3563 = vst.msk [vmem:[%s6530_s7 + $0x88] sm:$0xff] %vm2525_vm8, %v3279_v29 }
 0x4df   :  { %v3277_v50 = vpop.permute.xlu0 %3276 }
 0x4e0   :  { %3562 = vst.msk [vmem:[%s6530_s7 + $0x80] sm:$0xff] %vm2525_vm8, %v3277_v50 }
 0x4e1   :  { %v3283_v9 = vpop.permute.xlu1 %3282 }
 0x4e2   :  { %3565 = vst.msk [vmem:[%s6530_s7 + $0x98] sm:$0xff] %vm2525_vm8, %v3283_v9 }
 0x4e3   :  { %v3281_v60 = vpop.permute.xlu0 %3280 }
 0x4e4   :  { %3564 = vst.msk [vmem:[%s6530_s7 + $0x90] sm:$0xff] %vm2525_vm8, %v3281_v60 }
 0x4e5   :  { %v3287_v36 = vpop.permute.xlu1 %3286 }
 0x4e6   :  { %3567 = vst.msk [vmem:[%s6530_s7 + $0xa8] sm:$0xff] %vm2525_vm8, %v3287_v36 }
 0x4e7   :  { %v3285_v63 = vpop.permute.xlu0 %3284 }
 0x4e8   :  { %3566 = vst.msk [vmem:[%s6530_s7 + $0xa0] sm:$0xff] %vm2525_vm8, %v3285_v63 }
 0x4e9   :  { %v3291_v6 = vpop.permute.xlu1 %3290 }
 0x4ea   :  { %3569 = vst.msk [vmem:[%s6530_s7 + $0xb8] sm:$0xff] %vm2525_vm8, %v3291_v6 }
 0x4eb   :  { %v3289_v0 = vpop.permute.xlu0 %3288 }
 0x4ec   :  { %3568 = vst.msk [vmem:[%s6530_s7 + $0xb0] sm:$0xff] %vm2525_vm8, %v3289_v0 }
 0x4ee   :  { %v3295_v28 = vpop.permute.xlu1 %3294 }
 0x4ef   :  { %3571 = vst.msk [vmem:[%s6530_s7 + $0xc8] sm:$0xff] %vm2525_vm8, %v3295_v28 }
 0x4f0   :  { %v3293_v11 = vpop.permute.xlu0 %3292 }
 0x4f1   :  { %3570 = vst.msk [vmem:[%s6530_s7 + $0xc0] sm:$0xff] %vm2525_vm8, %v3293_v11 }
 0x501   :  { %v3299_v21 = vpop.permute.xlu1 %3298 }
 0x502   :  { %3573 = vst.msk [vmem:[%s6530_s7 + $0xd8] sm:$0xff] %vm2525_vm8, %v3299_v21 }
 0x503   :  { %v3297_v23 = vpop.permute.xlu0 %3296 }
 0x504   :  { %3572 = vst.msk [vmem:[%s6530_s7 + $0xd0] sm:$0xff] %vm2525_vm8, %v3297_v23 }
 0x508   :  { %v3303_v16 = vpop.permute.xlu1 %3302 }
 0x509   :  { %3575 = vst.msk [vmem:[%s6530_s7 + $0xe8] sm:$0xff] %vm2525_vm8, %v3303_v16 }
 0x50a   :  { %v3301_v41 = vpop.permute.xlu0 %3300 }
 0x50b   :  { %3574 = vst.msk [vmem:[%s6530_s7 + $0xe0] sm:$0xff] %vm2525_vm8, %v3301_v41 }
 0x50d   :  { %v3307_v51 = vpop.permute.xlu1 %3306 }
 0x50e   :  { %3577 = vst.msk [vmem:[%s6530_s7 + $0xf8] sm:$0xff] %vm2525_vm8, %v3307_v51 }
 0x50f   :  { %v3305_v55 = vpop.permute.xlu0 %3304 }
 0x510   :  { %3576 = vst.msk [vmem:[%s6530_s7 + $0xf0] sm:$0xff] %vm2525_vm8, %v3305_v55 }

</bundles_post_ra>
